<compile_context>
chip_gen: v7x
topology: tpu7x:2x2x1
jax: 0.10.0
libtpu: 0.0.40
codegen_flags: <defaults>
</compile_context>

<pallas_src>
import functools
import math

import jax
import jax.numpy as jnp
from jax.experimental import pallas as pl
from jax.experimental.pallas import tpu as pltpu

F32 = jnp.float32
BF16 = jnp.bfloat16
NEG_INF = -1e9


# ---------------------------------------------------------------------------
# In-kernel helpers
# ---------------------------------------------------------------------------
def _dot(a, b):
    return jnp.dot(a, b, preferred_element_type=F32)


def _dot_nt(a, b):  # a[m,k] @ b[n,k]^T -> [m,n]
    return jax.lax.dot_general(a, b, (((1,), (1,)), ((), ())),
                               preferred_element_type=F32)


def _softmax_last(s):
    s = s - jnp.max(s, axis=-1, keepdims=True)
    p = jnp.exp(s)
    return p * pl.reciprocal(jnp.sum(p, axis=-1, keepdims=True), approx=True)


def _layernorm(z, gamma, beta, eps):
    # openvqa LayerNorm: a_2 * (x - mean) / (std + eps) + b_2, unbiased std
    n = z.shape[-1]
    mean = jnp.mean(z, axis=-1, keepdims=True)
    d = z - mean
    var = jnp.sum(d * d, axis=-1, keepdims=True) * (1.0 / (n - 1.0))
    return gamma * d * pl.reciprocal(jnp.sqrt(var) + eps, approx=True) + beta


# ---------------------------------------------------------------------------
# Fused TRAR-layer kernel (G batch elements per grid step, all heads inside)
# ---------------------------------------------------------------------------
def _trar_kernel(x_ref, y_ref, xb_ref, yb_ref,
                 wx_ref, bx_ref, wy_ref, by_ref,
                 wg_ref, bg_ref, afv_ref, afh_ref,
                 wq2_ref, bq2_ref,
                 wm1_ref, bm1_ref, wm2_ref, bm2_ref,
                 wf1_ref, bf1_ref, wf2_ref, bf2_ref,
                 lng_ref, lnb_ref,
                 o_ref,
                 att_scr, m1_scr, m2_scr,
                 *, G, H, Dh, Lx, Ly, eps):
    hid = H * Dh

    x_bf = x_ref[...]          # [G*Lx, hid] bf16
    y_bf = y_ref[...]          # [G*Ly, hid] bf16
    xb = xb_ref[...]           # [G, 1, Lx] f32 additive key-mask bias
    yb = yb_ref[...]           # [G, 1, Ly] f32
    afv = afv_ref[...]         # [2*Lx, Lx] bf16 : [Ar ; Ai]
    afh = afh_ref[...]         # [Lx, 2*Lx] bf16 : [Ar | Ai]
    lng = lng_ref[...]         # [3, hid] LayerNorm gammas
    lnb = lnb_ref[...]         # [3, hid] LayerNorm betas

    # ---- fused projections over all G batch rows (M=G*L fills the MXU) ------
    # x-side layout: [q1 | k1 | v1 | q*Br | q*Bi | k*Br | k*Bi]   (scale folded in q)
    px = _dot(x_bf, wx_ref[...]) + bx_ref[...]       # [G*Lx, 7*hid] f32
    # y-side layout: [s | k2 | v2]
    py = _dot(y_bf, wy_ref[...]) + by_ref[...]       # [G*Ly, 3*hid] f32

    # -------------------- Fourier multi-head self-attention (v=k=q=x, s=y) ---
    for g in range(G):
        rx = slice(g * Lx, (g + 1) * Lx)
        ry = slice(g * Ly, (g + 1) * Ly)

        q1 = px[rx, 0 * hid:1 * hid]
        k1 = px[rx, 1 * hid:2 * hid]
        v1 = px[rx, 2 * hid:3 * hid]
        fft_in = px[rx, 3 * hid:7 * hid].astype(BF16)            # [Lx, 4*hid]

        # sequence-axis DFT of all four folded blocks in one stacked matmul
        AF = _dot(afv, fft_in)                                   # [2*Lx, 4*hid] f32
        ArF, AiF = AF[:Lx], AF[Lx:]
        qf_re = ArF[:, 0 * hid:1 * hid] - AiF[:, 1 * hid:2 * hid]
        qf_im = ArF[:, 1 * hid:2 * hid] + AiF[:, 0 * hid:1 * hid]
        kf_re = ArF[:, 2 * hid:3 * hid] - AiF[:, 3 * hid:4 * hid]
        kf_im = ArF[:, 3 * hid:4 * hid] + AiF[:, 2 * hid:3 * hid]

        # all head gates in a single [H, Dh] @ [Dh, 2*Dh] matmul + one sigmoid
        s_pool = jnp.mean(py[ry, 0:hid], axis=0, keepdims=True)             # [1, hid]
        s_ph = jnp.concatenate([s_pool[:, h * Dh:(h + 1) * Dh]
                                for h in range(H)], axis=0)                  # [H, Dh]
        gates = jax.nn.sigmoid(_dot(s_ph.astype(BF16), wg_ref[...])
                               + bg_ref[...])                                # [H, 2*Dh]

        # gated complex frequency scores; heads stacked along scratch ROWS
        for h in range(H):
            c = slice(h * Dh, (h + 1) * Dh)
            r = slice(h * Lx, (h + 1) * Lx)
            qre = qf_re[:, c].astype(BF16)
            qim = qf_im[:, c].astype(BF16)
            kre = kf_re[:, c].astype(BF16)
            kim = kf_im[:, c].astype(BF16)
            s_re = _dot_nt(qre, kre) - _dot_nt(qim, kim)       # 1/sqrt(dk) folded in Wq
            s_im = _dot_nt(qre, kim) + _dot_nt(qim, kre)
            g_sh = gates[h:h + 1, Dh:2 * Dh]                   # ifftshift-folded gate
            m_re = (s_re * g_sh).astype(BF16)
            m_im = (s_im * g_sh).astype(BF16)
            m1_scr[r, 0:Lx] = m_re                              # [M_re | M_im]
            m1_scr[r, Lx:2 * Lx] = m_im
            m2_scr[r, 0:Lx] = m_im                              # [M_im | -M_re]
            m2_scr[r, Lx:2 * Lx] = -m_re

        # right half of ifft2 batched across EVERY head: [H*Lx, 2Lx] @ [2Lx, Lx]
        u_re = _dot(m1_scr[...], afv)                           # M_re@Ar + M_im@Ai
        u_im = _dot(m2_scr[...], afv)                           # M_im@Ar - M_re@Ai

        for h in range(H):
            c = slice(h * Dh, (h + 1) * Dh)
            r = slice(h * Lx, (h + 1) * Lx)
            uv = jnp.concatenate([u_re[r], u_im[r]], axis=0).astype(BF16)    # [2Lx, Lx]
            ifft_re = _dot(afh, uv)                             # Re(ifft2(M)), [Lx, Lx]
            s_sp = _dot_nt(q1[:, c].astype(BF16), k1[:, c].astype(BF16))
            scores = ifft_re + s_sp * gates[h:h + 1, 0:Dh] + xb[g]
            p = _softmax_last(scores).astype(BF16)
            att_scr[rx, c] = _dot(p, v1[:, c].astype(BF16)).astype(BF16)

    # merge projection + residual + LayerNorm1 (fused)
    x1 = _layernorm(x_bf.astype(F32)
                    + _dot(att_scr[...], wm1_ref[...]) + bm1_ref[...],
                    lng[0:1, :], lnb[0:1, :], eps)

    # -------------------- standard multi-head attention: x attends to y ------
    q2 = _dot(x1.astype(BF16), wq2_ref[...]) + bq2_ref[...]     # [G*Lx, hid]
    for g in range(G):
        rx = slice(g * Lx, (g + 1) * Lx)
        ry = slice(g * Ly, (g + 1) * Ly)
        k2 = py[ry, 1 * hid:2 * hid].astype(BF16)
        v2 = py[ry, 2 * hid:3 * hid].astype(BF16)
        for h in range(H):
            c = slice(h * Dh, (h + 1) * Dh)
            sc = _dot_nt(q2[rx, c].astype(BF16), k2[:, c]) + yb[g]
            p = _softmax_last(sc).astype(BF16)
            att_scr[rx, c] = _dot(p, v2[:, c]).astype(BF16)

    x2 = _layernorm(x1 + _dot(att_scr[...], wm2_ref[...]) + bm2_ref[...],
                    lng[1:2, :], lnb[1:2, :], eps)

    # -------------------- FFN (Linear -> ReLU -> Linear) + residual + LN3 ----
    hmid = jnp.maximum(_dot(x2.astype(BF16), wf1_ref[...]) + bf1_ref[...], 0.0)
    ffn = _dot(hmid.astype(BF16), wf2_ref[...]) + bf2_ref[...]
    o_ref[...] = _layernorm(x2 + ffn, lng[2:3, :], lnb[2:3, :], eps)


# ---------------------------------------------------------------------------
# pallas_call wrapper
# ---------------------------------------------------------------------------
_CONST_KEYS = ("wx", "bx", "wy", "by", "wg", "bg", "afv", "afh",
               "wq2", "bq2", "wm1", "bm1", "wm2", "bm2",
               "wf1", "bf1", "wf2", "bf2", "lng", "lnb")


def pallas_trar(x, y, x_mask, y_mask, prep, *, H, Dh, eps=1e-6, G=None,
                vmem_limit_bytes=32 * 1024 * 1024):
    B, Lx, hid = x.shape
    Ly = y.shape[1]
    assert hid == H * Dh
    assert Lx == Dh, "TRAR requires query length == HIDDEN_SIZE_HEAD"

    if G is None:                           # batch rows fused per grid step
        G = next(c for c in (4, 2, 1) if B % c == 0)
    assert B % G == 0                       # TODO(synk): pad batch when not divisible

    x2d = x.reshape(B * Lx, hid).astype(BF16)
    y2d = y.reshape(B * Ly, hid).astype(BF16)
    xb = jnp.where(x_mask, NEG_INF, 0.0).astype(F32).reshape(B, 1, Lx)
    yb = jnp.where(y_mask, NEG_INF, 0.0).astype(F32).reshape(B, 1, Ly)

    consts = [prep[k] for k in _CONST_KEYS]

    def const_spec(c):
        nd = c.ndim
        return pl.BlockSpec(tuple(c.shape), lambda b, _nd=nd: (0,) * _nd)

    out2d = pl.pallas_call(
        functools.partial(_trar_kernel, G=G, H=H, Dh=Dh, Lx=Lx, Ly=Ly, eps=eps),
        out_shape=jax.ShapeDtypeStruct((B * Lx, hid), F32),
        grid=(B // G,),
        in_specs=[pl.BlockSpec((G * Lx, hid), lambda b: (b, 0)),
                  pl.BlockSpec((G * Ly, hid), lambda b: (b, 0)),
                  pl.BlockSpec((G, 1, Lx), lambda b: (b, 0, 0)),
                  pl.BlockSpec((G, 1, Ly), lambda b: (b, 0, 0))]
                 + [const_spec(c) for c in consts],
        out_specs=pl.BlockSpec((G * Lx, hid), lambda b: (b, 0)),
        scratch_shapes=[pltpu.VMEM((G * Lx, hid), BF16),       # merged-head att output
                        pltpu.VMEM((H * Lx, 2 * Lx), BF16),    # [M_re | M_im]
                        pltpu.VMEM((H * Lx, 2 * Lx), BF16)],   # [M_im | -M_re]
        compiler_params=pltpu.CompilerParams(
            dimension_semantics=("parallel",),
            vmem_limit_bytes=vmem_limit_bytes),
    )(x2d, y2d, xb, yb, *consts)

    return out2d.reshape(B, Lx, hid)


# ---------------------------------------------------------------------------
# Parameters / one-time weight preparation (plain JAX, runs once)
# ---------------------------------------------------------------------------
def init_linear(key, din, dout):
    k1, k2 = jax.random.split(key)
    bound = 1.0 / math.sqrt(din)
    w = jax.random.uniform(k1, (din, dout), F32, -bound, bound)
    b = jax.random.uniform(k2, (1, dout), F32, -bound, bound)
    return w, b


def init_trar_params(key, hidden, ff, dh):
    names = ["s", "ws", "v1", "k1", "q1", "merge1",
             "v2", "k2", "q2", "merge2", "fc1", "fc2"]
    keys = jax.random.split(key, len(names))
    p = {}
    for name, kk in zip(names, keys):
        if name == "ws":
            p[name] = init_linear(kk, dh, dh)
        elif name == "fc1":
            p[name] = init_linear(kk, hidden, ff)
        elif name == "fc2":
            p[name] = init_linear(kk, ff, hidden)
        else:
            p[name] = init_linear(kk, hidden, hidden)
    for ln in ("ln1", "ln2", "ln3"):
        p[ln] = (jnp.ones((1, hidden), F32), jnp.zeros((1, hidden), F32))
    return p


def ortho_dft(n):
    # W[j,k] = exp(-2*pi*i*j*k/n) / sqrt(n) -> (real, imag), symmetric
    idx = jnp.arange(n, dtype=F32)
    ang = -2.0 * jnp.pi * idx[:, None] * idx[None, :] / n
    s = 1.0 / math.sqrt(n)
    return jnp.cos(ang) * s, jnp.sin(ang) * s


def prep_trar_weights(params, *, H, Dh, Lx):
    """Fuse Q/K/V + DFT-folded weights, fold 1/sqrt(d_k) into q, build shifted gate."""
    assert Lx == Dh and Dh % 2 == 0, "TRAR relies on query length == HIDDEN_SIZE_HEAD"
    hid = H * Dh
    scale = 1.0 / math.sqrt(Dh)
    br, bi = ortho_dft(Dh)     # head-dim ortho DFT, folded into Q/K weights
    ar, ai = ortho_dft(Lx)     # seq-dim ortho DFT, used in-kernel

    def fold(w, b, mat):
        wf = jnp.einsum('ihd,de->ihe', w.reshape(-1, H, Dh), mat).reshape(w.shape)
        bf = jnp.einsum('ihd,de->ihe', b.reshape(1, H, Dh), mat).reshape(1, hid)
        return wf, bf

    wq, bq = params["q1"]
    wq, bq = wq * scale, bq * scale                 # 1/sqrt(d_k) folded into q side
    wk, bk = params["k1"]
    wv, bv = params["v1"]
    wqbr, bqbr = fold(wq, bq, br)
    wqbi, bqbi = fold(wq, bq, bi)
    wkbr, bkbr = fold(wk, bk, br)
    wkbi, bkbi = fold(wk, bk, bi)
    wx = jnp.concatenate([wq, wk, wv, wqbr, wqbi, wkbr, wkbi], axis=1)   # [hid, 7*hid]
    bx = jnp.concatenate([bq, bk, bv, bqbr, bqbi, bkbr, bkbi], axis=1)

    ws, bs = params["s"]
    wk2, bk2 = params["k2"]
    wv2, bv2 = params["v2"]
    wy = jnp.concatenate([ws, wk2, wv2], axis=1)                          # [hid, 3*hid]
    by = jnp.concatenate([bs, bk2, bv2], axis=1)

    # gate weight: [Wws | ifftshift-rolled Wws]  (sigmoid commutes with the permutation)
    wws, bws = params["ws"]
    wg = jnp.concatenate([wws, jnp.roll(wws, -(Dh // 2), axis=1)], axis=1)  # [Dh, 2*Dh]
    bg = jnp.concatenate([bws, jnp.roll(bws, -(Dh // 2), axis=1)], axis=1)  # [1, 2*Dh]

    afv = jnp.concatenate([ar, ai], axis=0)    # [2*Lx, Lx]  vertical stack [Ar; Ai]
    afh = jnp.concatenate([ar, ai], axis=1)    # [Lx, 2*Lx]  horizontal stack [Ar | Ai]

    wq2 = params["q2"][0] * scale
    bq2 = params["q2"][1] * scale

    lng = jnp.concatenate([params["ln1"][0], params["ln2"][0], params["ln3"][0]], axis=0)
    lnb = jnp.concatenate([params["ln1"][1], params["ln2"][1], params["ln3"][1]], axis=0)

    cast = lambda w: w.astype(BF16)   # matmul weights bf16; biases / LN params f32
    return {
        "wx": cast(wx), "bx": bx, "wy": cast(wy), "by": by,
        "wg": cast(wg), "bg": bg, "afv": cast(afv), "afh": cast(afh),
        "wq2": cast(wq2), "bq2": bq2,
        "wm1": cast(params["merge1"][0]), "bm1": params["merge1"][1],
        "wm2": cast(params["merge2"][0]), "bm2": params["merge2"][1],
        "wf1": cast(params["fc1"][0]), "bf1": params["fc1"][1],
        "wf2": cast(params["fc2"][0]), "bf2": params["fc2"][1],
        "lng": lng, "lnb": lnb,
    }


if __name__ == "__main__":
    # small config consistent with TRAR's constraint (query length == HIDDEN_SIZE_HEAD)
    B, Lx, Ly = 4, 16, 8
    H, Dh = 2, 16            # MULTI_HEAD=2, HIDDEN_SIZE_HEAD=16 (mirrors 8 heads / 64)
    hidden = H * Dh          # HIDDEN_SIZE = 32
    ff = 64                  # FF_SIZE

    root = jax.random.PRNGKey(0)
    kx, ky, kp = jax.random.split(root, 3)
    x = jax.random.normal(kx, (B, Lx, hidden), F32)
    y = jax.random.normal(ky, (B, Ly, hidden), F32)
    x_mask = jnp.zeros((B, Lx), dtype=bool)                        # no image pos masked
    y_mask = jnp.zeros((B, Ly), dtype=bool).at[:, -1].set(True)    # last text tok = pad

    params = init_trar_params(kp, hidden, ff, Dh)
    prep = prep_trar_weights(params, H=H, Dh=Dh, Lx=Lx)

    # G=2 -> grid=(2,) so both v7x TensorCores get a batch group
    out = pallas_trar(x, y, x_mask, y_mask, prep, H=H, Dh=Dh, G=2)
    out = jax.block_until_ready(out)
    assert out.shape == (B, Lx, hidden)
    assert bool(jnp.all(jnp.isfinite(out)))
    print("KERNEL_OK")
</pallas_src>

<mosaic_0001>
module attributes {stable_mosaic.version = 11 : i64} {
  func.func @_trar_kernel(%arg0: i32, %arg1: memref<32x32xbf16, #tpu.memory_space<vmem>>, %arg2: memref<16x32xbf16, #tpu.memory_space<vmem>>, %arg3: memref<2x1x16xf32, #tpu.memory_space<vmem>>, %arg4: memref<2x1x8xf32, #tpu.memory_space<vmem>>, %arg5: memref<32x224xbf16, #tpu.memory_space<vmem>>, %arg6: memref<1x224xf32, #tpu.memory_space<vmem>>, %arg7: memref<32x96xbf16, #tpu.memory_space<vmem>>, %arg8: memref<1x96xf32, #tpu.memory_space<vmem>>, %arg9: memref<16x32xbf16, #tpu.memory_space<vmem>>, %arg10: memref<1x32xf32, #tpu.memory_space<vmem>>, %arg11: memref<32x16xbf16, #tpu.memory_space<vmem>>, %arg12: memref<16x32xbf16, #tpu.memory_space<vmem>>, %arg13: memref<32x32xbf16, #tpu.memory_space<vmem>>, %arg14: memref<1x32xf32, #tpu.memory_space<vmem>>, %arg15: memref<32x32xbf16, #tpu.memory_space<vmem>>, %arg16: memref<1x32xf32, #tpu.memory_space<vmem>>, %arg17: memref<32x32xbf16, #tpu.memory_space<vmem>>, %arg18: memref<1x32xf32, #tpu.memory_space<vmem>>, %arg19: memref<32x64xbf16, #tpu.memory_space<vmem>>, %arg20: memref<1x64xf32, #tpu.memory_space<vmem>>, %arg21: memref<64x32xbf16, #tpu.memory_space<vmem>>, %arg22: memref<1x32xf32, #tpu.memory_space<vmem>>, %arg23: memref<3x32xf32, #tpu.memory_space<vmem>>, %arg24: memref<3x32xf32, #tpu.memory_space<vmem>>, %arg25: memref<32x32xf32, #tpu.memory_space<vmem>>, %arg26: memref<32x32xbf16, #tpu.memory_space<vmem>>, %arg27: memref<32x32xbf16, #tpu.memory_space<vmem>>, %arg28: memref<32x32xbf16, #tpu.memory_space<vmem>>) attributes {dimension_semantics = [#tpu.dimension_semantics<parallel>], iteration_bounds = array<i64: 2>, scalar_prefetch = 0 : i64, scratch_operands = 3 : i64, tpu.core_type = #tpu.core_type<tc>, window_params = [{transform_indices = @transform_0, window_bounds = array<i64: 32, 32>}, {transform_indices = @transform_1, window_bounds = array<i64: 16, 32>}, {transform_indices = @transform_2, window_bounds = array<i64: 2, 1, 16>}, {transform_indices = @transform_3, window_bounds = array<i64: 2, 1, 8>}, {pipeline_mode = #tpu.pipeline_mode<synchronous>, transform_indices = @transform_4, window_bounds = array<i64: 32, 224>}, {pipeline_mode = #tpu.pipeline_mode<synchronous>, transform_indices = @transform_5, window_bounds = array<i64: 1, 224>}, {pipeline_mode = #tpu.pipeline_mode<synchronous>, transform_indices = @transform_6, window_bounds = array<i64: 32, 96>}, {pipeline_mode = #tpu.pipeline_mode<synchronous>, transform_indices = @transform_7, window_bounds = array<i64: 1, 96>}, {pipeline_mode = #tpu.pipeline_mode<synchronous>, transform_indices = @transform_8, window_bounds = array<i64: 16, 32>}, {pipeline_mode = #tpu.pipeline_mode<synchronous>, transform_indices = @transform_9, window_bounds = array<i64: 1, 32>}, {pipeline_mode = #tpu.pipeline_mode<synchronous>, transform_indices = @transform_10, window_bounds = array<i64: 32, 16>}, {pipeline_mode = #tpu.pipeline_mode<synchronous>, transform_indices = @transform_11, window_bounds = array<i64: 16, 32>}, {pipeline_mode = #tpu.pipeline_mode<synchronous>, transform_indices = @transform_12, window_bounds = array<i64: 32, 32>}, {pipeline_mode = #tpu.pipeline_mode<synchronous>, transform_indices = @transform_13, window_bounds = array<i64: 1, 32>}, {pipeline_mode = #tpu.pipeline_mode<synchronous>, transform_indices = @transform_14, window_bounds = array<i64: 32, 32>}, {pipeline_mode = #tpu.pipeline_mode<synchronous>, transform_indices = @transform_15, window_bounds = array<i64: 1, 32>}, {pipeline_mode = #tpu.pipeline_mode<synchronous>, transform_indices = @transform_16, window_bounds = array<i64: 32, 32>}, {pipeline_mode = #tpu.pipeline_mode<synchronous>, transform_indices = @transform_17, window_bounds = array<i64: 1, 32>}, {pipeline_mode = #tpu.pipeline_mode<synchronous>, transform_indices = @transform_18, window_bounds = array<i64: 32, 64>}, {pipeline_mode = #tpu.pipeline_mode<synchronous>, transform_indices = @transform_19, window_bounds = array<i64: 1, 64>}, {pipeline_mode = #tpu.pipeline_mode<synchronous>, transform_indices = @transform_20, window_bounds = array<i64: 64, 32>}, {pipeline_mode = #tpu.pipeline_mode<synchronous>, transform_indices = @transform_21, window_bounds = array<i64: 1, 32>}, {pipeline_mode = #tpu.pipeline_mode<synchronous>, transform_indices = @transform_22, window_bounds = array<i64: 3, 32>}, {pipeline_mode = #tpu.pipeline_mode<synchronous>, transform_indices = @transform_23, window_bounds = array<i64: 3, 32>}, {transform_indices = @transform_24, window_bounds = array<i64: 32, 32>}]} {
    %c0 = arith.constant 0 : index
    %c0_0 = arith.constant 0 : index
    %0 = vector.load %arg1[%c0, %c0_0] : memref<32x32xbf16, #tpu.memory_space<vmem>>, vector<32x32xbf16>
    %c0_1 = arith.constant 0 : index
    %c0_2 = arith.constant 0 : index
    %1 = vector.load %arg2[%c0_1, %c0_2] : memref<16x32xbf16, #tpu.memory_space<vmem>>, vector<16x32xbf16>
    %c0_3 = arith.constant 0 : index
    %c0_4 = arith.constant 0 : index
    %c0_5 = arith.constant 0 : index
    %2 = vector.load %arg3[%c0_3, %c0_4, %c0_5] : memref<2x1x16xf32, #tpu.memory_space<vmem>>, vector<2x1x16xf32>
    %c0_6 = arith.constant 0 : index
    %c0_7 = arith.constant 0 : index
    %c0_8 = arith.constant 0 : index
    %3 = vector.load %arg4[%c0_6, %c0_7, %c0_8] : memref<2x1x8xf32, #tpu.memory_space<vmem>>, vector<2x1x8xf32>
    %c0_9 = arith.constant 0 : index
    %c0_10 = arith.constant 0 : index
    %4 = vector.load %arg11[%c0_9, %c0_10] : memref<32x16xbf16, #tpu.memory_space<vmem>>, vector<32x16xbf16>
    %c0_11 = arith.constant 0 : index
    %c0_12 = arith.constant 0 : index
    %5 = vector.load %arg12[%c0_11, %c0_12] : memref<16x32xbf16, #tpu.memory_space<vmem>>, vector<16x32xbf16>
    %c0_13 = arith.constant 0 : index
    %c0_14 = arith.constant 0 : index
    %6 = vector.load %arg23[%c0_13, %c0_14] : memref<3x32xf32, #tpu.memory_space<vmem>>, vector<3x32xf32>
    %c0_15 = arith.constant 0 : index
    %c0_16 = arith.constant 0 : index
    %7 = vector.load %arg24[%c0_15, %c0_16] : memref<3x32xf32, #tpu.memory_space<vmem>>, vector<3x32xf32>
    %c0_17 = arith.constant 0 : index
    %c0_18 = arith.constant 0 : index
    %8 = vector.load %arg5[%c0_17, %c0_18] : memref<32x224xbf16, #tpu.memory_space<vmem>>, vector<32x224xbf16>
    %cst = arith.constant dense<0.000000e+00> : vector<32x224xf32>
    %9 = tpu.matmul %0, %8, %cst {dimension_numbers = #tpu.dot_dimension_numbers<[1], [0], [0], [1], [0, 0, 1, 1], [], []>} : vector<32x32xbf16>, vector<32x224xbf16>, vector<32x224xf32> -> vector<32x224xf32>
    %c0_19 = arith.constant 0 : index
    %c0_20 = arith.constant 0 : index
    %10 = vector.load %arg6[%c0_19, %c0_20] : memref<1x224xf32, #tpu.memory_space<vmem>>, vector<1x224xf32>
    %11 = vector.broadcast %10 : vector<1x224xf32> to vector<32x224xf32>
    %12 = arith.addf %9, %11 : vector<32x224xf32>
    %c0_21 = arith.constant 0 : index
    %c0_22 = arith.constant 0 : index
    %13 = vector.load %arg7[%c0_21, %c0_22] : memref<32x96xbf16, #tpu.memory_space<vmem>>, vector<32x96xbf16>
    %cst_23 = arith.constant dense<0.000000e+00> : vector<16x96xf32>
    %14 = tpu.matmul %1, %13, %cst_23 {dimension_numbers = #tpu.dot_dimension_numbers<[1], [0], [0], [1], [0, 0, 1, 1], [], []>} : vector<16x32xbf16>, vector<32x96xbf16>, vector<16x96xf32> -> vector<16x96xf32>
    %c0_24 = arith.constant 0 : index
    %c0_25 = arith.constant 0 : index
    %15 = vector.load %arg8[%c0_24, %c0_25] : memref<1x96xf32, #tpu.memory_space<vmem>>, vector<1x96xf32>
    %16 = vector.broadcast %15 : vector<1x96xf32> to vector<16x96xf32>
    %17 = arith.addf %14, %16 : vector<16x96xf32>
    %18 = vector.extract_strided_slice %12 {offsets = [0, 0], sizes = [16, 32], strides = [1, 1]} : vector<32x224xf32> to vector<16x32xf32>
    %19 = vector.extract_strided_slice %12 {offsets = [0, 32], sizes = [16, 32], strides = [1, 1]} : vector<32x224xf32> to vector<16x32xf32>
    %20 = vector.extract_strided_slice %12 {offsets = [0, 64], sizes = [16, 32], strides = [1, 1]} : vector<32x224xf32> to vector<16x32xf32>
    %21 = vector.extract_strided_slice %12 {offsets = [0, 96], sizes = [16, 128], strides = [1, 1]} : vector<32x224xf32> to vector<16x128xf32>
    %22 = arith.truncf %21 : vector<16x128xf32> to vector<16x128xbf16>
    %cst_26 = arith.constant dense<0.000000e+00> : vector<32x128xf32>
    %23 = tpu.matmul %4, %22, %cst_26 {dimension_numbers = #tpu.dot_dimension_numbers<[1], [0], [0], [1], [0, 0, 1, 1], [], []>} : vector<32x16xbf16>, vector<16x128xbf16>, vector<32x128xf32> -> vector<32x128xf32>
    %24 = vector.extract_strided_slice %23 {offsets = [0, 0], sizes = [16, 128], strides = [1, 1]} : vector<32x128xf32> to vector<16x128xf32>
    %25 = vector.extract_strided_slice %23 {offsets = [16, 0], sizes = [16, 128], strides = [1, 1]} : vector<32x128xf32> to vector<16x128xf32>
    %26 = vector.extract_strided_slice %24 {offsets = [0, 0], sizes = [16, 32], strides = [1, 1]} : vector<16x128xf32> to vector<16x32xf32>
    %27 = vector.extract_strided_slice %25 {offsets = [0, 32], sizes = [16, 32], strides = [1, 1]} : vector<16x128xf32> to vector<16x32xf32>
    %28 = arith.subf %26, %27 : vector<16x32xf32>
    %29 = vector.extract_strided_slice %24 {offsets = [0, 32], sizes = [16, 32], strides = [1, 1]} : vector<16x128xf32> to vector<16x32xf32>
    %30 = vector.extract_strided_slice %25 {offsets = [0, 0], sizes = [16, 32], strides = [1, 1]} : vector<16x128xf32> to vector<16x32xf32>
    %31 = arith.addf %29, %30 : vector<16x32xf32>
    %32 = vector.extract_strided_slice %24 {offsets = [0, 64], sizes = [16, 32], strides = [1, 1]} : vector<16x128xf32> to vector<16x32xf32>
    %33 = vector.extract_strided_slice %25 {offsets = [0, 96], sizes = [16, 32], strides = [1, 1]} : vector<16x128xf32> to vector<16x32xf32>
    %34 = arith.subf %32, %33 : vector<16x32xf32>
    %35 = vector.extract_strided_slice %24 {offsets = [0, 96], sizes = [16, 32], strides = [1, 1]} : vector<16x128xf32> to vector<16x32xf32>
    %36 = vector.extract_strided_slice %25 {offsets = [0, 64], sizes = [16, 32], strides = [1, 1]} : vector<16x128xf32> to vector<16x32xf32>
    %37 = arith.addf %35, %36 : vector<16x32xf32>
    %38 = vector.extract_strided_slice %17 {offsets = [0, 0], sizes = [8, 32], strides = [1, 1]} : vector<16x96xf32> to vector<8x32xf32>
    %cst_27 = arith.constant dense<0.000000e+00> : vector<32xf32>
    %39 = vector.multi_reduction <add>, %38, %cst_27 [0] : vector<8x32xf32> to vector<32xf32>
    %40 = vector.shape_cast %39 : vector<32xf32> to vector<1x32xf32>
    %cst_28 = arith.constant 8.000000e+00 : f32
    %41 = vector.broadcast %cst_28 : f32 to vector<1x32xf32>
    %42 = arith.divf %40, %41 : vector<1x32xf32>
    %43 = vector.extract_strided_slice %42 {offsets = [0, 0], sizes = [1, 16], strides = [1, 1]} : vector<1x32xf32> to vector<1x16xf32>
    %44 = vector.extract_strided_slice %42 {offsets = [0, 16], sizes = [1, 16], strides = [1, 1]} : vector<1x32xf32> to vector<1x16xf32>
    %45 = tpu.concatenate %43, %44 in 0 : vector<1x16xf32>, vector<1x16xf32> -> vector<2x16xf32>
    %46 = arith.truncf %45 : vector<2x16xf32> to vector<2x16xbf16>
    %c0_29 = arith.constant 0 : index
    %c0_30 = arith.constant 0 : index
    %47 = vector.load %arg9[%c0_29, %c0_30] : memref<16x32xbf16, #tpu.memory_space<vmem>>, vector<16x32xbf16>
    %cst_31 = arith.constant dense<0.000000e+00> : vector<2x32xf32>
    %48 = tpu.matmul %46, %47, %cst_31 {dimension_numbers = #tpu.dot_dimension_numbers<[1], [0], [0], [1], [0, 0, 1, 1], [], []>} : vector<2x16xbf16>, vector<16x32xbf16>, vector<2x32xf32> -> vector<2x32xf32>
    %c0_32 = arith.constant 0 : index
    %c0_33 = arith.constant 0 : index
    %49 = vector.load %arg10[%c0_32, %c0_33] : memref<1x32xf32, #tpu.memory_space<vmem>>, vector<1x32xf32>
    %50 = vector.broadcast %49 : vector<1x32xf32> to vector<2x32xf32>
    %51 = arith.addf %48, %50 : vector<2x32xf32>
    %52 = arith.negf %51 : vector<2x32xf32>
    %53 = math.exp %52 : vector<2x32xf32>
    %cst_34 = arith.constant 1.000000e+00 : f32
    %54 = vector.broadcast %cst_34 : f32 to vector<2x32xf32>
    %55 = arith.addf %54, %53 : vector<2x32xf32>
    %56 = arith.divf %54, %55 : vector<2x32xf32>
    %57 = vector.extract_strided_slice %28 {offsets = [0, 0], sizes = [16, 16], strides = [1, 1]} : vector<16x32xf32> to vector<16x16xf32>
    %58 = arith.truncf %57 : vector<16x16xf32> to vector<16x16xbf16>
    %59 = vector.extract_strided_slice %31 {offsets = [0, 0], sizes = [16, 16], strides = [1, 1]} : vector<16x32xf32> to vector<16x16xf32>
    %60 = arith.truncf %59 : vector<16x16xf32> to vector<16x16xbf16>
    %61 = vector.extract_strided_slice %34 {offsets = [0, 0], sizes = [16, 16], strides = [1, 1]} : vector<16x32xf32> to vector<16x16xf32>
    %62 = arith.truncf %61 : vector<16x16xf32> to vector<16x16xbf16>
    %63 = vector.extract_strided_slice %37 {offsets = [0, 0], sizes = [16, 16], strides = [1, 1]} : vector<16x32xf32> to vector<16x16xf32>
    %64 = arith.truncf %63 : vector<16x16xf32> to vector<16x16xbf16>
    %cst_35 = arith.constant dense<0.000000e+00> : vector<16x16xf32>
    %65 = tpu.matmul %58, %62, %cst_35 {dimension_numbers = #tpu.dot_dimension_numbers<[1], [1], [0], [0], [0, 0, 1, 0], [], []>} : vector<16x16xbf16>, vector<16x16xbf16>, vector<16x16xf32> -> vector<16x16xf32>
    %cst_36 = arith.constant dense<0.000000e+00> : vector<16x16xf32>
    %66 = tpu.matmul %60, %64, %cst_36 {dimension_numbers = #tpu.dot_dimension_numbers<[1], [1], [0], [0], [0, 0, 1, 0], [], []>} : vector<16x16xbf16>, vector<16x16xbf16>, vector<16x16xf32> -> vector<16x16xf32>
    %67 = arith.subf %65, %66 : vector<16x16xf32>
    %cst_37 = arith.constant dense<0.000000e+00> : vector<16x16xf32>
    %68 = tpu.matmul %58, %64, %cst_37 {dimension_numbers = #tpu.dot_dimension_numbers<[1], [1], [0], [0], [0, 0, 1, 0], [], []>} : vector<16x16xbf16>, vector<16x16xbf16>, vector<16x16xf32> -> vector<16x16xf32>
    %cst_38 = arith.constant dense<0.000000e+00> : vector<16x16xf32>
    %69 = tpu.matmul %60, %62, %cst_38 {dimension_numbers = #tpu.dot_dimension_numbers<[1], [1], [0], [0], [0, 0, 1, 0], [], []>} : vector<16x16xbf16>, vector<16x16xbf16>, vector<16x16xf32> -> vector<16x16xf32>
    %70 = arith.addf %68, %69 : vector<16x16xf32>
    %71 = vector.extract_strided_slice %56 {offsets = [0, 16], sizes = [1, 16], strides = [1, 1]} : vector<2x32xf32> to vector<1x16xf32>
    %72 = vector.broadcast %71 : vector<1x16xf32> to vector<16x16xf32>
    %73 = arith.mulf %67, %72 : vector<16x16xf32>
    %74 = arith.truncf %73 : vector<16x16xf32> to vector<16x16xbf16>
    %75 = vector.broadcast %71 : vector<1x16xf32> to vector<16x16xf32>
    %76 = arith.mulf %70, %75 : vector<16x16xf32>
    %77 = arith.truncf %76 : vector<16x16xf32> to vector<16x16xbf16>
    %c0_39 = arith.constant 0 : index
    %c0_40 = arith.constant 0 : index
    %78 = vector.load %arg27[%c0_39, %c0_40] : memref<32x32xbf16, #tpu.memory_space<vmem>>, vector<16x16xbf16>
    tpu.vector_store %arg27[%c0_39, %c0_40], %74 {strides = array<i32>} : memref<32x32xbf16, #tpu.memory_space<vmem>>, vector<16x16xbf16>,
    %c0_41 = arith.constant 0 : index
    %c16 = arith.constant 16 : index
    %79 = vector.load %arg27[%c0_41, %c16] : memref<32x32xbf16, #tpu.memory_space<vmem>>, vector<16x16xbf16>
    tpu.vector_store %arg27[%c0_41, %c16], %77 {strides = array<i32>} : memref<32x32xbf16, #tpu.memory_space<vmem>>, vector<16x16xbf16>,
    %c0_42 = arith.constant 0 : index
    %c0_43 = arith.constant 0 : index
    %80 = vector.load %arg28[%c0_42, %c0_43] : memref<32x32xbf16, #tpu.memory_space<vmem>>, vector<16x16xbf16>
    tpu.vector_store %arg28[%c0_42, %c0_43], %77 {strides = array<i32>} : memref<32x32xbf16, #tpu.memory_space<vmem>>, vector<16x16xbf16>,
    %cst_44 = arith.constant 0.000000e+00 : bf16
    %81 = vector.broadcast %cst_44 : bf16 to vector<16x16xbf16>
    %82 = arith.subf %81, %74 : vector<16x16xbf16>
    %c0_45 = arith.constant 0 : index
    %c16_46 = arith.constant 16 : index
    %83 = vector.load %arg28[%c0_45, %c16_46] : memref<32x32xbf16, #tpu.memory_space<vmem>>, vector<16x16xbf16>
    tpu.vector_store %arg28[%c0_45, %c16_46], %82 {strides = array<i32>} : memref<32x32xbf16, #tpu.memory_space<vmem>>, vector<16x16xbf16>,
    %84 = vector.extract_strided_slice %28 {offsets = [0, 16], sizes = [16, 16], strides = [1, 1]} : vector<16x32xf32> to vector<16x16xf32>
    %85 = arith.truncf %84 : vector<16x16xf32> to vector<16x16xbf16>
    %86 = vector.extract_strided_slice %31 {offsets = [0, 16], sizes = [16, 16], strides = [1, 1]} : vector<16x32xf32> to vector<16x16xf32>
    %87 = arith.truncf %86 : vector<16x16xf32> to vector<16x16xbf16>
    %88 = vector.extract_strided_slice %34 {offsets = [0, 16], sizes = [16, 16], strides = [1, 1]} : vector<16x32xf32> to vector<16x16xf32>
    %89 = arith.truncf %88 : vector<16x16xf32> to vector<16x16xbf16>
    %90 = vector.extract_strided_slice %37 {offsets = [0, 16], sizes = [16, 16], strides = [1, 1]} : vector<16x32xf32> to vector<16x16xf32>
    %91 = arith.truncf %90 : vector<16x16xf32> to vector<16x16xbf16>
    %cst_47 = arith.constant dense<0.000000e+00> : vector<16x16xf32>
    %92 = tpu.matmul %85, %89, %cst_47 {dimension_numbers = #tpu.dot_dimension_numbers<[1], [1], [0], [0], [0, 0, 1, 0], [], []>} : vector<16x16xbf16>, vector<16x16xbf16>, vector<16x16xf32> -> vector<16x16xf32>
    %cst_48 = arith.constant dense<0.000000e+00> : vector<16x16xf32>
    %93 = tpu.matmul %87, %91, %cst_48 {dimension_numbers = #tpu.dot_dimension_numbers<[1], [1], [0], [0], [0, 0, 1, 0], [], []>} : vector<16x16xbf16>, vector<16x16xbf16>, vector<16x16xf32> -> vector<16x16xf32>
    %94 = arith.subf %92, %93 : vector<16x16xf32>
    %cst_49 = arith.constant dense<0.000000e+00> : vector<16x16xf32>
    %95 = tpu.matmul %85, %91, %cst_49 {dimension_numbers = #tpu.dot_dimension_numbers<[1], [1], [0], [0], [0, 0, 1, 0], [], []>} : vector<16x16xbf16>, vector<16x16xbf16>, vector<16x16xf32> -> vector<16x16xf32>
    %cst_50 = arith.constant dense<0.000000e+00> : vector<16x16xf32>
    %96 = tpu.matmul %87, %89, %cst_50 {dimension_numbers = #tpu.dot_dimension_numbers<[1], [1], [0], [0], [0, 0, 1, 0], [], []>} : vector<16x16xbf16>, vector<16x16xbf16>, vector<16x16xf32> -> vector<16x16xf32>
    %97 = arith.addf %95, %96 : vector<16x16xf32>
    %98 = vector.extract_strided_slice %56 {offsets = [1, 16], sizes = [1, 16], strides = [1, 1]} : vector<2x32xf32> to vector<1x16xf32>
    %99 = vector.broadcast %98 : vector<1x16xf32> to vector<16x16xf32>
    %100 = arith.mulf %94, %99 : vector<16x16xf32>
    %101 = arith.truncf %100 : vector<16x16xf32> to vector<16x16xbf16>
    %102 = vector.broadcast %98 : vector<1x16xf32> to vector<16x16xf32>
    %103 = arith.mulf %97, %102 : vector<16x16xf32>
    %104 = arith.truncf %103 : vector<16x16xf32> to vector<16x16xbf16>
    %c16_51 = arith.constant 16 : index
    %c0_52 = arith.constant 0 : index
    %105 = vector.load %arg27[%c16_51, %c0_52] : memref<32x32xbf16, #tpu.memory_space<vmem>>, vector<16x16xbf16>
    tpu.vector_store %arg27[%c16_51, %c0_52], %101 {strides = array<i32>} : memref<32x32xbf16, #tpu.memory_space<vmem>>, vector<16x16xbf16>,
    %c16_53 = arith.constant 16 : index
    %c16_54 = arith.constant 16 : index
    %106 = vector.load %arg27[%c16_53, %c16_54] : memref<32x32xbf16, #tpu.memory_space<vmem>>, vector<16x16xbf16>
    tpu.vector_store %arg27[%c16_53, %c16_54], %104 {strides = array<i32>} : memref<32x32xbf16, #tpu.memory_space<vmem>>, vector<16x16xbf16>,
    %c16_55 = arith.constant 16 : index
    %c0_56 = arith.constant 0 : index
    %107 = vector.load %arg28[%c16_55, %c0_56] : memref<32x32xbf16, #tpu.memory_space<vmem>>, vector<16x16xbf16>
    tpu.vector_store %arg28[%c16_55, %c0_56], %104 {strides = array<i32>} : memref<32x32xbf16, #tpu.memory_space<vmem>>, vector<16x16xbf16>,
    %cst_57 = arith.constant 0.000000e+00 : bf16
    %108 = vector.broadcast %cst_57 : bf16 to vector<16x16xbf16>
    %109 = arith.subf %108, %101 : vector<16x16xbf16>
    %c16_58 = arith.constant 16 : index
    %c16_59 = arith.constant 16 : index
    %110 = vector.load %arg28[%c16_58, %c16_59] : memref<32x32xbf16, #tpu.memory_space<vmem>>, vector<16x16xbf16>
    tpu.vector_store %arg28[%c16_58, %c16_59], %109 {strides = array<i32>} : memref<32x32xbf16, #tpu.memory_space<vmem>>, vector<16x16xbf16>,
    %c0_60 = arith.constant 0 : index
    %c0_61 = arith.constant 0 : index
    %111 = vector.load %arg27[%c0_60, %c0_61] : memref<32x32xbf16, #tpu.memory_space<vmem>>, vector<32x32xbf16>
    %cst_62 = arith.constant dense<0.000000e+00> : vector<32x16xf32>
    %112 = tpu.matmul %111, %4, %cst_62 {dimension_numbers = #tpu.dot_dimension_numbers<[1], [0], [0], [1], [0, 0, 1, 1], [], []>} : vector<32x32xbf16>, vector<32x16xbf16>, vector<32x16xf32> -> vector<32x16xf32>
    %c0_63 = arith.constant 0 : index
    %c0_64 = arith.constant 0 : index
    %113 = vector.load %arg28[%c0_63, %c0_64] : memref<32x32xbf16, #tpu.memory_space<vmem>>, vector<32x32xbf16>
    %cst_65 = arith.constant dense<0.000000e+00> : vector<32x16xf32>
    %114 = tpu.matmul %113, %4, %cst_65 {dimension_numbers = #tpu.dot_dimension_numbers<[1], [0], [0], [1], [0, 0, 1, 1], [], []>} : vector<32x32xbf16>, vector<32x16xbf16>, vector<32x16xf32> -> vector<32x16xf32>
    %115 = vector.extract_strided_slice %112 {offsets = [0, 0], sizes = [16, 16], strides = [1, 1]} : vector<32x16xf32> to vector<16x16xf32>
    %116 = vector.extract_strided_slice %114 {offsets = [0, 0], sizes = [16, 16], strides = [1, 1]} : vector<32x16xf32> to vector<16x16xf32>
    %117 = tpu.concatenate %115, %116 in 0 : vector<16x16xf32>, vector<16x16xf32> -> vector<32x16xf32>
    %118 = arith.truncf %117 : vector<32x16xf32> to vector<32x16xbf16>
    %cst_66 = arith.constant dense<0.000000e+00> : vector<16x16xf32>
    %119 = tpu.matmul %5, %118, %cst_66 {dimension_numbers = #tpu.dot_dimension_numbers<[1], [0], [0], [1], [0, 0, 1, 1], [], []>} : vector<16x32xbf16>, vector<32x16xbf16>, vector<16x16xf32> -> vector<16x16xf32>
    %120 = vector.extract_strided_slice %18 {offsets = [0, 0], sizes = [16, 16], strides = [1, 1]} : vector<16x32xf32> to vector<16x16xf32>
    %121 = arith.truncf %120 : vector<16x16xf32> to vector<16x16xbf16>
    %122 = vector.extract_strided_slice %19 {offsets = [0, 0], sizes = [16, 16], strides = [1, 1]} : vector<16x32xf32> to vector<16x16xf32>
    %123 = arith.truncf %122 : vector<16x16xf32> to vector<16x16xbf16>
    %cst_67 = arith.constant dense<0.000000e+00> : vector<16x16xf32>
    %124 = tpu.matmul %121, %123, %cst_67 {dimension_numbers = #tpu.dot_dimension_numbers<[1], [1], [0], [0], [0, 0, 1, 0], [], []>} : vector<16x16xbf16>, vector<16x16xbf16>, vector<16x16xf32> -> vector<16x16xf32>
    %125 = vector.extract_strided_slice %56 {offsets = [0, 0], sizes = [1, 16], strides = [1, 1]} : vector<2x32xf32> to vector<1x16xf32>
    %126 = vector.broadcast %125 : vector<1x16xf32> to vector<16x16xf32>
    %127 = arith.mulf %124, %126 : vector<16x16xf32>
    %128 = arith.addf %119, %127 : vector<16x16xf32>
    %129 = vector.extract_strided_slice %2 {offsets = [0, 0, 0], sizes = [1, 1, 16], strides = [1, 1, 1]} : vector<2x1x16xf32> to vector<1x1x16xf32>
    %130 = vector.shape_cast %129 : vector<1x1x16xf32> to vector<1x16xf32>
    %131 = vector.broadcast %130 : vector<1x16xf32> to vector<16x16xf32>
    %132 = arith.addf %128, %131 : vector<16x16xf32>
    %cst_68 = arith.constant dense<0xFF800000> : vector<16xf32>
    %133 = vector.multi_reduction <maximumf>, %132, %cst_68 [1] : vector<16x16xf32> to vector<16xf32>
    %134 = vector.shape_cast %133 : vector<16xf32> to vector<16x1xf32>
    %135 = vector.broadcast %134 : vector<16x1xf32> to vector<16x16xf32>
    %136 = arith.subf %132, %135 : vector<16x16xf32>
    %137 = math.exp %136 : vector<16x16xf32>
    %cst_69 = arith.constant dense<0.000000e+00> : vector<16xf32>
    %138 = vector.multi_reduction <add>, %137, %cst_69 [1] : vector<16x16xf32> to vector<16xf32>
    %139 = vector.shape_cast %138 : vector<16xf32> to vector<16x1xf32>
    %140 = tpu.reciprocal %139 {approx = true} : vector<16x1xf32> -> vector<16x1xf32>
    %141 = vector.broadcast %140 : vector<16x1xf32> to vector<16x16xf32>
    %142 = arith.mulf %137, %141 : vector<16x16xf32>
    %143 = arith.truncf %142 : vector<16x16xf32> to vector<16x16xbf16>
    %144 = vector.extract_strided_slice %20 {offsets = [0, 0], sizes = [16, 16], strides = [1, 1]} : vector<16x32xf32> to vector<16x16xf32>
    %145 = arith.truncf %144 : vector<16x16xf32> to vector<16x16xbf16>
    %cst_70 = arith.constant dense<0.000000e+00> : vector<16x16xf32>
    %146 = tpu.matmul %143, %145, %cst_70 {dimension_numbers = #tpu.dot_dimension_numbers<[1], [0], [0], [1], [0, 0, 1, 1], [], []>} : vector<16x16xbf16>, vector<16x16xbf16>, vector<16x16xf32> -> vector<16x16xf32>
    %147 = arith.truncf %146 : vector<16x16xf32> to vector<16x16xbf16>
    %c0_71 = arith.constant 0 : index
    %c0_72 = arith.constant 0 : index
    %148 = vector.load %arg26[%c0_71, %c0_72] : memref<32x32xbf16, #tpu.memory_space<vmem>>, vector<16x16xbf16>
    tpu.vector_store %arg26[%c0_71, %c0_72], %147 {strides = array<i32>} : memref<32x32xbf16, #tpu.memory_space<vmem>>, vector<16x16xbf16>,
    %149 = vector.extract_strided_slice %112 {offsets = [16, 0], sizes = [16, 16], strides = [1, 1]} : vector<32x16xf32> to vector<16x16xf32>
    %150 = vector.extract_strided_slice %114 {offsets = [16, 0], sizes = [16, 16], strides = [1, 1]} : vector<32x16xf32> to vector<16x16xf32>
    %151 = tpu.concatenate %149, %150 in 0 : vector<16x16xf32>, vector<16x16xf32> -> vector<32x16xf32>
    %152 = arith.truncf %151 : vector<32x16xf32> to vector<32x16xbf16>
    %cst_73 = arith.constant dense<0.000000e+00> : vector<16x16xf32>
    %153 = tpu.matmul %5, %152, %cst_73 {dimension_numbers = #tpu.dot_dimension_numbers<[1], [0], [0], [1], [0, 0, 1, 1], [], []>} : vector<16x32xbf16>, vector<32x16xbf16>, vector<16x16xf32> -> vector<16x16xf32>
    %154 = vector.extract_strided_slice %18 {offsets = [0, 16], sizes = [16, 16], strides = [1, 1]} : vector<16x32xf32> to vector<16x16xf32>
    %155 = arith.truncf %154 : vector<16x16xf32> to vector<16x16xbf16>
    %156 = vector.extract_strided_slice %19 {offsets = [0, 16], sizes = [16, 16], strides = [1, 1]} : vector<16x32xf32> to vector<16x16xf32>
    %157 = arith.truncf %156 : vector<16x16xf32> to vector<16x16xbf16>
    %cst_74 = arith.constant dense<0.000000e+00> : vector<16x16xf32>
    %158 = tpu.matmul %155, %157, %cst_74 {dimension_numbers = #tpu.dot_dimension_numbers<[1], [1], [0], [0], [0, 0, 1, 0], [], []>} : vector<16x16xbf16>, vector<16x16xbf16>, vector<16x16xf32> -> vector<16x16xf32>
    %159 = vector.extract_strided_slice %56 {offsets = [1, 0], sizes = [1, 16], strides = [1, 1]} : vector<2x32xf32> to vector<1x16xf32>
    %160 = vector.broadcast %159 : vector<1x16xf32> to vector<16x16xf32>
    %161 = arith.mulf %158, %160 : vector<16x16xf32>
    %162 = arith.addf %153, %161 : vector<16x16xf32>
    %163 = vector.extract_strided_slice %2 {offsets = [0, 0, 0], sizes = [1, 1, 16], strides = [1, 1, 1]} : vector<2x1x16xf32> to vector<1x1x16xf32>
    %164 = vector.shape_cast %163 : vector<1x1x16xf32> to vector<1x16xf32>
    %165 = vector.broadcast %164 : vector<1x16xf32> to vector<16x16xf32>
    %166 = arith.addf %162, %165 : vector<16x16xf32>
    %cst_75 = arith.constant dense<0xFF800000> : vector<16xf32>
    %167 = vector.multi_reduction <maximumf>, %166, %cst_75 [1] : vector<16x16xf32> to vector<16xf32>
    %168 = vector.shape_cast %167 : vector<16xf32> to vector<16x1xf32>
    %169 = vector.broadcast %168 : vector<16x1xf32> to vector<16x16xf32>
    %170 = arith.subf %166, %169 : vector<16x16xf32>
    %171 = math.exp %170 : vector<16x16xf32>
    %cst_76 = arith.constant dense<0.000000e+00> : vector<16xf32>
    %172 = vector.multi_reduction <add>, %171, %cst_76 [1] : vector<16x16xf32> to vector<16xf32>
    %173 = vector.shape_cast %172 : vector<16xf32> to vector<16x1xf32>
    %174 = tpu.reciprocal %173 {approx = true} : vector<16x1xf32> -> vector<16x1xf32>
    %175 = vector.broadcast %174 : vector<16x1xf32> to vector<16x16xf32>
    %176 = arith.mulf %171, %175 : vector<16x16xf32>
    %177 = arith.truncf %176 : vector<16x16xf32> to vector<16x16xbf16>
    %178 = vector.extract_strided_slice %20 {offsets = [0, 16], sizes = [16, 16], strides = [1, 1]} : vector<16x32xf32> to vector<16x16xf32>
    %179 = arith.truncf %178 : vector<16x16xf32> to vector<16x16xbf16>
    %cst_77 = arith.constant dense<0.000000e+00> : vector<16x16xf32>
    %180 = tpu.matmul %177, %179, %cst_77 {dimension_numbers = #tpu.dot_dimension_numbers<[1], [0], [0], [1], [0, 0, 1, 1], [], []>} : vector<16x16xbf16>, vector<16x16xbf16>, vector<16x16xf32> -> vector<16x16xf32>
    %181 = arith.truncf %180 : vector<16x16xf32> to vector<16x16xbf16>
    %c0_78 = arith.constant 0 : index
    %c16_79 = arith.constant 16 : index
    %182 = vector.load %arg26[%c0_78, %c16_79] : memref<32x32xbf16, #tpu.memory_space<vmem>>, vector<16x16xbf16>
    tpu.vector_store %arg26[%c0_78, %c16_79], %181 {strides = array<i32>} : memref<32x32xbf16, #tpu.memory_space<vmem>>, vector<16x16xbf16>,
    %183 = vector.extract_strided_slice %12 {offsets = [16, 0], sizes = [16, 32], strides = [1, 1]} : vector<32x224xf32> to vector<16x32xf32>
    %184 = vector.extract_strided_slice %12 {offsets = [16, 32], sizes = [16, 32], strides = [1, 1]} : vector<32x224xf32> to vector<16x32xf32>
    %185 = vector.extract_strided_slice %12 {offsets = [16, 64], sizes = [16, 32], strides = [1, 1]} : vector<32x224xf32> to vector<16x32xf32>
    %186 = vector.extract_strided_slice %12 {offsets = [16, 96], sizes = [16, 128], strides = [1, 1]} : vector<32x224xf32> to vector<16x128xf32>
    %187 = arith.truncf %186 : vector<16x128xf32> to vector<16x128xbf16>
    %cst_80 = arith.constant dense<0.000000e+00> : vector<32x128xf32>
    %188 = tpu.matmul %4, %187, %cst_80 {dimension_numbers = #tpu.dot_dimension_numbers<[1], [0], [0], [1], [0, 0, 1, 1], [], []>} : vector<32x16xbf16>, vector<16x128xbf16>, vector<32x128xf32> -> vector<32x128xf32>
    %189 = vector.extract_strided_slice %188 {offsets = [0, 0], sizes = [16, 128], strides = [1, 1]} : vector<32x128xf32> to vector<16x128xf32>
    %190 = vector.extract_strided_slice %188 {offsets = [16, 0], sizes = [16, 128], strides = [1, 1]} : vector<32x128xf32> to vector<16x128xf32>
    %191 = vector.extract_strided_slice %189 {offsets = [0, 0], sizes = [16, 32], strides = [1, 1]} : vector<16x128xf32> to vector<16x32xf32>
    %192 = vector.extract_strided_slice %190 {offsets = [0, 32], sizes = [16, 32], strides = [1, 1]} : vector<16x128xf32> to vector<16x32xf32>
    %193 = arith.subf %191, %192 : vector<16x32xf32>
    %194 = vector.extract_strided_slice %189 {offsets = [0, 32], sizes = [16, 32], strides = [1, 1]} : vector<16x128xf32> to vector<16x32xf32>
    %195 = vector.extract_strided_slice %190 {offsets = [0, 0], sizes = [16, 32], strides = [1, 1]} : vector<16x128xf32> to vector<16x32xf32>
    %196 = arith.addf %194, %195 : vector<16x32xf32>
    %197 = vector.extract_strided_slice %189 {offsets = [0, 64], sizes = [16, 32], strides = [1, 1]} : vector<16x128xf32> to vector<16x32xf32>
    %198 = vector.extract_strided_slice %190 {offsets = [0, 96], sizes = [16, 32], strides = [1, 1]} : vector<16x128xf32> to vector<16x32xf32>
    %199 = arith.subf %197, %198 : vector<16x32xf32>
    %200 = vector.extract_strided_slice %189 {offsets = [0, 96], sizes = [16, 32], strides = [1, 1]} : vector<16x128xf32> to vector<16x32xf32>
    %201 = vector.extract_strided_slice %190 {offsets = [0, 64], sizes = [16, 32], strides = [1, 1]} : vector<16x128xf32> to vector<16x32xf32>
    %202 = arith.addf %200, %201 : vector<16x32xf32>
    %203 = vector.extract_strided_slice %17 {offsets = [8, 0], sizes = [8, 32], strides = [1, 1]} : vector<16x96xf32> to vector<8x32xf32>
    %cst_81 = arith.constant dense<0.000000e+00> : vector<32xf32>
    %204 = vector.multi_reduction <add>, %203, %cst_81 [0] : vector<8x32xf32> to vector<32xf32>
    %205 = vector.shape_cast %204 : vector<32xf32> to vector<1x32xf32>
    %cst_82 = arith.constant 8.000000e+00 : f32
    %206 = vector.broadcast %cst_82 : f32 to vector<1x32xf32>
    %207 = arith.divf %205, %206 : vector<1x32xf32>
    %208 = vector.extract_strided_slice %207 {offsets = [0, 0], sizes = [1, 16], strides = [1, 1]} : vector<1x32xf32> to vector<1x16xf32>
    %209 = vector.extract_strided_slice %207 {offsets = [0, 16], sizes = [1, 16], strides = [1, 1]} : vector<1x32xf32> to vector<1x16xf32>
    %210 = tpu.concatenate %208, %209 in 0 : vector<1x16xf32>, vector<1x16xf32> -> vector<2x16xf32>
    %211 = arith.truncf %210 : vector<2x16xf32> to vector<2x16xbf16>
    %c0_83 = arith.constant 0 : index
    %c0_84 = arith.constant 0 : index
    %212 = vector.load %arg9[%c0_83, %c0_84] : memref<16x32xbf16, #tpu.memory_space<vmem>>, vector<16x32xbf16>
    %cst_85 = arith.constant dense<0.000000e+00> : vector<2x32xf32>
    %213 = tpu.matmul %211, %212, %cst_85 {dimension_numbers = #tpu.dot_dimension_numbers<[1], [0], [0], [1], [0, 0, 1, 1], [], []>} : vector<2x16xbf16>, vector<16x32xbf16>, vector<2x32xf32> -> vector<2x32xf32>
    %c0_86 = arith.constant 0 : index
    %c0_87 = arith.constant 0 : index
    %214 = vector.load %arg10[%c0_86, %c0_87] : memref<1x32xf32, #tpu.memory_space<vmem>>, vector<1x32xf32>
    %215 = vector.broadcast %214 : vector<1x32xf32> to vector<2x32xf32>
    %216 = arith.addf %213, %215 : vector<2x32xf32>
    %217 = arith.negf %216 : vector<2x32xf32>
    %218 = math.exp %217 : vector<2x32xf32>
    %cst_88 = arith.constant 1.000000e+00 : f32
    %219 = vector.broadcast %cst_88 : f32 to vector<2x32xf32>
    %220 = arith.addf %219, %218 : vector<2x32xf32>
    %221 = arith.divf %219, %220 : vector<2x32xf32>
    %222 = vector.extract_strided_slice %193 {offsets = [0, 0], sizes = [16, 16], strides = [1, 1]} : vector<16x32xf32> to vector<16x16xf32>
    %223 = arith.truncf %222 : vector<16x16xf32> to vector<16x16xbf16>
    %224 = vector.extract_strided_slice %196 {offsets = [0, 0], sizes = [16, 16], strides = [1, 1]} : vector<16x32xf32> to vector<16x16xf32>
    %225 = arith.truncf %224 : vector<16x16xf32> to vector<16x16xbf16>
    %226 = vector.extract_strided_slice %199 {offsets = [0, 0], sizes = [16, 16], strides = [1, 1]} : vector<16x32xf32> to vector<16x16xf32>
    %227 = arith.truncf %226 : vector<16x16xf32> to vector<16x16xbf16>
    %228 = vector.extract_strided_slice %202 {offsets = [0, 0], sizes = [16, 16], strides = [1, 1]} : vector<16x32xf32> to vector<16x16xf32>
    %229 = arith.truncf %228 : vector<16x16xf32> to vector<16x16xbf16>
    %cst_89 = arith.constant dense<0.000000e+00> : vector<16x16xf32>
    %230 = tpu.matmul %223, %227, %cst_89 {dimension_numbers = #tpu.dot_dimension_numbers<[1], [1], [0], [0], [0, 0, 1, 0], [], []>} : vector<16x16xbf16>, vector<16x16xbf16>, vector<16x16xf32> -> vector<16x16xf32>
    %cst_90 = arith.constant dense<0.000000e+00> : vector<16x16xf32>
    %231 = tpu.matmul %225, %229, %cst_90 {dimension_numbers = #tpu.dot_dimension_numbers<[1], [1], [0], [0], [0, 0, 1, 0], [], []>} : vector<16x16xbf16>, vector<16x16xbf16>, vector<16x16xf32> -> vector<16x16xf32>
    %232 = arith.subf %230, %231 : vector<16x16xf32>
    %cst_91 = arith.constant dense<0.000000e+00> : vector<16x16xf32>
    %233 = tpu.matmul %223, %229, %cst_91 {dimension_numbers = #tpu.dot_dimension_numbers<[1], [1], [0], [0], [0, 0, 1, 0], [], []>} : vector<16x16xbf16>, vector<16x16xbf16>, vector<16x16xf32> -> vector<16x16xf32>
    %cst_92 = arith.constant dense<0.000000e+00> : vector<16x16xf32>
    %234 = tpu.matmul %225, %227, %cst_92 {dimension_numbers = #tpu.dot_dimension_numbers<[1], [1], [0], [0], [0, 0, 1, 0], [], []>} : vector<16x16xbf16>, vector<16x16xbf16>, vector<16x16xf32> -> vector<16x16xf32>
    %235 = arith.addf %233, %234 : vector<16x16xf32>
    %236 = vector.extract_strided_slice %221 {offsets = [0, 16], sizes = [1, 16], strides = [1, 1]} : vector<2x32xf32> to vector<1x16xf32>
    %237 = vector.broadcast %236 : vector<1x16xf32> to vector<16x16xf32>
    %238 = arith.mulf %232, %237 : vector<16x16xf32>
    %239 = arith.truncf %238 : vector<16x16xf32> to vector<16x16xbf16>
    %240 = vector.broadcast %236 : vector<1x16xf32> to vector<16x16xf32>
    %241 = arith.mulf %235, %240 : vector<16x16xf32>
    %242 = arith.truncf %241 : vector<16x16xf32> to vector<16x16xbf16>
    %c0_93 = arith.constant 0 : index
    %c0_94 = arith.constant 0 : index
    %243 = vector.load %arg27[%c0_93, %c0_94] : memref<32x32xbf16, #tpu.memory_space<vmem>>, vector<16x16xbf16>
    tpu.vector_store %arg27[%c0_93, %c0_94], %239 {strides = array<i32>} : memref<32x32xbf16, #tpu.memory_space<vmem>>, vector<16x16xbf16>,
    %c0_95 = arith.constant 0 : index
    %c16_96 = arith.constant 16 : index
    %244 = vector.load %arg27[%c0_95, %c16_96] : memref<32x32xbf16, #tpu.memory_space<vmem>>, vector<16x16xbf16>
    tpu.vector_store %arg27[%c0_95, %c16_96], %242 {strides = array<i32>} : memref<32x32xbf16, #tpu.memory_space<vmem>>, vector<16x16xbf16>,
    %c0_97 = arith.constant 0 : index
    %c0_98 = arith.constant 0 : index
    %245 = vector.load %arg28[%c0_97, %c0_98] : memref<32x32xbf16, #tpu.memory_space<vmem>>, vector<16x16xbf16>
    tpu.vector_store %arg28[%c0_97, %c0_98], %242 {strides = array<i32>} : memref<32x32xbf16, #tpu.memory_space<vmem>>, vector<16x16xbf16>,
    %cst_99 = arith.constant 0.000000e+00 : bf16
    %246 = vector.broadcast %cst_99 : bf16 to vector<16x16xbf16>
    %247 = arith.subf %246, %239 : vector<16x16xbf16>
    %c0_100 = arith.constant 0 : index
    %c16_101 = arith.constant 16 : index
    %248 = vector.load %arg28[%c0_100, %c16_101] : memref<32x32xbf16, #tpu.memory_space<vmem>>, vector<16x16xbf16>
    tpu.vector_store %arg28[%c0_100, %c16_101], %247 {strides = array<i32>} : memref<32x32xbf16, #tpu.memory_space<vmem>>, vector<16x16xbf16>,
    %249 = vector.extract_strided_slice %193 {offsets = [0, 16], sizes = [16, 16], strides = [1, 1]} : vector<16x32xf32> to vector<16x16xf32>
    %250 = arith.truncf %249 : vector<16x16xf32> to vector<16x16xbf16>
    %251 = vector.extract_strided_slice %196 {offsets = [0, 16], sizes = [16, 16], strides = [1, 1]} : vector<16x32xf32> to vector<16x16xf32>
    %252 = arith.truncf %251 : vector<16x16xf32> to vector<16x16xbf16>
    %253 = vector.extract_strided_slice %199 {offsets = [0, 16], sizes = [16, 16], strides = [1, 1]} : vector<16x32xf32> to vector<16x16xf32>
    %254 = arith.truncf %253 : vector<16x16xf32> to vector<16x16xbf16>
    %255 = vector.extract_strided_slice %202 {offsets = [0, 16], sizes = [16, 16], strides = [1, 1]} : vector<16x32xf32> to vector<16x16xf32>
    %256 = arith.truncf %255 : vector<16x16xf32> to vector<16x16xbf16>
    %cst_102 = arith.constant dense<0.000000e+00> : vector<16x16xf32>
    %257 = tpu.matmul %250, %254, %cst_102 {dimension_numbers = #tpu.dot_dimension_numbers<[1], [1], [0], [0], [0, 0, 1, 0], [], []>} : vector<16x16xbf16>, vector<16x16xbf16>, vector<16x16xf32> -> vector<16x16xf32>
    %cst_103 = arith.constant dense<0.000000e+00> : vector<16x16xf32>
    %258 = tpu.matmul %252, %256, %cst_103 {dimension_numbers = #tpu.dot_dimension_numbers<[1], [1], [0], [0], [0, 0, 1, 0], [], []>} : vector<16x16xbf16>, vector<16x16xbf16>, vector<16x16xf32> -> vector<16x16xf32>
    %259 = arith.subf %257, %258 : vector<16x16xf32>
    %cst_104 = arith.constant dense<0.000000e+00> : vector<16x16xf32>
    %260 = tpu.matmul %250, %256, %cst_104 {dimension_numbers = #tpu.dot_dimension_numbers<[1], [1], [0], [0], [0, 0, 1, 0], [], []>} : vector<16x16xbf16>, vector<16x16xbf16>, vector<16x16xf32> -> vector<16x16xf32>
    %cst_105 = arith.constant dense<0.000000e+00> : vector<16x16xf32>
    %261 = tpu.matmul %252, %254, %cst_105 {dimension_numbers = #tpu.dot_dimension_numbers<[1], [1], [0], [0], [0, 0, 1, 0], [], []>} : vector<16x16xbf16>, vector<16x16xbf16>, vector<16x16xf32> -> vector<16x16xf32>
    %262 = arith.addf %260, %261 : vector<16x16xf32>
    %263 = vector.extract_strided_slice %221 {offsets = [1, 16], sizes = [1, 16], strides = [1, 1]} : vector<2x32xf32> to vector<1x16xf32>
    %264 = vector.broadcast %263 : vector<1x16xf32> to vector<16x16xf32>
    %265 = arith.mulf %259, %264 : vector<16x16xf32>
    %266 = arith.truncf %265 : vector<16x16xf32> to vector<16x16xbf16>
    %267 = vector.broadcast %263 : vector<1x16xf32> to vector<16x16xf32>
    %268 = arith.mulf %262, %267 : vector<16x16xf32>
    %269 = arith.truncf %268 : vector<16x16xf32> to vector<16x16xbf16>
    %c16_106 = arith.constant 16 : index
    %c0_107 = arith.constant 0 : index
    %270 = vector.load %arg27[%c16_106, %c0_107] : memref<32x32xbf16, #tpu.memory_space<vmem>>, vector<16x16xbf16>
    tpu.vector_store %arg27[%c16_106, %c0_107], %266 {strides = array<i32>} : memref<32x32xbf16, #tpu.memory_space<vmem>>, vector<16x16xbf16>,
    %c16_108 = arith.constant 16 : index
    %c16_109 = arith.constant 16 : index
    %271 = vector.load %arg27[%c16_108, %c16_109] : memref<32x32xbf16, #tpu.memory_space<vmem>>, vector<16x16xbf16>
    tpu.vector_store %arg27[%c16_108, %c16_109], %269 {strides = array<i32>} : memref<32x32xbf16, #tpu.memory_space<vmem>>, vector<16x16xbf16>,
    %c16_110 = arith.constant 16 : index
    %c0_111 = arith.constant 0 : index
    %272 = vector.load %arg28[%c16_110, %c0_111] : memref<32x32xbf16, #tpu.memory_space<vmem>>, vector<16x16xbf16>
    tpu.vector_store %arg28[%c16_110, %c0_111], %269 {strides = array<i32>} : memref<32x32xbf16, #tpu.memory_space<vmem>>, vector<16x16xbf16>,
    %cst_112 = arith.constant 0.000000e+00 : bf16
    %273 = vector.broadcast %cst_112 : bf16 to vector<16x16xbf16>
    %274 = arith.subf %273, %266 : vector<16x16xbf16>
    %c16_113 = arith.constant 16 : index
    %c16_114 = arith.constant 16 : index
    %275 = vector.load %arg28[%c16_113, %c16_114] : memref<32x32xbf16, #tpu.memory_space<vmem>>, vector<16x16xbf16>
    tpu.vector_store %arg28[%c16_113, %c16_114], %274 {strides = array<i32>} : memref<32x32xbf16, #tpu.memory_space<vmem>>, vector<16x16xbf16>,
    %c0_115 = arith.constant 0 : index
    %c0_116 = arith.constant 0 : index
    %276 = vector.load %arg27[%c0_115, %c0_116] : memref<32x32xbf16, #tpu.memory_space<vmem>>, vector<32x32xbf16>
    %cst_117 = arith.constant dense<0.000000e+00> : vector<32x16xf32>
    %277 = tpu.matmul %276, %4, %cst_117 {dimension_numbers = #tpu.dot_dimension_numbers<[1], [0], [0], [1], [0, 0, 1, 1], [], []>} : vector<32x32xbf16>, vector<32x16xbf16>, vector<32x16xf32> -> vector<32x16xf32>
    %c0_118 = arith.constant 0 : index
    %c0_119 = arith.constant 0 : index
    %278 = vector.load %arg28[%c0_118, %c0_119] : memref<32x32xbf16, #tpu.memory_space<vmem>>, vector<32x32xbf16>
    %cst_120 = arith.constant dense<0.000000e+00> : vector<32x16xf32>
    %279 = tpu.matmul %278, %4, %cst_120 {dimension_numbers = #tpu.dot_dimension_numbers<[1], [0], [0], [1], [0, 0, 1, 1], [], []>} : vector<32x32xbf16>, vector<32x16xbf16>, vector<32x16xf32> -> vector<32x16xf32>
    %280 = vector.extract_strided_slice %277 {offsets = [0, 0], sizes = [16, 16], strides = [1, 1]} : vector<32x16xf32> to vector<16x16xf32>
    %281 = vector.extract_strided_slice %279 {offsets = [0, 0], sizes = [16, 16], strides = [1, 1]} : vector<32x16xf32> to vector<16x16xf32>
    %282 = tpu.concatenate %280, %281 in 0 : vector<16x16xf32>, vector<16x16xf32> -> vector<32x16xf32>
    %283 = arith.truncf %282 : vector<32x16xf32> to vector<32x16xbf16>
    %cst_121 = arith.constant dense<0.000000e+00> : vector<16x16xf32>
    %284 = tpu.matmul %5, %283, %cst_121 {dimension_numbers = #tpu.dot_dimension_numbers<[1], [0], [0], [1], [0, 0, 1, 1], [], []>} : vector<16x32xbf16>, vector<32x16xbf16>, vector<16x16xf32> -> vector<16x16xf32>
    %285 = vector.extract_strided_slice %183 {offsets = [0, 0], sizes = [16, 16], strides = [1, 1]} : vector<16x32xf32> to vector<16x16xf32>
    %286 = arith.truncf %285 : vector<16x16xf32> to vector<16x16xbf16>
    %287 = vector.extract_strided_slice %184 {offsets = [0, 0], sizes = [16, 16], strides = [1, 1]} : vector<16x32xf32> to vector<16x16xf32>
    %288 = arith.truncf %287 : vector<16x16xf32> to vector<16x16xbf16>
    %cst_122 = arith.constant dense<0.000000e+00> : vector<16x16xf32>
    %289 = tpu.matmul %286, %288, %cst_122 {dimension_numbers = #tpu.dot_dimension_numbers<[1], [1], [0], [0], [0, 0, 1, 0], [], []>} : vector<16x16xbf16>, vector<16x16xbf16>, vector<16x16xf32> -> vector<16x16xf32>
    %290 = vector.extract_strided_slice %221 {offsets = [0, 0], sizes = [1, 16], strides = [1, 1]} : vector<2x32xf32> to vector<1x16xf32>
    %291 = vector.broadcast %290 : vector<1x16xf32> to vector<16x16xf32>
    %292 = arith.mulf %289, %291 : vector<16x16xf32>
    %293 = arith.addf %284, %292 : vector<16x16xf32>
    %294 = vector.extract_strided_slice %2 {offsets = [1, 0, 0], sizes = [1, 1, 16], strides = [1, 1, 1]} : vector<2x1x16xf32> to vector<1x1x16xf32>
    %295 = vector.shape_cast %294 : vector<1x1x16xf32> to vector<1x16xf32>
    %296 = vector.broadcast %295 : vector<1x16xf32> to vector<16x16xf32>
    %297 = arith.addf %293, %296 : vector<16x16xf32>
    %cst_123 = arith.constant dense<0xFF800000> : vector<16xf32>
    %298 = vector.multi_reduction <maximumf>, %297, %cst_123 [1] : vector<16x16xf32> to vector<16xf32>
    %299 = vector.shape_cast %298 : vector<16xf32> to vector<16x1xf32>
    %300 = vector.broadcast %299 : vector<16x1xf32> to vector<16x16xf32>
    %301 = arith.subf %297, %300 : vector<16x16xf32>
    %302 = math.exp %301 : vector<16x16xf32>
    %cst_124 = arith.constant dense<0.000000e+00> : vector<16xf32>
    %303 = vector.multi_reduction <add>, %302, %cst_124 [1] : vector<16x16xf32> to vector<16xf32>
    %304 = vector.shape_cast %303 : vector<16xf32> to vector<16x1xf32>
    %305 = tpu.reciprocal %304 {approx = true} : vector<16x1xf32> -> vector<16x1xf32>
    %306 = vector.broadcast %305 : vector<16x1xf32> to vector<16x16xf32>
    %307 = arith.mulf %302, %306 : vector<16x16xf32>
    %308 = arith.truncf %307 : vector<16x16xf32> to vector<16x16xbf16>
    %309 = vector.extract_strided_slice %185 {offsets = [0, 0], sizes = [16, 16], strides = [1, 1]} : vector<16x32xf32> to vector<16x16xf32>
    %310 = arith.truncf %309 : vector<16x16xf32> to vector<16x16xbf16>
    %cst_125 = arith.constant dense<0.000000e+00> : vector<16x16xf32>
    %311 = tpu.matmul %308, %310, %cst_125 {dimension_numbers = #tpu.dot_dimension_numbers<[1], [0], [0], [1], [0, 0, 1, 1], [], []>} : vector<16x16xbf16>, vector<16x16xbf16>, vector<16x16xf32> -> vector<16x16xf32>
    %312 = arith.truncf %311 : vector<16x16xf32> to vector<16x16xbf16>
    %c16_126 = arith.constant 16 : index
    %c0_127 = arith.constant 0 : index
    %313 = vector.load %arg26[%c16_126, %c0_127] : memref<32x32xbf16, #tpu.memory_space<vmem>>, vector<16x16xbf16>
    tpu.vector_store %arg26[%c16_126, %c0_127], %312 {strides = array<i32>} : memref<32x32xbf16, #tpu.memory_space<vmem>>, vector<16x16xbf16>,
    %314 = vector.extract_strided_slice %277 {offsets = [16, 0], sizes = [16, 16], strides = [1, 1]} : vector<32x16xf32> to vector<16x16xf32>
    %315 = vector.extract_strided_slice %279 {offsets = [16, 0], sizes = [16, 16], strides = [1, 1]} : vector<32x16xf32> to vector<16x16xf32>
    %316 = tpu.concatenate %314, %315 in 0 : vector<16x16xf32>, vector<16x16xf32> -> vector<32x16xf32>
    %317 = arith.truncf %316 : vector<32x16xf32> to vector<32x16xbf16>
    %cst_128 = arith.constant dense<0.000000e+00> : vector<16x16xf32>
    %318 = tpu.matmul %5, %317, %cst_128 {dimension_numbers = #tpu.dot_dimension_numbers<[1], [0], [0], [1], [0, 0, 1, 1], [], []>} : vector<16x32xbf16>, vector<32x16xbf16>, vector<16x16xf32> -> vector<16x16xf32>
    %319 = vector.extract_strided_slice %183 {offsets = [0, 16], sizes = [16, 16], strides = [1, 1]} : vector<16x32xf32> to vector<16x16xf32>
    %320 = arith.truncf %319 : vector<16x16xf32> to vector<16x16xbf16>
    %321 = vector.extract_strided_slice %184 {offsets = [0, 16], sizes = [16, 16], strides = [1, 1]} : vector<16x32xf32> to vector<16x16xf32>
    %322 = arith.truncf %321 : vector<16x16xf32> to vector<16x16xbf16>
    %cst_129 = arith.constant dense<0.000000e+00> : vector<16x16xf32>
    %323 = tpu.matmul %320, %322, %cst_129 {dimension_numbers = #tpu.dot_dimension_numbers<[1], [1], [0], [0], [0, 0, 1, 0], [], []>} : vector<16x16xbf16>, vector<16x16xbf16>, vector<16x16xf32> -> vector<16x16xf32>
    %324 = vector.extract_strided_slice %221 {offsets = [1, 0], sizes = [1, 16], strides = [1, 1]} : vector<2x32xf32> to vector<1x16xf32>
    %325 = vector.broadcast %324 : vector<1x16xf32> to vector<16x16xf32>
    %326 = arith.mulf %323, %325 : vector<16x16xf32>
    %327 = arith.addf %318, %326 : vector<16x16xf32>
    %328 = vector.extract_strided_slice %2 {offsets = [1, 0, 0], sizes = [1, 1, 16], strides = [1, 1, 1]} : vector<2x1x16xf32> to vector<1x1x16xf32>
    %329 = vector.shape_cast %328 : vector<1x1x16xf32> to vector<1x16xf32>
    %330 = vector.broadcast %329 : vector<1x16xf32> to vector<16x16xf32>
    %331 = arith.addf %327, %330 : vector<16x16xf32>
    %cst_130 = arith.constant dense<0xFF800000> : vector<16xf32>
    %332 = vector.multi_reduction <maximumf>, %331, %cst_130 [1] : vector<16x16xf32> to vector<16xf32>
    %333 = vector.shape_cast %332 : vector<16xf32> to vector<16x1xf32>
    %334 = vector.broadcast %333 : vector<16x1xf32> to vector<16x16xf32>
    %335 = arith.subf %331, %334 : vector<16x16xf32>
    %336 = math.exp %335 : vector<16x16xf32>
    %cst_131 = arith.constant dense<0.000000e+00> : vector<16xf32>
    %337 = vector.multi_reduction <add>, %336, %cst_131 [1] : vector<16x16xf32> to vector<16xf32>
    %338 = vector.shape_cast %337 : vector<16xf32> to vector<16x1xf32>
    %339 = tpu.reciprocal %338 {approx = true} : vector<16x1xf32> -> vector<16x1xf32>
    %340 = vector.broadcast %339 : vector<16x1xf32> to vector<16x16xf32>
    %341 = arith.mulf %336, %340 : vector<16x16xf32>
    %342 = arith.truncf %341 : vector<16x16xf32> to vector<16x16xbf16>
    %343 = vector.extract_strided_slice %185 {offsets = [0, 16], sizes = [16, 16], strides = [1, 1]} : vector<16x32xf32> to vector<16x16xf32>
    %344 = arith.truncf %343 : vector<16x16xf32> to vector<16x16xbf16>
    %cst_132 = arith.constant dense<0.000000e+00> : vector<16x16xf32>
    %345 = tpu.matmul %342, %344, %cst_132 {dimension_numbers = #tpu.dot_dimension_numbers<[1], [0], [0], [1], [0, 0, 1, 1], [], []>} : vector<16x16xbf16>, vector<16x16xbf16>, vector<16x16xf32> -> vector<16x16xf32>
    %346 = arith.truncf %345 : vector<16x16xf32> to vector<16x16xbf16>
    %c16_133 = arith.constant 16 : index
    %c16_134 = arith.constant 16 : index
    %347 = vector.load %arg26[%c16_133, %c16_134] : memref<32x32xbf16, #tpu.memory_space<vmem>>, vector<16x16xbf16>
    tpu.vector_store %arg26[%c16_133, %c16_134], %346 {strides = array<i32>} : memref<32x32xbf16, #tpu.memory_space<vmem>>, vector<16x16xbf16>,
    %348 = arith.extf %0 : vector<32x32xbf16> to vector<32x32xf32>
    %c0_135 = arith.constant 0 : index
    %c0_136 = arith.constant 0 : index
    %349 = vector.load %arg26[%c0_135, %c0_136] : memref<32x32xbf16, #tpu.memory_space<vmem>>, vector<32x32xbf16>
    %c0_137 = arith.constant 0 : index
    %c0_138 = arith.constant 0 : index
    %350 = vector.load %arg15[%c0_137, %c0_138] : memref<32x32xbf16, #tpu.memory_space<vmem>>, vector<32x32xbf16>
    %cst_139 = arith.constant dense<0.000000e+00> : vector<32x32xf32>
    %351 = tpu.matmul %349, %350, %cst_139 {dimension_numbers = #tpu.dot_dimension_numbers<[1], [0], [0], [1], [0, 0, 1, 1], [], []>} : vector<32x32xbf16>, vector<32x32xbf16>, vector<32x32xf32> -> vector<32x32xf32>
    %352 = arith.addf %348, %351 : vector<32x32xf32>
    %c0_140 = arith.constant 0 : index
    %c0_141 = arith.constant 0 : index
    %353 = vector.load %arg16[%c0_140, %c0_141] : memref<1x32xf32, #tpu.memory_space<vmem>>, vector<1x32xf32>
    %354 = vector.broadcast %353 : vector<1x32xf32> to vector<32x32xf32>
    %355 = arith.addf %352, %354 : vector<32x32xf32>
    %356 = vector.extract_strided_slice %6 {offsets = [0, 0], sizes = [1, 32], strides = [1, 1]} : vector<3x32xf32> to vector<1x32xf32>
    %357 = vector.extract_strided_slice %7 {offsets = [0, 0], sizes = [1, 32], strides = [1, 1]} : vector<3x32xf32> to vector<1x32xf32>
    %cst_142 = arith.constant dense<0.000000e+00> : vector<32xf32>
    %358 = vector.multi_reduction <add>, %355, %cst_142 [1] : vector<32x32xf32> to vector<32xf32>
    %359 = vector.shape_cast %358 : vector<32xf32> to vector<32x1xf32>
    %cst_143 = arith.constant 3.200000e+01 : f32
    %360 = vector.broadcast %cst_143 : f32 to vector<32x1xf32>
    %361 = arith.divf %359, %360 : vector<32x1xf32>
    %362 = vector.broadcast %361 : vector<32x1xf32> to vector<32x32xf32>
    %363 = arith.subf %355, %362 : vector<32x32xf32>
    %364 = arith.mulf %363, %363 : vector<32x32xf32>
    %cst_144 = arith.constant dense<0.000000e+00> : vector<32xf32>
    %365 = vector.multi_reduction <add>, %364, %cst_144 [1] : vector<32x32xf32> to vector<32xf32>
    %366 = vector.shape_cast %365 : vector<32xf32> to vector<32x1xf32>
    %cst_145 = arith.constant 0.0322580636 : f32
    %367 = vector.broadcast %cst_145 : f32 to vector<32x1xf32>
    %368 = arith.mulf %366, %367 : vector<32x1xf32>
    %369 = vector.broadcast %356 : vector<1x32xf32> to vector<32x32xf32>
    %370 = arith.mulf %369, %363 : vector<32x32xf32>
    %371 = math.sqrt %368 : vector<32x1xf32>
    %cst_146 = arith.constant 9.99999997E-7 : f32
    %372 = vector.broadcast %cst_146 : f32 to vector<32x1xf32>
    %373 = arith.addf %371, %372 : vector<32x1xf32>
    %374 = tpu.reciprocal %373 {approx = true} : vector<32x1xf32> -> vector<32x1xf32>
    %375 = vector.broadcast %374 : vector<32x1xf32> to vector<32x32xf32>
    %376 = arith.mulf %370, %375 : vector<32x32xf32>
    %377 = vector.broadcast %357 : vector<1x32xf32> to vector<32x32xf32>
    %378 = arith.addf %376, %377 : vector<32x32xf32>
    %379 = arith.truncf %378 : vector<32x32xf32> to vector<32x32xbf16>
    %c0_147 = arith.constant 0 : index
    %c0_148 = arith.constant 0 : index
    %380 = vector.load %arg13[%c0_147, %c0_148] : memref<32x32xbf16, #tpu.memory_space<vmem>>, vector<32x32xbf16>
    %cst_149 = arith.constant dense<0.000000e+00> : vector<32x32xf32>
    %381 = tpu.matmul %379, %380, %cst_149 {dimension_numbers = #tpu.dot_dimension_numbers<[1], [0], [0], [1], [0, 0, 1, 1], [], []>} : vector<32x32xbf16>, vector<32x32xbf16>, vector<32x32xf32> -> vector<32x32xf32>
    %c0_150 = arith.constant 0 : index
    %c0_151 = arith.constant 0 : index
    %382 = vector.load %arg14[%c0_150, %c0_151] : memref<1x32xf32, #tpu.memory_space<vmem>>, vector<1x32xf32>
    %383 = vector.broadcast %382 : vector<1x32xf32> to vector<32x32xf32>
    %384 = arith.addf %381, %383 : vector<32x32xf32>
    %385 = vector.extract_strided_slice %17 {offsets = [0, 32], sizes = [8, 32], strides = [1, 1]} : vector<16x96xf32> to vector<8x32xf32>
    %386 = arith.truncf %385 : vector<8x32xf32> to vector<8x32xbf16>
    %387 = vector.extract_strided_slice %17 {offsets = [0, 64], sizes = [8, 32], strides = [1, 1]} : vector<16x96xf32> to vector<8x32xf32>
    %388 = arith.truncf %387 : vector<8x32xf32> to vector<8x32xbf16>
    %389 = vector.extract_strided_slice %384 {offsets = [0, 0], sizes = [16, 16], strides = [1, 1]} : vector<32x32xf32> to vector<16x16xf32>
    %390 = arith.truncf %389 : vector<16x16xf32> to vector<16x16xbf16>
    %391 = vector.extract_strided_slice %386 {offsets = [0, 0], sizes = [8, 16], strides = [1, 1]} : vector<8x32xbf16> to vector<8x16xbf16>
    %cst_152 = arith.constant dense<0.000000e+00> : vector<16x8xf32>
    %392 = tpu.matmul %390, %391, %cst_152 {dimension_numbers = #tpu.dot_dimension_numbers<[1], [1], [0], [0], [0, 0, 1, 0], [], []>} : vector<16x16xbf16>, vector<8x16xbf16>, vector<16x8xf32> -> vector<16x8xf32>
    %393 = vector.extract_strided_slice %3 {offsets = [0, 0, 0], sizes = [1, 1, 8], strides = [1, 1, 1]} : vector<2x1x8xf32> to vector<1x1x8xf32>
    %394 = vector.shape_cast %393 : vector<1x1x8xf32> to vector<1x8xf32>
    %395 = vector.broadcast %394 : vector<1x8xf32> to vector<16x8xf32>
    %396 = arith.addf %392, %395 : vector<16x8xf32>
    %cst_153 = arith.constant dense<0xFF800000> : vector<16xf32>
    %397 = vector.multi_reduction <maximumf>, %396, %cst_153 [1] : vector<16x8xf32> to vector<16xf32>
    %398 = vector.shape_cast %397 : vector<16xf32> to vector<16x1xf32>
    %399 = vector.broadcast %398 : vector<16x1xf32> to vector<16x8xf32>
    %400 = arith.subf %396, %399 : vector<16x8xf32>
    %401 = math.exp %400 : vector<16x8xf32>
    %cst_154 = arith.constant dense<0.000000e+00> : vector<16xf32>
    %402 = vector.multi_reduction <add>, %401, %cst_154 [1] : vector<16x8xf32> to vector<16xf32>
    %403 = vector.shape_cast %402 : vector<16xf32> to vector<16x1xf32>
    %404 = tpu.reciprocal %403 {approx = true} : vector<16x1xf32> -> vector<16x1xf32>
    %405 = vector.broadcast %404 : vector<16x1xf32> to vector<16x8xf32>
    %406 = arith.mulf %401, %405 : vector<16x8xf32>
    %407 = arith.truncf %406 : vector<16x8xf32> to vector<16x8xbf16>
    %408 = vector.extract_strided_slice %388 {offsets = [0, 0], sizes = [8, 16], strides = [1, 1]} : vector<8x32xbf16> to vector<8x16xbf16>
    %cst_155 = arith.constant dense<0.000000e+00> : vector<16x16xf32>
    %409 = tpu.matmul %407, %408, %cst_155 {dimension_numbers = #tpu.dot_dimension_numbers<[1], [0], [0], [1], [0, 0, 1, 1], [], []>} : vector<16x8xbf16>, vector<8x16xbf16>, vector<16x16xf32> -> vector<16x16xf32>
    %410 = arith.truncf %409 : vector<16x16xf32> to vector<16x16xbf16>
    %c0_156 = arith.constant 0 : index
    %c0_157 = arith.constant 0 : index
    %411 = vector.load %arg26[%c0_156, %c0_157] : memref<32x32xbf16, #tpu.memory_space<vmem>>, vector<16x16xbf16>
    tpu.vector_store %arg26[%c0_156, %c0_157], %410 {strides = array<i32>} : memref<32x32xbf16, #tpu.memory_space<vmem>>, vector<16x16xbf16>,
    %412 = vector.extract_strided_slice %384 {offsets = [0, 16], sizes = [16, 16], strides = [1, 1]} : vector<32x32xf32> to vector<16x16xf32>
    %413 = arith.truncf %412 : vector<16x16xf32> to vector<16x16xbf16>
    %414 = vector.extract_strided_slice %386 {offsets = [0, 16], sizes = [8, 16], strides = [1, 1]} : vector<8x32xbf16> to vector<8x16xbf16>
    %cst_158 = arith.constant dense<0.000000e+00> : vector<16x8xf32>
    %415 = tpu.matmul %413, %414, %cst_158 {dimension_numbers = #tpu.dot_dimension_numbers<[1], [1], [0], [0], [0, 0, 1, 0], [], []>} : vector<16x16xbf16>, vector<8x16xbf16>, vector<16x8xf32> -> vector<16x8xf32>
    %416 = vector.extract_strided_slice %3 {offsets = [0, 0, 0], sizes = [1, 1, 8], strides = [1, 1, 1]} : vector<2x1x8xf32> to vector<1x1x8xf32>
    %417 = vector.shape_cast %416 : vector<1x1x8xf32> to vector<1x8xf32>
    %418 = vector.broadcast %417 : vector<1x8xf32> to vector<16x8xf32>
    %419 = arith.addf %415, %418 : vector<16x8xf32>
    %cst_159 = arith.constant dense<0xFF800000> : vector<16xf32>
    %420 = vector.multi_reduction <maximumf>, %419, %cst_159 [1] : vector<16x8xf32> to vector<16xf32>
    %421 = vector.shape_cast %420 : vector<16xf32> to vector<16x1xf32>
    %422 = vector.broadcast %421 : vector<16x1xf32> to vector<16x8xf32>
    %423 = arith.subf %419, %422 : vector<16x8xf32>
    %424 = math.exp %423 : vector<16x8xf32>
    %cst_160 = arith.constant dense<0.000000e+00> : vector<16xf32>
    %425 = vector.multi_reduction <add>, %424, %cst_160 [1] : vector<16x8xf32> to vector<16xf32>
    %426 = vector.shape_cast %425 : vector<16xf32> to vector<16x1xf32>
    %427 = tpu.reciprocal %426 {approx = true} : vector<16x1xf32> -> vector<16x1xf32>
    %428 = vector.broadcast %427 : vector<16x1xf32> to vector<16x8xf32>
    %429 = arith.mulf %424, %428 : vector<16x8xf32>
    %430 = arith.truncf %429 : vector<16x8xf32> to vector<16x8xbf16>
    %431 = vector.extract_strided_slice %388 {offsets = [0, 16], sizes = [8, 16], strides = [1, 1]} : vector<8x32xbf16> to vector<8x16xbf16>
    %cst_161 = arith.constant dense<0.000000e+00> : vector<16x16xf32>
    %432 = tpu.matmul %430, %431, %cst_161 {dimension_numbers = #tpu.dot_dimension_numbers<[1], [0], [0], [1], [0, 0, 1, 1], [], []>} : vector<16x8xbf16>, vector<8x16xbf16>, vector<16x16xf32> -> vector<16x16xf32>
    %433 = arith.truncf %432 : vector<16x16xf32> to vector<16x16xbf16>
    %c0_162 = arith.constant 0 : index
    %c16_163 = arith.constant 16 : index
    %434 = vector.load %arg26[%c0_162, %c16_163] : memref<32x32xbf16, #tpu.memory_space<vmem>>, vector<16x16xbf16>
    tpu.vector_store %arg26[%c0_162, %c16_163], %433 {strides = array<i32>} : memref<32x32xbf16, #tpu.memory_space<vmem>>, vector<16x16xbf16>,
    %435 = vector.extract_strided_slice %17 {offsets = [8, 32], sizes = [8, 32], strides = [1, 1]} : vector<16x96xf32> to vector<8x32xf32>
    %436 = arith.truncf %435 : vector<8x32xf32> to vector<8x32xbf16>
    %437 = vector.extract_strided_slice %17 {offsets = [8, 64], sizes = [8, 32], strides = [1, 1]} : vector<16x96xf32> to vector<8x32xf32>
    %438 = arith.truncf %437 : vector<8x32xf32> to vector<8x32xbf16>
    %439 = vector.extract_strided_slice %384 {offsets = [16, 0], sizes = [16, 16], strides = [1, 1]} : vector<32x32xf32> to vector<16x16xf32>
    %440 = arith.truncf %439 : vector<16x16xf32> to vector<16x16xbf16>
    %441 = vector.extract_strided_slice %436 {offsets = [0, 0], sizes = [8, 16], strides = [1, 1]} : vector<8x32xbf16> to vector<8x16xbf16>
    %cst_164 = arith.constant dense<0.000000e+00> : vector<16x8xf32>
    %442 = tpu.matmul %440, %441, %cst_164 {dimension_numbers = #tpu.dot_dimension_numbers<[1], [1], [0], [0], [0, 0, 1, 0], [], []>} : vector<16x16xbf16>, vector<8x16xbf16>, vector<16x8xf32> -> vector<16x8xf32>
    %443 = vector.extract_strided_slice %3 {offsets = [1, 0, 0], sizes = [1, 1, 8], strides = [1, 1, 1]} : vector<2x1x8xf32> to vector<1x1x8xf32>
    %444 = vector.shape_cast %443 : vector<1x1x8xf32> to vector<1x8xf32>
    %445 = vector.broadcast %444 : vector<1x8xf32> to vector<16x8xf32>
    %446 = arith.addf %442, %445 : vector<16x8xf32>
    %cst_165 = arith.constant dense<0xFF800000> : vector<16xf32>
    %447 = vector.multi_reduction <maximumf>, %446, %cst_165 [1] : vector<16x8xf32> to vector<16xf32>
    %448 = vector.shape_cast %447 : vector<16xf32> to vector<16x1xf32>
    %449 = vector.broadcast %448 : vector<16x1xf32> to vector<16x8xf32>
    %450 = arith.subf %446, %449 : vector<16x8xf32>
    %451 = math.exp %450 : vector<16x8xf32>
    %cst_166 = arith.constant dense<0.000000e+00> : vector<16xf32>
    %452 = vector.multi_reduction <add>, %451, %cst_166 [1] : vector<16x8xf32> to vector<16xf32>
    %453 = vector.shape_cast %452 : vector<16xf32> to vector<16x1xf32>
    %454 = tpu.reciprocal %453 {approx = true} : vector<16x1xf32> -> vector<16x1xf32>
    %455 = vector.broadcast %454 : vector<16x1xf32> to vector<16x8xf32>
    %456 = arith.mulf %451, %455 : vector<16x8xf32>
    %457 = arith.truncf %456 : vector<16x8xf32> to vector<16x8xbf16>
    %458 = vector.extract_strided_slice %438 {offsets = [0, 0], sizes = [8, 16], strides = [1, 1]} : vector<8x32xbf16> to vector<8x16xbf16>
    %cst_167 = arith.constant dense<0.000000e+00> : vector<16x16xf32>
    %459 = tpu.matmul %457, %458, %cst_167 {dimension_numbers = #tpu.dot_dimension_numbers<[1], [0], [0], [1], [0, 0, 1, 1], [], []>} : vector<16x8xbf16>, vector<8x16xbf16>, vector<16x16xf32> -> vector<16x16xf32>
    %460 = arith.truncf %459 : vector<16x16xf32> to vector<16x16xbf16>
    %c16_168 = arith.constant 16 : index
    %c0_169 = arith.constant 0 : index
    %461 = vector.load %arg26[%c16_168, %c0_169] : memref<32x32xbf16, #tpu.memory_space<vmem>>, vector<16x16xbf16>
    tpu.vector_store %arg26[%c16_168, %c0_169], %460 {strides = array<i32>} : memref<32x32xbf16, #tpu.memory_space<vmem>>, vector<16x16xbf16>,
    %462 = vector.extract_strided_slice %384 {offsets = [16, 16], sizes = [16, 16], strides = [1, 1]} : vector<32x32xf32> to vector<16x16xf32>
    %463 = arith.truncf %462 : vector<16x16xf32> to vector<16x16xbf16>
    %464 = vector.extract_strided_slice %436 {offsets = [0, 16], sizes = [8, 16], strides = [1, 1]} : vector<8x32xbf16> to vector<8x16xbf16>
    %cst_170 = arith.constant dense<0.000000e+00> : vector<16x8xf32>
    %465 = tpu.matmul %463, %464, %cst_170 {dimension_numbers = #tpu.dot_dimension_numbers<[1], [1], [0], [0], [0, 0, 1, 0], [], []>} : vector<16x16xbf16>, vector<8x16xbf16>, vector<16x8xf32> -> vector<16x8xf32>
    %466 = vector.extract_strided_slice %3 {offsets = [1, 0, 0], sizes = [1, 1, 8], strides = [1, 1, 1]} : vector<2x1x8xf32> to vector<1x1x8xf32>
    %467 = vector.shape_cast %466 : vector<1x1x8xf32> to vector<1x8xf32>
    %468 = vector.broadcast %467 : vector<1x8xf32> to vector<16x8xf32>
    %469 = arith.addf %465, %468 : vector<16x8xf32>
    %cst_171 = arith.constant dense<0xFF800000> : vector<16xf32>
    %470 = vector.multi_reduction <maximumf>, %469, %cst_171 [1] : vector<16x8xf32> to vector<16xf32>
    %471 = vector.shape_cast %470 : vector<16xf32> to vector<16x1xf32>
    %472 = vector.broadcast %471 : vector<16x1xf32> to vector<16x8xf32>
    %473 = arith.subf %469, %472 : vector<16x8xf32>
    %474 = math.exp %473 : vector<16x8xf32>
    %cst_172 = arith.constant dense<0.000000e+00> : vector<16xf32>
    %475 = vector.multi_reduction <add>, %474, %cst_172 [1] : vector<16x8xf32> to vector<16xf32>
    %476 = vector.shape_cast %475 : vector<16xf32> to vector<16x1xf32>
    %477 = tpu.reciprocal %476 {approx = true} : vector<16x1xf32> -> vector<16x1xf32>
    %478 = vector.broadcast %477 : vector<16x1xf32> to vector<16x8xf32>
    %479 = arith.mulf %474, %478 : vector<16x8xf32>
    %480 = arith.truncf %479 : vector<16x8xf32> to vector<16x8xbf16>
    %481 = vector.extract_strided_slice %438 {offsets = [0, 16], sizes = [8, 16], strides = [1, 1]} : vector<8x32xbf16> to vector<8x16xbf16>
    %cst_173 = arith.constant dense<0.000000e+00> : vector<16x16xf32>
    %482 = tpu.matmul %480, %481, %cst_173 {dimension_numbers = #tpu.dot_dimension_numbers<[1], [0], [0], [1], [0, 0, 1, 1], [], []>} : vector<16x8xbf16>, vector<8x16xbf16>, vector<16x16xf32> -> vector<16x16xf32>
    %483 = arith.truncf %482 : vector<16x16xf32> to vector<16x16xbf16>
    %c16_174 = arith.constant 16 : index
    %c16_175 = arith.constant 16 : index
    %484 = vector.load %arg26[%c16_174, %c16_175] : memref<32x32xbf16, #tpu.memory_space<vmem>>, vector<16x16xbf16>
    tpu.vector_store %arg26[%c16_174, %c16_175], %483 {strides = array<i32>} : memref<32x32xbf16, #tpu.memory_space<vmem>>, vector<16x16xbf16>,
    %c0_176 = arith.constant 0 : index
    %c0_177 = arith.constant 0 : index
    %485 = vector.load %arg26[%c0_176, %c0_177] : memref<32x32xbf16, #tpu.memory_space<vmem>>, vector<32x32xbf16>
    %c0_178 = arith.constant 0 : index
    %c0_179 = arith.constant 0 : index
    %486 = vector.load %arg17[%c0_178, %c0_179] : memref<32x32xbf16, #tpu.memory_space<vmem>>, vector<32x32xbf16>
    %cst_180 = arith.constant dense<0.000000e+00> : vector<32x32xf32>
    %487 = tpu.matmul %485, %486, %cst_180 {dimension_numbers = #tpu.dot_dimension_numbers<[1], [0], [0], [1], [0, 0, 1, 1], [], []>} : vector<32x32xbf16>, vector<32x32xbf16>, vector<32x32xf32> -> vector<32x32xf32>
    %488 = arith.addf %378, %487 : vector<32x32xf32>
    %c0_181 = arith.constant 0 : index
    %c0_182 = arith.constant 0 : index
    %489 = vector.load %arg18[%c0_181, %c0_182] : memref<1x32xf32, #tpu.memory_space<vmem>>, vector<1x32xf32>
    %490 = vector.broadcast %489 : vector<1x32xf32> to vector<32x32xf32>
    %491 = arith.addf %488, %490 : vector<32x32xf32>
    %492 = vector.extract_strided_slice %6 {offsets = [1, 0], sizes = [1, 32], strides = [1, 1]} : vector<3x32xf32> to vector<1x32xf32>
    %493 = vector.extract_strided_slice %7 {offsets = [1, 0], sizes = [1, 32], strides = [1, 1]} : vector<3x32xf32> to vector<1x32xf32>
    %cst_183 = arith.constant dense<0.000000e+00> : vector<32xf32>
    %494 = vector.multi_reduction <add>, %491, %cst_183 [1] : vector<32x32xf32> to vector<32xf32>
    %495 = vector.shape_cast %494 : vector<32xf32> to vector<32x1xf32>
    %cst_184 = arith.constant 3.200000e+01 : f32
    %496 = vector.broadcast %cst_184 : f32 to vector<32x1xf32>
    %497 = arith.divf %495, %496 : vector<32x1xf32>
    %498 = vector.broadcast %497 : vector<32x1xf32> to vector<32x32xf32>
    %499 = arith.subf %491, %498 : vector<32x32xf32>
    %500 = arith.mulf %499, %499 : vector<32x32xf32>
    %cst_185 = arith.constant dense<0.000000e+00> : vector<32xf32>
    %501 = vector.multi_reduction <add>, %500, %cst_185 [1] : vector<32x32xf32> to vector<32xf32>
    %502 = vector.shape_cast %501 : vector<32xf32> to vector<32x1xf32>
    %cst_186 = arith.constant 0.0322580636 : f32
    %503 = vector.broadcast %cst_186 : f32 to vector<32x1xf32>
    %504 = arith.mulf %502, %503 : vector<32x1xf32>
    %505 = vector.broadcast %492 : vector<1x32xf32> to vector<32x32xf32>
    %506 = arith.mulf %505, %499 : vector<32x32xf32>
    %507 = math.sqrt %504 : vector<32x1xf32>
    %cst_187 = arith.constant 9.99999997E-7 : f32
    %508 = vector.broadcast %cst_187 : f32 to vector<32x1xf32>
    %509 = arith.addf %507, %508 : vector<32x1xf32>
    %510 = tpu.reciprocal %509 {approx = true} : vector<32x1xf32> -> vector<32x1xf32>
    %511 = vector.broadcast %510 : vector<32x1xf32> to vector<32x32xf32>
    %512 = arith.mulf %506, %511 : vector<32x32xf32>
    %513 = vector.broadcast %493 : vector<1x32xf32> to vector<32x32xf32>
    %514 = arith.addf %512, %513 : vector<32x32xf32>
    %515 = arith.truncf %514 : vector<32x32xf32> to vector<32x32xbf16>
    %c0_188 = arith.constant 0 : index
    %c0_189 = arith.constant 0 : index
    %516 = vector.load %arg19[%c0_188, %c0_189] : memref<32x64xbf16, #tpu.memory_space<vmem>>, vector<32x64xbf16>
    %cst_190 = arith.constant dense<0.000000e+00> : vector<32x64xf32>
    %517 = tpu.matmul %515, %516, %cst_190 {dimension_numbers = #tpu.dot_dimension_numbers<[1], [0], [0], [1], [0, 0, 1, 1], [], []>} : vector<32x32xbf16>, vector<32x64xbf16>, vector<32x64xf32> -> vector<32x64xf32>
    %c0_191 = arith.constant 0 : index
    %c0_192 = arith.constant 0 : index
    %518 = vector.load %arg20[%c0_191, %c0_192] : memref<1x64xf32, #tpu.memory_space<vmem>>, vector<1x64xf32>
    %519 = vector.broadcast %518 : vector<1x64xf32> to vector<32x64xf32>
    %520 = arith.addf %517, %519 : vector<32x64xf32>
    %cst_193 = arith.constant 0.000000e+00 : f32
    %521 = vector.broadcast %cst_193 : f32 to vector<32x64xf32>
    %522 = arith.maximumf %520, %521 : vector<32x64xf32>
    %523 = arith.truncf %522 : vector<32x64xf32> to vector<32x64xbf16>
    %c0_194 = arith.constant 0 : index
    %c0_195 = arith.constant 0 : index
    %524 = vector.load %arg21[%c0_194, %c0_195] : memref<64x32xbf16, #tpu.memory_space<vmem>>, vector<64x32xbf16>
    %cst_196 = arith.constant dense<0.000000e+00> : vector<32x32xf32>
    %525 = tpu.matmul %523, %524, %cst_196 {dimension_numbers = #tpu.dot_dimension_numbers<[1], [0], [0], [1], [0, 0, 1, 1], [], []>} : vector<32x64xbf16>, vector<64x32xbf16>, vector<32x32xf32> -> vector<32x32xf32>
    %c0_197 = arith.constant 0 : index
    %c0_198 = arith.constant 0 : index
    %526 = vector.load %arg22[%c0_197, %c0_198] : memref<1x32xf32, #tpu.memory_space<vmem>>, vector<1x32xf32>
    %527 = vector.broadcast %526 : vector<1x32xf32> to vector<32x32xf32>
    %528 = arith.addf %525, %527 : vector<32x32xf32>
    %529 = arith.addf %514, %528 : vector<32x32xf32>
    %530 = vector.extract_strided_slice %6 {offsets = [2, 0], sizes = [1, 32], strides = [1, 1]} : vector<3x32xf32> to vector<1x32xf32>
    %531 = vector.extract_strided_slice %7 {offsets = [2, 0], sizes = [1, 32], strides = [1, 1]} : vector<3x32xf32> to vector<1x32xf32>
    %cst_199 = arith.constant dense<0.000000e+00> : vector<32xf32>
    %532 = vector.multi_reduction <add>, %529, %cst_199 [1] : vector<32x32xf32> to vector<32xf32>
    %533 = vector.shape_cast %532 : vector<32xf32> to vector<32x1xf32>
    %cst_200 = arith.constant 3.200000e+01 : f32
    %534 = vector.broadcast %cst_200 : f32 to vector<32x1xf32>
    %535 = arith.divf %533, %534 : vector<32x1xf32>
    %536 = vector.broadcast %535 : vector<32x1xf32> to vector<32x32xf32>
    %537 = arith.subf %529, %536 : vector<32x32xf32>
    %538 = arith.mulf %537, %537 : vector<32x32xf32>
    %cst_201 = arith.constant dense<0.000000e+00> : vector<32xf32>
    %539 = vector.multi_reduction <add>, %538, %cst_201 [1] : vector<32x32xf32> to vector<32xf32>
    %540 = vector.shape_cast %539 : vector<32xf32> to vector<32x1xf32>
    %cst_202 = arith.constant 0.0322580636 : f32
    %541 = vector.broadcast %cst_202 : f32 to vector<32x1xf32>
    %542 = arith.mulf %540, %541 : vector<32x1xf32>
    %543 = vector.broadcast %530 : vector<1x32xf32> to vector<32x32xf32>
    %544 = arith.mulf %543, %537 : vector<32x32xf32>
    %545 = math.sqrt %542 : vector<32x1xf32>
    %cst_203 = arith.constant 9.99999997E-7 : f32
    %546 = vector.broadcast %cst_203 : f32 to vector<32x1xf32>
    %547 = arith.addf %545, %546 : vector<32x1xf32>
    %548 = tpu.reciprocal %547 {approx = true} : vector<32x1xf32> -> vector<32x1xf32>
    %549 = vector.broadcast %548 : vector<32x1xf32> to vector<32x32xf32>
    %550 = arith.mulf %544, %549 : vector<32x32xf32>
    %551 = vector.broadcast %531 : vector<1x32xf32> to vector<32x32xf32>
    %552 = arith.addf %550, %551 : vector<32x32xf32>
    %c0_204 = arith.constant 0 : index
    %c0_205 = arith.constant 0 : index
    %553 = vector.load %arg25[%c0_204, %c0_205] : memref<32x32xf32, #tpu.memory_space<vmem>>, vector<32x32xf32>
    tpu.vector_store %arg25[%c0_204, %c0_205], %552 {strides = array<i32>} : memref<32x32xf32, #tpu.memory_space<vmem>>, vector<32x32xf32>,
    return
  }
  func.func @transform_0(%arg0: i32) -> (i32, i32) {
    %c0_i32 = arith.constant 0 : i32
    %c0_i32_0 = arith.constant 0 : i32
    return %arg0, %c0_i32 : i32, i32
  }
  func.func @transform_1(%arg0: i32) -> (i32, i32) {
    %c0_i32 = arith.constant 0 : i32
    %c0_i32_0 = arith.constant 0 : i32
    return %arg0, %c0_i32 : i32, i32
  }
  func.func @transform_2(%arg0: i32) -> (i32, i32, i32) {
    %c0_i32 = arith.constant 0 : i32
    %c0_i32_0 = arith.constant 0 : i32
    %c0_i32_1 = arith.constant 0 : i32
    return %arg0, %c0_i32, %c0_i32_0 : i32, i32, i32
  }
  func.func @transform_3(%arg0: i32) -> (i32, i32, i32) {
    %c0_i32 = arith.constant 0 : i32
    %c0_i32_0 = arith.constant 0 : i32
    %c0_i32_1 = arith.constant 0 : i32
    return %arg0, %c0_i32, %c0_i32_0 : i32, i32, i32
  }
  func.func @transform_4(%arg0: i32) -> (i32, i32) {
    %c0_i32 = arith.constant 0 : i32
    %c0_i32_0 = arith.constant 0 : i32
    %c0_i32_1 = arith.constant 0 : i32
    return %c0_i32, %c0_i32_0 : i32, i32
  }
  func.func @transform_5(%arg0: i32) -> (i32, i32) {
    %c0_i32 = arith.constant 0 : i32
    %c0_i32_0 = arith.constant 0 : i32
    %c0_i32_1 = arith.constant 0 : i32
    return %c0_i32, %c0_i32_0 : i32, i32
  }
  func.func @transform_6(%arg0: i32) -> (i32, i32) {
    %c0_i32 = arith.constant 0 : i32
    %c0_i32_0 = arith.constant 0 : i32
    %c0_i32_1 = arith.constant 0 : i32
    return %c0_i32, %c0_i32_0 : i32, i32
  }
  func.func @transform_7(%arg0: i32) -> (i32, i32) {
    %c0_i32 = arith.constant 0 : i32
    %c0_i32_0 = arith.constant 0 : i32
    %c0_i32_1 = arith.constant 0 : i32
    return %c0_i32, %c0_i32_0 : i32, i32
  }
  func.func @transform_8(%arg0: i32) -> (i32, i32) {
    %c0_i32 = arith.constant 0 : i32
    %c0_i32_0 = arith.constant 0 : i32
    %c0_i32_1 = arith.constant 0 : i32
    return %c0_i32, %c0_i32_0 : i32, i32
  }
  func.func @transform_9(%arg0: i32) -> (i32, i32) {
    %c0_i32 = arith.constant 0 : i32
    %c0_i32_0 = arith.constant 0 : i32
    %c0_i32_1 = arith.constant 0 : i32
    return %c0_i32, %c0_i32_0 : i32, i32
  }
  func.func @transform_10(%arg0: i32) -> (i32, i32) {
    %c0_i32 = arith.constant 0 : i32
    %c0_i32_0 = arith.constant 0 : i32
    %c0_i32_1 = arith.constant 0 : i32
    return %c0_i32, %c0_i32_0 : i32, i32
  }
  func.func @transform_11(%arg0: i32) -> (i32, i32) {
    %c0_i32 = arith.constant 0 : i32
    %c0_i32_0 = arith.constant 0 : i32
    %c0_i32_1 = arith.constant 0 : i32
    return %c0_i32, %c0_i32_0 : i32, i32
  }
  func.func @transform_12(%arg0: i32) -> (i32, i32) {
    %c0_i32 = arith.constant 0 : i32
    %c0_i32_0 = arith.constant 0 : i32
    %c0_i32_1 = arith.constant 0 : i32
    return %c0_i32, %c0_i32_0 : i32, i32
  }
  func.func @transform_13(%arg0: i32) -> (i32, i32) {
    %c0_i32 = arith.constant 0 : i32
    %c0_i32_0 = arith.constant 0 : i32
    %c0_i32_1 = arith.constant 0 : i32
    return %c0_i32, %c0_i32_0 : i32, i32
  }
  func.func @transform_14(%arg0: i32) -> (i32, i32) {
    %c0_i32 = arith.constant 0 : i32
    %c0_i32_0 = arith.constant 0 : i32
    %c0_i32_1 = arith.constant 0 : i32
    return %c0_i32, %c0_i32_0 : i32, i32
  }
  func.func @transform_15(%arg0: i32) -> (i32, i32) {
    %c0_i32 = arith.constant 0 : i32
    %c0_i32_0 = arith.constant 0 : i32
    %c0_i32_1 = arith.constant 0 : i32
    return %c0_i32, %c0_i32_0 : i32, i32
  }
  func.func @transform_16(%arg0: i32) -> (i32, i32) {
    %c0_i32 = arith.constant 0 : i32
    %c0_i32_0 = arith.constant 0 : i32
    %c0_i32_1 = arith.constant 0 : i32
    return %c0_i32, %c0_i32_0 : i32, i32
  }
  func.func @transform_17(%arg0: i32) -> (i32, i32) {
    %c0_i32 = arith.constant 0 : i32
    %c0_i32_0 = arith.constant 0 : i32
    %c0_i32_1 = arith.constant 0 : i32
    return %c0_i32, %c0_i32_0 : i32, i32
  }
  func.func @transform_18(%arg0: i32) -> (i32, i32) {
    %c0_i32 = arith.constant 0 : i32
    %c0_i32_0 = arith.constant 0 : i32
    %c0_i32_1 = arith.constant 0 : i32
    return %c0_i32, %c0_i32_0 : i32, i32
  }
  func.func @transform_19(%arg0: i32) -> (i32, i32) {
    %c0_i32 = arith.constant 0 : i32
    %c0_i32_0 = arith.constant 0 : i32
    %c0_i32_1 = arith.constant 0 : i32
    return %c0_i32, %c0_i32_0 : i32, i32
  }
  func.func @transform_20(%arg0: i32) -> (i32, i32) {
    %c0_i32 = arith.constant 0 : i32
    %c0_i32_0 = arith.constant 0 : i32
    %c0_i32_1 = arith.constant 0 : i32
    return %c0_i32, %c0_i32_0 : i32, i32
  }
  func.func @transform_21(%arg0: i32) -> (i32, i32) {
    %c0_i32 = arith.constant 0 : i32
    %c0_i32_0 = arith.constant 0 : i32
    %c0_i32_1 = arith.constant 0 : i32
    return %c0_i32, %c0_i32_0 : i32, i32
  }
  func.func @transform_22(%arg0: i32) -> (i32, i32) {
    %c0_i32 = arith.constant 0 : i32
    %c0_i32_0 = arith.constant 0 : i32
    %c0_i32_1 = arith.constant 0 : i32
    return %c0_i32, %c0_i32_0 : i32, i32
  }
  func.func @transform_23(%arg0: i32) -> (i32, i32) {
    %c0_i32 = arith.constant 0 : i32
    %c0_i32_0 = arith.constant 0 : i32
    %c0_i32_1 = arith.constant 0 : i32
    return %c0_i32, %c0_i32_0 : i32, i32
  }
  func.func @transform_24(%arg0: i32) -> (i32, i32) {
    %c0_i32 = arith.constant 0 : i32
    %c0_i32_0 = arith.constant 0 : i32
    return %arg0, %c0_i32 : i32, i32
  }
}

</mosaic_0001>

<bundles_post_ra>
// kernel: tpu_custom_call.1
= control target key start
LH: loop header
LB: loop body
LE: loop exit
PB: predicated region body
PF: predicated region fallthrough
CT: control target
= control target key end

     0   :  { %s6984_s0 = inlined_call_operand.vmem [shape: bf16[64,32], index: 0, kind: input, shape index: {}]   ;;  %s6985_s1 = inlined_call_operand.vmem [shape: bf16[32,32], index: 1, kind: input, shape index: {}]   ;;  %s6986_s2 = inlined_call_operand.hbm [shape: f32[4,1,16], index: 2, kind: input, shape index: {}]   ;;  %s6987_s3 = inlined_call_operand.hbm [shape: f32[4,1,8], index: 3, kind: input, shape index: {}]   ;;  %s6988_s4 = inlined_call_operand.vmem [shape: bf16[32,224], index: 4, kind: input, shape index: {}]   ;;  %s6989_s5 = inlined_call_operand.hbm [shape: f32[1,224], index: 5, kind: input, shape index: {}]   ;;  %s6990_s6 = inlined_call_operand.vmem [shape: bf16[32,96], index: 6, kind: input, shape index: {}]   ;;  %s6991_s7 = inlined_call_operand.vmem [shape: f32[1,96], index: 7, kind: input, shape index: {}]   ;;  %s6992_s8 = inlined_call_operand.hbm [shape: bf16[16,32], index: 8, kind: input, shape index: {}]   ;;  %s6993_s9 = inlined_call_operand.hbm [shape: f32[1,32], index: 9, kind: input, shape index: {}]   ;;  %s6994_s10 = inlined_call_operand.vmem [shape: bf16[32,16], index: 10, kind: input, shape index: {}]   ;;  %s6995_s11 = inlined_call_operand.hbm [shape: bf16[16,32], index: 11, kind: input, shape index: {}]   ;;  %s6996_s12 = inlined_call_operand.vmem [shape: bf16[32,32], index: 12, kind: input, shape index: {}]   ;;  %s6997_s13 = inlined_call_operand.hbm [shape: f32[1,32], index: 13, kind: input, shape index: {}]   ;;  %s6998_s14 = inlined_call_operand.vmem [shape: bf16[32,32], index: 14, kind: input, shape index: {}]   ;;  %s6999_s15 = inlined_call_operand.vmem [shape: f32[1,32], index: 15, kind: input, shape index: {}]   ;;  %s7000_s16 = inlined_call_operand.vmem [shape: bf16[32,32], index: 16, kind: input, shape index: {}]   ;;  %s7001_s17 = inlined_call_operand.vmem [shape: f32[1,32], index: 17, kind: input, shape index: {}]   ;;  %s7002_s18 = inlined_call_operand.vmem [shape: bf16[32,64], index: 18, kind: input, shape index: {}]   ;;  %s7003_s19 = inlined_call_operand.vmem [shape: f32[1,64], index: 19, kind: input, shape index: {}]   ;;  %s7004_s20 = inlined_call_operand.vmem [shape: bf16[64,32], index: 20, kind: input, shape index: {}]   ;;  %s7005_s21 = inlined_call_operand.vmem [shape: f32[1,32], index: 21, kind: input, shape index: {}]   ;;  %s7006_s22 = inlined_call_operand.vmem [shape: f32[3,32], index: 22, kind: input, shape index: {}]   ;;  %s7007_s23 = inlined_call_operand.vmem [shape: f32[3,32], index: 23, kind: input, shape index: {}]   ;;  %s7008_s24 = inlined_call_operand.vmem [shape: f32[64,32], index: 24, kind: output, shape index: {}]  }
   0x1   :  { %7022 = sst [smem:[#allocation21_spill]] %s6984_s0 }
   0x2   :  { %7023 = sst [smem:[#allocation22_spill]] %s6985_s1 }
   0x3   :  { %7024 = sst [smem:[#allocation23_spill]] %s6986_s2 }
   0x4   :  { %7025 = sst [smem:[#allocation24_spill]] %s6987_s3 }
   0x5   :  { %7026 = sst [smem:[#allocation25_spill]] %s6988_s4 }
   0x6   :  { %7027 = sst [smem:[#allocation26_spill]] %s6989_s5 }
   0x7   :  { %7028 = sst [smem:[#allocation27_spill]] %s6990_s6 }
   0x8   :  { %7029 = sst [smem:[#allocation28_spill]] %s6991_s7 }
   0x9   :  { %7030 = sst [smem:[#allocation29_spill]] %s6992_s8 }
   0xa   :  { %7031 = sst [smem:[#allocation30_spill]] %s6993_s9 }
   0xb   :  { %7032 = sst [smem:[#allocation31_spill]] %s6995_s11 }
   0xc   :  { %7033 = sst [smem:[#allocation32_spill]] %s6997_s13 }
   0xd   :  { %7034 = sst [smem:[#allocation33_spill]] %s7000_s16 }
   0xe   :  { %7035 = sst [smem:[#allocation34_spill]] %s7001_s17 }
   0xf   :  { %7036 = sst [smem:[#allocation35_spill]] %s7002_s18 }
  0x10   :  { %7037 = sst [smem:[#allocation36_spill]] %s7003_s19 }
  0x11   :  { %7038 = sst [smem:[#allocation37_spill]] %s7004_s20 }
  0x12   :  { %7039 = sst [smem:[#allocation38_spill]] %s7005_s21 }
  0x13   :  { %7040 = sst [smem:[#allocation39_spill]] %s7007_s23 }
  0x14   :  { %7041 = sst [smem:[#allocation40_spill]] %s7008_s24 }
  0x15   :  { %29 = vsyncpa [#allocation6], 0 }
  0x16   :  { %31 = vsyncpa [#allocation6 + $0x1], 0 }
  0x17   :  { %32 = vsyncpa [#allocation8], 0 }
  0x18   :  { %34 = vsyncpa [#allocation8 + $0x1], 0 }
  0x19   :  { %35 = vsyncpa [#allocation11], 0 }
  0x1a   :  { %36 = vsyncpa [#allocation14], 0  ;;  %s5926_s5 = smov 0   ;;  %s5928_s26 = smov 0  }
  0x1b   :  { %s5930_s27 = smov 0   ;;  %s5932_s28 = smov 0  }
  0x1c LB: > { %s5780_s6 = smov [#allocation9]   ;;  %s5947_s29 = sadd.s32 4294967295, %s5778_s28   ;;  %s5778_s28 = sphi %s5932_s28, %s7078_s28   ;;  %s5774_s27 = sphi %s5930_s27, %s7077_s27   ;;  %s5770_s26 = sphi %s5928_s26, %s7076_s26   ;;  %s5766_s5 = sphi %s5926_s5, %s7075_s5  }
  0x1d   : > { %s613_s2 = sshll.u32 %s5780_s6, 4  ;;  %p4656_p0 = scmp.ge.s32.totalorder %s5778_s28, 1  ;;  %s614_s2 = int_to_ptr.vmem [resolvable:$true] %s613_s2 }
  0x1e   : > { %p7016_p1 = scmp.eq.s32.totalorder %s5947_s29, 0  ;;  %p597_p2 = scmp.lt.s32.totalorder %s5778_s28, 3 }
  0x1f   : > { %s5781_s7 = smov [#allocation10]   ;;  %s5782_s25 = smov [#allocation13]  }
  0x20   : > { %p5952_p3 = pnand %p4656_p0, %p597_p2  ;;  %s629_s30 = sshll.u32 %s5781_s7, 4  ;;  %s5958_s30 = int_to_ptr.vmem [resolvable:$true] %s629_s30 }
  0x21   : > { %s656_s8 = sshll.u32 %s5782_s25, 4  ;;  %s7044_s6 = sld [smem:[#allocation26_spill]]  ;;  %s5966_s8 = int_to_ptr.vmem [resolvable:$true] %s656_s8 }
  0x22   : > { %s7042_s0 = scalar_select %p5952_p3, 1, 0 }
  0x23   : > { %p5289_p4 = pneg %p5952_p3 }
  0x25   : > { %p5962_p5 = pnand %p5289_p4, %p7016_p1 }
  0x27   : > { %s5528_s24 = scalar_lea.hbm %s7044_s6, 32  ;;  %p5976_p7 = pneg %p5962_p5 }
  0x28   : > { %p5529_p6 = scmp.ne.s32.totalorder %s7044_s6, %s5528_s24  ;;  %p5535_p10 = scmp.lt.u32.totalorder %s5528_s24, %s7044_s6 }
  0x2a   : > { %p5531_p8 = pnand %p5976_p7, %p5529_p6 }
  0x2c   : > { %p5532_p9 = pneg %p5531_p8 }
  0x2e   : > { %p5537_p11 = pnand %p5535_p10, %p5532_p9 }
  0x30   : > { %5540 = shalt.err (!%p5537_p11)
}
  0x31   : > { %s5541_s4 = scalar_lea.vmem %s614_s2, 32  ;;  %p5549_p2 = scmp.lt.s32.totalorder %s614_s2, %s614_s2 }
  0x32   : > { %p5542_p12 = scmp.ne.s32.totalorder %s614_s2, %s5541_s4  ;;  %p5550_p4 = scmp.lt.s32.totalorder %s5541_s4, %s5541_s4 }
  0x34   : > { %p5544_p13 = pnand %p5542_p12, %p5976_p7  ;;  %p5551_p1 = por %p5550_p4, %p5549_p2 }
  0x36   : > { %p5545_p0 = pneg %p5544_p13 }
  0x38   : > { %p5552_p3 = pnand %p5551_p1, %p5545_p0 }
  0x3a   : > { %5555 = shalt.err (!%p5552_p3)
}
  0x3b   : > { %5292 = dma.hbm_to_vmem [thread:$0]  (!%p5962_p5), %s7044_s6, 32, %s614_s2, [#allocation8]  }
  0x3c   : > { %s7046_s1 = sld [smem:[#allocation29_spill]] }
  0x42   : > { %s5556_s25 = scalar_lea.hbm %s7046_s1, 128 }
  0x43   : > { %p5557_p6 = scmp.ne.s32.totalorder %s7046_s1, %s5556_s25  ;;  %p5563_p1 = scmp.lt.u32.totalorder %s5556_s25, %s7046_s1 }
  0x45   : > { %p5559_p8 = pnand %p5557_p6, %p5976_p7 }
  0x47   : > { %p5560_p9 = pneg %p5559_p8 }
  0x49   : > { %p5565_p3 = pnand %p5563_p1, %p5560_p9 }
  0x4b   : > { %5568 = shalt.err (!%p5565_p3)
}
  0x4c   : > { %s5569_s2 = scalar_lea.vmem %s5958_s30, 128  ;;  %p5577_p13 = scmp.lt.s32.totalorder %s5958_s30, %s5958_s30 }
  0x4d   : > { %p5570_p10 = scmp.ne.s32.totalorder %s5958_s30, %s5569_s2  ;;  %p5578_p0 = scmp.lt.s32.totalorder %s5569_s2, %s5569_s2 }
  0x4f   : > { %p5572_p11 = pnand %p5570_p10, %p5976_p7  ;;  %p5579_p2 = por %p5578_p0, %p5577_p13 }
  0x51   : > { %p5573_p12 = pneg %p5572_p11 }
  0x53   : > { %p5580_p4 = pnand %p5579_p2, %p5573_p12 }
  0x55   : > { %5583 = shalt.err (!%p5580_p4)
}
  0x56   : > { %s5783_s17 = smov 64   ;;  %s5784_s16 = smov 4  }
  0x57   : > { %5295 = dma.hbm_to_vmem [thread:$0]  (!%p5962_p5), %s7046_s1, 128, %s5958_s30, [#allocation11], %s5783_s17, %s5783_s17, %s5784_s16  }
  0x58   : > { %s7047_s11 = sld [smem:[#allocation31_spill]] }
  0x5e   : > { %s5584_s24 = scalar_lea.hbm %s7047_s11, 128 }
  0x5f   : > { %p5585_p6 = scmp.ne.s32.totalorder %s7047_s11, %s5584_s24  ;;  %p5591_p1 = scmp.lt.u32.totalorder %s5584_s24, %s7047_s11 }
  0x61   : > { %p5587_p8 = pnand %p5585_p6, %p5976_p7 }
  0x63   : > { %p5588_p9 = pneg %p5587_p8 }
  0x65   : > { %p5593_p3 = pnand %p5591_p1, %p5588_p9 }
  0x67   : > { %5596 = shalt.err (!%p5593_p3)
}
  0x68   : > { %s5597_s30 = scalar_lea.vmem %s5966_s8, 128  ;;  %p5605_p13 = scmp.lt.s32.totalorder %s5966_s8, %s5966_s8 }
  0x69   : > { %p5598_p10 = scmp.ne.s32.totalorder %s5966_s8, %s5597_s30  ;;  %p5606_p0 = scmp.lt.s32.totalorder %s5597_s30, %s5597_s30 }
  0x6b   : > { %p5600_p11 = pnand %p5598_p10, %p5976_p7  ;;  %p5607_p2 = por %p5606_p0, %p5605_p13 }
  0x6d   : > { %p5601_p12 = pneg %p5600_p11 }
  0x6f   : > { %p5608_p4 = pnand %p5607_p2, %p5601_p12 }
  0x71   : > { %5611 = shalt.err (!%p5608_p4)
}
  0x72   : > { %5301 = dma.hbm_to_vmem [thread:$0]  (!%p5962_p5), %s7047_s11, 128, %s5966_s8, [#allocation14], %s5783_s17, %s5783_s17, %s5784_s16  }
  0x73   : > { %s5785_s19 = smov [#allocation12]   ;;  %s5786_s20 = smov [#allocation15]  }
  0x74   : > { %s643_s21 = sshll.u32 %s5785_s19, 4  ;;  %s673_s24 = sshll.u32 %s5786_s20, 4  ;;  %s644_s21 = int_to_ptr.vmem [resolvable:$true] %s643_s21  ;;  %s674_s24 = int_to_ptr.vmem [resolvable:$true] %s673_s24 }
  0x75   : > { %s7048_s9 = sld [smem:[#allocation30_spill]] }
  0x7b   : > { %s5612_s2 = scalar_lea.hbm %s7048_s9, 16 }
  0x7c   : > { %p5613_p6 = scmp.ne.s32.totalorder %s7048_s9, %s5612_s2  ;;  %p5619_p1 = scmp.lt.u32.totalorder %s5612_s2, %s7048_s9 }
  0x7e   : > { %p5615_p8 = pnand %p5613_p6, %p5976_p7 }
  0x80   : > { %p5616_p9 = pneg %p5615_p8 }
  0x82   : > { %p5621_p3 = pnand %p5619_p1, %p5616_p9 }
  0x84   : > { %5624 = shalt.err (!%p5621_p3)
}
  0x85   : > { %s5625_s8 = scalar_lea.vmem %s644_s21, 16  ;;  %s5632_s17 = scalar_lea.vmem %s644_s21, 32 }
  0x86   : > { %p5626_p10 = scmp.ne.s32.totalorder %s644_s21, %s5625_s8  ;;  %p5633_p13 = scmp.lt.s32.totalorder %s644_s21, %s644_s21 }
  0x87   : > { %p5634_p0 = scmp.lt.s32.totalorder %s5632_s17, %s5625_s8 }
  0x88   : > { %p5628_p11 = pnand %p5626_p10, %p5976_p7 }
  0x89   : > { %p5635_p2 = por %p5634_p0, %p5633_p13 }
  0x8a   : > { %p5629_p12 = pneg %p5628_p11 }
  0x8c   : > { %p5636_p4 = pnand %p5635_p2, %p5629_p12 }
  0x8e   : > { %5639 = shalt.err (!%p5636_p4)
}
  0x8f   : > { %5298 = dma.hbm_to_vmem [thread:$0]  (!%p5962_p5), %s7048_s9, 16, %s644_s21, [#allocation11]  }
  0x90   : > { %s7049_s13 = sld [smem:[#allocation32_spill]] }
  0x96   : > { %s5640_s19 = scalar_lea.hbm %s7049_s13, 16 }
  0x97   : > { %p5641_p6 = scmp.ne.s32.totalorder %s7049_s13, %s5640_s19  ;;  %p5647_p1 = scmp.lt.u32.totalorder %s5640_s19, %s7049_s13 }
  0x99   : > { %p5643_p8 = pnand %p5641_p6, %p5976_p7 }
  0x9b   : > { %p5644_p9 = pneg %p5643_p8 }
  0x9d   : > { %p5649_p3 = pnand %p5647_p1, %p5644_p9 }
  0x9f   : > { %5652 = shalt.err (!%p5649_p3)
}
  0xa0   : > { %s5653_s30 = scalar_lea.vmem %s674_s24, 16  ;;  %s5660_s21 = scalar_lea.vmem %s674_s24, 32 }
  0xa1   : > { %p5654_p10 = scmp.ne.s32.totalorder %s674_s24, %s5653_s30  ;;  %p5661_p13 = scmp.lt.s32.totalorder %s674_s24, %s674_s24 }
  0xa2   : > { %p5662_p0 = scmp.lt.s32.totalorder %s5660_s21, %s5653_s30 }
  0xa3   : > { %p5656_p11 = pnand %p5654_p10, %p5976_p7 }
  0xa4   : > { %p5663_p2 = por %p5662_p0, %p5661_p13 }
  0xa5   : > { %p5657_p12 = pneg %p5656_p11 }
  0xa7   : > { %p5664_p4 = pnand %p5663_p2, %p5657_p12 }
  0xa9   : > { %5667 = shalt.err (!%p5664_p4)
}
  0xaa   : > { %5304 = dma.hbm_to_vmem [thread:$0]  (!%p5962_p5), %s7049_s13, 16, %s674_s24, [#allocation14]  }
  0xab   : > { %s6075_s7 = sadd.s32 1, %s5778_s28   ;;  %s101_s17 = sadd.s32 1, %s5774_s27 }
  0xac   : > { %s98_s3 = ssub.s32 %s5778_s28, %s6075_s7  ;;  %p108_p6 = scmp.ne.s32.totalorder %s5774_s27, %s5770_s26 }
  0xad   : > { %p99_p7 = scmp.eq.s32.totalorder %s98_s3, 0  ;;  %p109_p8 = scmp.eq.s32.totalorder %s5778_s28, 0 }
  0xae   : > { %p114_p9 = scmp.ne.s32.totalorder %s5770_s26, %s5766_s5  ;;  %p7050_p3 = scmp.eq.s32.totalorder %s5947_s29, 0 }
  0xaf   : > { %s6086_s1 = scalar_select %p99_p7, %s5774_s27, %s101_s17  }
  0xb0   : > { %p110_p1 = por %p109_p8, %p108_p6  ;;  %p6090_p10 = por %p7050_p3, %p114_p9 }
  0xb1   : > { %p5317_p11 = scmp.lt.s32.totalorder %s5778_s28, 2  ;;  %s732_s23 = sand.u32 1, %s5774_s27  }
  0xb2   : > { %s6096_s24 = sshll.u32 %s732_s23, 1  ;;  %s4788_s18 = sshll.u32 %s5778_s28, 5 }
  0xb3   : > { %s7052_s25 = sld [smem:[#allocation23_spill]]  ;;  %s736_s5 = scalar_lea.vmem [#allocation5], %s6096_s24 }
  0xb4   : > { %s743_s2 = sshll.u32 %s736_s5, 4  ;;  %p6109_p5 = pnand %p5317_p11, %p110_p1  ;;  %s6107_s2 = int_to_ptr.vmem [resolvable:$true] %s743_s2 }
  0xb5   : > { %s6113_s21 = scalar_lea.sflag [#allocation6], %s732_s23 }
  0xb6   : > { %p5670_p13 = pneg %p6109_p5 }
  0xb9   : > { %s6104_s4 = scalar_lea.hbm %s7052_s25, %s4788_s18  ;;  %s5673_s17 = scalar_lea.hbm %s7052_s25, 64 }
  0xba   : > { %s5668_s6 = scalar_lea.hbm %s6104_s4, 32  ;;  %p5674_p4 = scmp.lt.u32.totalorder %s6104_s4, %s7052_s25 }
  0xbb   : > { %p5669_p12 = scmp.ne.s32.totalorder %s6104_s4, %s5668_s6  ;;  %p5675_p7 = scmp.lt.u32.totalorder %s5673_s17, %s5668_s6 }
  0xbc   : > { %p5677_p8 = scmp.lt.u32.totalorder %s5668_s6, %s6104_s4 }
  0xbd   : > { %p5671_p0 = pnand %p5670_p13, %p5669_p12  ;;  %p5676_p6 = por %p5675_p7, %p5674_p4 }
  0xbf   : > { %p5672_p2 = pneg %p5671_p0  ;;  %p5678_p9 = por %p5677_p8, %p5676_p6 }
  0xc1   : > { %p5679_p1 = pnand %p5678_p9, %p5672_p2 }
  0xc3   : > { %5682 = shalt.err (!%p5679_p1)
}
  0xc4   : > { %s5683_s23 = scalar_lea.vmem %s6107_s2, 32  ;;  %s5787_s5 = smov [#allocation5]  }
  0xc5   : > { %p5684_p3 = scmp.ne.s32.totalorder %s6107_s2, %s5683_s23  ;;  %s5688_s8 = sshll.u32 %s5787_s5, 4  ;;  %s5689_s8 = int_to_ptr.vmem [resolvable:$false] %s5688_s8 }
  0xc6   : > { %s5690_s3 = scalar_lea.vmem %s5689_s8, 64  ;;  %p5691_p0 = scmp.lt.s32.totalorder %s6107_s2, %s5689_s8 }
  0xc7   : > { %p5686_p11 = pnand %p5684_p3, %p5670_p13  ;;  %p5692_p4 = scmp.lt.s32.totalorder %s5690_s3, %s5683_s23 }
  0xc9   : > { %p5687_p12 = pneg %p5686_p11  ;;  %p5693_p7 = por %p5692_p4, %p5691_p0 }
  0xcb   : > { %p5694_p6 = pnand %p5693_p7, %p5687_p12 }
  0xcd   : > { %5697 = shalt.err (!%p5694_p6)
}
  0xce   : > { %s5788_s6 = smov 16   ;;  %s5789_s17 = smov 1  }
  0xcf   : > { %5308 = dma.hbm_to_vmem [thread:$0]  (!%p6109_p5), %s6104_s4, 32, %s6107_s2, %s6113_s21, %s5788_s6, %s5788_s6, %s5789_s17  }
  0xd0   : > { %s7054_s23 = sld [smem:[#allocation24_spill]]  ;;  %s757_s8 = scalar_lea.vmem [#allocation7], %s6096_s24 }
  0xd1   : > { %s764_s3 = sshll.u32 %s757_s8, 4  ;;  %s753_s9 = sand.u32 1, %s5778_s28   ;;  %s6152_s3 = int_to_ptr.vmem [resolvable:$true] %s764_s3 }
  0xd2   : > { %s6155_s11 = scalar_lea.sflag [#allocation8], %s753_s9 }
  0xd6   : > { %s6149_s5 = scalar_lea.hbm %s7054_s23, %s4788_s18  ;;  %s5703_s2 = scalar_lea.hbm %s7054_s23, 64 }
  0xd7   : > { %s5698_s13 = scalar_lea.hbm %s6149_s5, 32  ;;  %p5704_p1 = scmp.lt.u32.totalorder %s6149_s5, %s7054_s23 }
  0xd8   : > { %p5699_p2 = scmp.ne.s32.totalorder %s6149_s5, %s5698_s13  ;;  %p5705_p3 = scmp.lt.u32.totalorder %s5703_s2, %s5698_s13 }
  0xd9   : > { %p5707_p12 = scmp.lt.u32.totalorder %s5698_s13, %s6149_s5 }
  0xda   : > { %p5701_p8 = pnand %p5699_p2, %p5670_p13  ;;  %p5706_p11 = por %p5705_p3, %p5704_p1 }
  0xdc   : > { %p5702_p9 = pneg %p5701_p8  ;;  %p5708_p0 = por %p5707_p12, %p5706_p11 }
  0xde   : > { %p5709_p4 = pnand %p5708_p0, %p5702_p9 }
  0xe0   : > { %5712 = shalt.err (!%p5709_p4)
}
  0xe1   : > { %s5713_s9 = scalar_lea.vmem %s6152_s3, 32  ;;  %s5790_s28 = smov [#allocation7]  }
  0xe2   : > { %p5714_p7 = scmp.ne.s32.totalorder %s6152_s3, %s5713_s9  ;;  %s5718_s24 = sshll.u32 %s5790_s28, 4  ;;  %s5719_s24 = int_to_ptr.vmem [resolvable:$false] %s5718_s24 }
  0xe3   : > { %s5720_s20 = scalar_lea.vmem %s5719_s24, 64  ;;  %p5721_p8 = scmp.lt.s32.totalorder %s6152_s3, %s5719_s24 }
  0xe4   : > { %p5716_p6 = pnand %p5714_p7, %p5670_p13  ;;  %p5722_p1 = scmp.lt.s32.totalorder %s5720_s20, %s5713_s9 }
  0xe6   : > { %p5717_p2 = pneg %p5716_p6  ;;  %p5723_p3 = por %p5722_p1, %p5721_p8 }
  0xe8   : > { %p5724_p11 = pnand %p5723_p3, %p5717_p2 }
  0xea   : > { %5727 = shalt.err (!%p5724_p11)
}
  0xeb   : > { %5311 = dma.hbm_to_vmem [thread:$0]  (!%p6109_p5), %s6149_s5, 32, %s6152_s3, %s6155_s11, %s5788_s6, %s5788_s6, %s5789_s17  }
  0xec   : > { %p7055_p13 = scmp.ne.s32.totalorder %s7042_s0, 0 }
  0xed   : > { %s778_s13 = sand.u32 (!%p7055_p13), 1, %s5770_s26  }
  0xee   : > { %776 = sbr.rel (%p7055_p13) target bundleno = 8012 (0x1f4c), region = 116  ;;  %s6187_s8 = sshll.u32 (!%p7055_p13), %s778_s13, 1 }
  0xef   : > { %s779_s4 = scalar_lea.sflag (!%p7055_p13), [#allocation6], %s778_s13  ;;  %s782_s18 = scalar_lea.vmem (!%p7055_p13), [#allocation5], %s6187_s8 }
  0xf5   : > { %5745 = dma.done.wait (%p6090_p10), %s779_s4, 32  }
  0xf6   : > { %5747 = vsyncadd (%p6090_p10), %s779_s4, 4294967264  ;;  %s787_s11 = sand.u32 1, %s5947_s29   ;;  %s791_s0 = scalar_lea.vmem [#allocation7], %s6187_s8 }
  0xf7   : > { %s788_s30 = scalar_lea.sflag [#allocation8], %s787_s11 }
  0xf8   : > { %5749 = dma.done.wait (%p6090_p10), %s788_s30, 32  }
  0xf9   : > { %5751 = vsyncadd (%p6090_p10), %s788_s30, 4294967264  ;;  %p7056_p5 = scmp.eq.s32.totalorder %s5947_s29, 0 }
  0xfb   : > { %5753 = dma.done.wait (%p7056_p5), [#allocation8], 32   ;;  %p7057_p9 = pmov %p7056_p5 }
  0xfc   : > { %p7058_p12 = pmov %p7056_p5 }
  0xfd   : > { %5755 = vsyncadd (%p7057_p9), [#allocation8], 4294967264 }
  0xfe   : > { %5757 = dma.done.wait (%p7058_p12), [#allocation11], 144   ;;  %p7059_p0 = pmov %p7056_p5 }
 0x100   : > { %5759 = vsyncadd (%p7059_p0), [#allocation11], 4294967152  ;;  %p7060_p4 = pmov %p7059_p0 }
 0x101   : > { %p7061_p7 = pmov %p7059_p0 }
 0x102   : > { %5761 = dma.done.wait (%p7060_p4), [#allocation14], 144  }
 0x103   : > { %5763 = vsyncadd (%p7061_p7), [#allocation14], 4294967152  ;;  %s4677_s16 = sshll.u32 %s5947_s29, 2  ;;  %v5791_v0 = vmov 0   ;;  %s7062_s3 = sld [smem:[#allocation25_spill]]  ;;  %vm976_vm0 = vcmask 261120   ;;  %v936_v10 = vlaneseq }
 0x104   : > { %1015 = vmatprep.mubr.bf16.mxu0 %v5791_v0  ;;  %p892_p10 = scmp.lt.s32.totalorder %s4677_s16, 7  ;;  %s7063_s19 = sld [smem:[#allocation21_spill]]  ;;  %v5792_v7 = vmov 0.0   ;;  %vm5793_vm1 = vmmov 0   ;;  %v934_v13 = vld [vmem:[#allocation9] sm:$0x3] }
 0x105   : > { %s7064_s17 = sld [smem:[#allocation27_spill]]  ;;  %s4679_s5 = sshll.u32 %s5947_s29, 1  ;;  %4917 = vmatprep.subr.bf16.mxu1 %v5792_v7  ;;  %4921 = vmatprep.mubr.msk.bf16.mxu1 %vm5793_vm1, %v5792_v7  ;;  %v6251_v11 = vshrl.u32 %v936_v10, 7  ;;  %v6268_v18 = vld [vmem:[%s6994_s10] sm:$0xff]   ;;  %vm1129_vm2 = vcmask 130048   ;;  %v6290_v37 = vld [vmem:[%s6994_s10 + $0x8] sm:$0xff]  }
 0x106   : > { %s7080_s16 = smov (!%p892_p10, %s4677_s16), 7  ;;  %p898_p6 = scmp.lt.s32.totalorder %s4679_s5, 3  ;;  %v5387_v45 = vld [vmem:[#allocation10] sm:$0xff]   ;;  %vm1216_vm3 = vcmask 1040384   ;;  %vm1490_vm4 = vcmask 261248   ;;  %vm3556_vm13 = vcmask 64512  }
 0x107   : > { %s4678_s6 = sshll.u32 %s7080_s16, 2  ;;  %s7065_s24 = sld [smem:[#allocation22_spill]]  ;;  %v6254_v12 = vsub.s32 0, %v6251_v11  ;;  %v6257_v14 = vsub.s32 1, %v6251_v11  ;;  %vm3585_vm14 = vcmask 1043456  }
 0x108   : > { %s7082_s5 = smov (!%p898_p6, %s4679_s5), 3  ;;  %s5794_s11 = smov 32  }
 0x109   : > { %v5374_v1 = vld [vmem:[%s7062_s3 + $0x4] ss:$8 sps:$4 sm:$0xff]   ;;  %v5376_v2 = vld [vmem:[%s7062_s3] ss:$8 sps:$4 sm:$0xff]   ;;  %v5377_v3 = vld [vmem:[%s7062_s3 + $0x14] ss:$8 sps:$4 sm:$0xff]   ;;  %v6260_v15 = vrot.slane %v934_v13, %v6254_v12  ;;  %v6263_v17 = vrot.slane %v934_v13, %v6257_v14 }
 0x10a   : > { %s6222_s9 = scalar_lea.vmem %s7063_s19, %s4678_s6  ;;  %983 = vmatprep.subr.bf16.mxu0 %v5374_v1  ;;  %v5379_v4 = vld [vmem:[%s7062_s3 + $0x10] ss:$8 sps:$4 sm:$0xff]   ;;  %s4680_s19 = sshll.u32 %s7082_s5, 2 }
 0x10b   : > { %984 = vmatpush1.bf16.msra.mxu0 %v5376_v2  ;;  %v912_v5 = vld [vmem:[%s6222_s9] sm:$0xff]   ;;  %v5382_v8 = vld [vmem:[%s7064_s17 + $0x8] sm:$0xff]   ;;  %s7066_s5 = sld [smem:[#allocation28_spill]]  ;;  %s5796_s29 = smov 112  }
 0x10c   : > { %985 = vmatprep.subr.bf16.mxu0 %v5377_v3  ;;  %v5381_v6 = vld [vmem:[%s7064_s17] sm:$0xff]   ;;  %v914_v38 = vld [vmem:[%s6222_s9 + $0x8] sm:$0xff]   ;;  %s5797_s28 = smov 64   ;;  %s5800_s13 = smov 16  }
 0x10d   : > { %4918 = vmatpush3.bf16.msra.mxu1 %v5381_v6  ;;  %s901_s20 = scalar_lea.vmem %s7065_s24, %s4680_s19  ;;  %s5795_s19 = smov 96  }
 0x10e   : > { %4919 = vmatprep.subr.bf16.mxu1 %v5792_v7  ;;  %v5383_v9 = vld [vmem:[%s901_s20] sm:$0xff]   ;;  %s5798_s24 = smov 48   ;;  %s5799_s20 = smov 80  }
 0x10f   : > { %986 = vmatpush1.bf16.msra.mxu0 %v5379_v4  ;;  %s7067_s4 = sld [smem:[#allocation39_spill]]  ;;  %s7070_s6 = sld [smem:[#allocation35_spill]] }
 0x110   : > { %4931 = vmatprep.subr.bf16.mxu0 %v5792_v7  ;;  %s7071_s21 = sld [smem:[#allocation37_spill]]  ;;  %s7074_s8 = sld [smem:[#allocation40_spill]] }
 0x111   : > { %4920 = vmatpush3.bf16.msra.mxu1 %v5382_v8  ;;  %v4691_v28 = vld [vmem:[%s7066_s5] ss:$0 sm:$0xff]  ;;  %s4682_s5 = sshll.u32 %s7080_s16, 3 }
 0x112   : > { %4689 = vmatmul.mubr.msk.bf16.vlgmr.msra.gmra.mrb[0].mxu0 %vm976_vm0, %v912_v5 }
 0x113   : > { %1025 = vmatprep.mubr.bf16.mxu0 %v5791_v0  ;;  %4932 = vmatpush3.bf16.msra.mxu0 %v5387_v45 }
 0x114   : > { %4922 = vmatmul.mubr.msk.bf16.vlgmr.msra.gmra.mrb[0].mxu1 %vm976_vm0, %v5383_v9  ;;  %4943 = vmatprep.subr.bf16.mxu0 %v5792_v7 }
 0x115   : > { %4927 = vmatprep.mubr.msk.bf16.mxu1 %vm1129_vm2, %v6268_v18 }
 0x11a   : > { %4690 = vmatmul.mubr.msk.bf16.gmra.mrb[4].mxu0 %vm976_vm0, %v914_v38 }
 0x11b   : > { %4933 = vmatprep.mubr.msk.bf16.mxu0 %vm5793_vm1, %v5792_v7 }
 0x1e5   : > { %v1017_v16 = vpop.f32.mrb[0].mxu0 }
 0x1e6   : > { %v1019_v19 = vpop.f32.mrb[1].mxu0  ;;  %v1018_v21 = vadd.f32 %v1017_v16, %v6260_v15 }
 0x1e7   : > { %v1021_v20 = vpop.f32.mrb[2].mxu0  ;;  %v1020_v24 = vadd.f32 %v1019_v19, %v6263_v17  ;;  %v1101_v29 = vpop.f32.mrb[0].mxu1 }
 0x1e8   : > { %v1022_v22 = vadd.f32 %v1021_v20, %v6260_v15  ;;  %v1023_v23 = vpop.f32.mrb[3].mxu0  ;;  %v4923_v30 = vpop.f32.mrb[1].mxu1  ;;  %v6301_v39 = vadd.f32 %v4691_v28, %v1101_v29  ;;  %v6372_v29 = vld [vmem:[#allocation12] ss:$0 sm:$0xff] }
 0x1e9   : > { %v1024_v25 = vadd.f32 %v1023_v23, %v6263_v17  ;;  %v1104_v31 = vpop.f32.mrb[2].mxu1 }
 0x1ea   : > { %v6276_v26 = vpack.c.bf16 %v1022_v22, %v1018_v21  ;;  %v6284_v32 = vadd.f32 %v4691_v28, %v1104_v31  ;;  %v4924_v33 = vpop.f32.mrb[3].mxu1  ;;  %v1203_v40 = vsel %vm976_vm0, %v6301_v39, 0.0 }
 0x1eb   : > { %v1109_v27 = vpack.c.bf16 %v1024_v25, %v1020_v24  ;;  %v1204_v41 = vrot.slane %v1203_v40, 4 }
 0x1ec   : > { %1122 = vrot.lane.b32.xlu0 %v6276_v26, %s5794_s11 }
 0x1ed   : > { %v1205_v42 = vadd.f32 %v1204_v41, %v1203_v40  ;;  %v1027_v2 = vpop.f32.mrb[4].mxu0 }
 0x1ee   : > { %v1028_v3 = vadd.f32 %v1027_v2, %v6260_v15  ;;  %v1029_v4 = vpop.f32.mrb[5].mxu0 }
 0x1ef   : > { %v1206_v43 = vrot.slane %v1205_v42, 2  ;;  %v6324_v5 = vadd.f32 %v1029_v4, %v6263_v17  ;;  %v1031_v6 = vpop.f32.mrb[6].mxu0 }
 0x1f0   : > { %1124 = vrot.lane.b32.xlu0 %v1109_v27, %s5794_s11  ;;  %v1032_v8 = vadd.f32 %v1031_v6, %v6260_v15  ;;  %v1033_v9 = vpop.f32.mrb[7].mxu0 }
 0x1f1   : > { %v1207_v44 = vadd.f32 %v1206_v43, %v1205_v42  ;;  %v6328_v10 = vadd.f32 %v1033_v9, %v6263_v17 }
 0x1f2   : > { %v6330_v13 = vpack.c.bf16 %v1032_v8, %v1028_v3 }
 0x1f3   : > { %v1208_v46 = vrot.slane %v1207_v44, 1  ;;  %v2185_v16 = vpack.c.bf16 %v6328_v10, %v6324_v5 }
 0x1f5   : > { %v1209_v47 = vadd.f32 %v1208_v46, %v1207_v44 }
 0x1f7   : > { %v1211_v50 = vmul.f32 0.125, %v1209_v47 }
 0x25e   : > { %v1123_v34 = vpop.permute.xlu0 %1122 }
 0x262   : > { %v1125_v35 = vpop.permute.xlu0 %1124 }
 0x263   : > { %v1127_v36 = vsel %vm976_vm0, %v1123_v34, %v1125_v35 }
 0x264   : > { %4925 = vmatprep.subr.bf16.mxu1 %v1127_v36 }
 0x265   : > { %4926 = vmatpush3.bf16.msra.mxu1 %v1127_v36 }
 0x266   : > { %4937 = vmatprep.subr.bf16.mxu1 %v5792_v7 }
 0x268   : > { %4928 = vmatmul.mubr.msk.bf16.vlgmr.msra.gmra.mrb[4].mxu1 %vm1129_vm2, %v6290_v37 }
 0x269   : > { %4939 = vmatprep.mubr.msk.bf16.mxu1 %vm5793_vm1, %v5792_v7 }
 0x33b   : > { %v4929_v48 = vpop.f32.mrb[4].mxu1 }
 0x33c   : > { %1195 = vrot.lane.b32.xlu0 %v4929_v48, %s5794_s11  ;;  %1187 = vrot.lane.b32.xlu1 %v4929_v48, %s5795_s19  ;;  %v1170_v49 = vpop.f32.mrb[5].mxu1 }
 0x33d   : > { %v4930_v51 = vpop.f32.mrb[6].mxu1 }
 0x33e   : > { %v1173_v52 = vpop.f32.mrb[7].mxu1 }
 0x340   : > { %1213 = vrot.lane.b32.xlu0 %v1211_v50, %s5796_s29  ;;  %1189 = vrot.lane.b32.xlu1 %v4930_v51, %s5795_s19 }
 0x344   : > { %1197 = vrot.lane.b32.xlu1 %v4930_v51, %s5794_s11 }
 0x3ae   : > { %v1196_v53 = vpop.permute.xlu0 %1195  ;;  %v1188_v54 = vpop.permute.xlu1 %1187 }
 0x3af   : > { %v1193_v57 = vsub.f32 %v1170_v49, %v1188_v54  ;;  %v1201_v63 = vadd.f32 %v1196_v53, %v1170_v49 }
 0x3b2   : > { %v1214_v55 = vpop.permute.xlu0 %1213  ;;  %v1190_v56 = vpop.permute.xlu1 %1189 }
 0x3b3   : > { %v1217_v58 = vsel %vm1216_vm3, %v1211_v50, %v1214_v55  ;;  %v1194_v59 = vsub.f32 %v1173_v52, %v1190_v56 }
 0x3b4   : > { %v1218_v60 = vpack.c.bf16 %v1217_v58, %v1217_v58 }
 0x3b5   : > { %v1283_v61 = vpack.c.bf16 %v1194_v59, %v1193_v57 }
 0x3b6   : > { %4934 = vmatmul.mubr.msk.bf16.vlgmr.msra.gmra.mrb[8].mxu0 %vm1129_vm2, %v1218_v60  ;;  %v1198_v62 = vpop.permute.xlu1 %1197 }
 0x3b7   : > { %v1202_v0 = vadd.f32 %v1198_v62, %v1173_v52  ;;  %1286 = vrot.lane.b32.xlu1 %v1283_v61, %s5797_s28  ;;  %4945 = vmatprep.mubr.msk.bf16.mxu0 %vm5793_vm1, %v5792_v7 }
 0x3b9   : > { %v1284_v1 = vpack.c.bf16 %v1202_v0, %v1201_v63 }
 0x3bb   : > { %1336 = vrot.lane.b32.xlu0 %v1284_v1, %s5795_s19  ;;  %1338 = vrot.lane.b32.xlu1 %v1284_v1, %s5794_s11 }
 0x3bf   : > { %1501 = vrot.lane.b32.xlu0 %v1283_v61, %s5798_s24  ;;  %1550 = vrot.lane.b32.xlu1 %v1284_v1, %s5799_s20 }
 0x3c3   : > { %1552 = vrot.lane.b32.xlu0 %v1284_v1, %s5800_s13  ;;  %1499 = vrot.lane.b32.xlu1 %v1283_v61, %s5796_s29 }
 0x429   : > { %v1287_v19 = vpop.permute.xlu1 %1286 }
 0x42a   : > { %v1292_v20 = vsel %vm1129_vm2, %v1287_v19, 0 }
 0x42b   : > { %4938 = vmatpush3.bf16.xpose.msra.mxu1 %v1292_v20 }
 0x42c   : > { %4949 = vmatprep.subr.bf16.mxu1 %v5792_v7 }
 0x42d   : > { %v1337_v21 = vpop.permute.xlu0 %1336  ;;  %v1339_v22 = vpop.permute.xlu1 %1338 }
 0x42e   : > { %v1344_v23 = vsel %vm1129_vm2, %v1339_v22, 0 }
 0x42f   : > { %4944 = vmatpush3.bf16.xpose.msra.mxu0 %v1344_v23 }
 0x430   : > { %4961 = vmatprep.subr.bf16.mxu0 %v5792_v7 }
 0x431   : > { %v1502_v15 = vpop.permute.xlu0 %1501  ;;  %v1551_v24 = vpop.permute.xlu1 %1550 }
 0x432   : > { %4940 = vmatmul.mubr.msk.bf16.vlgmr.msra.gmra.mrb[8].mxu1 %vm1129_vm2, %v1283_v61  ;;  %v1507_v17 = vsel %vm1129_vm2, %v1502_v15, 0 }
 0x433   : > { %4950 = vmatpush3.bf16.xpose.msra.mxu1 %v1292_v20  ;;  %4951 = vmatprep.mubr.msk.bf16.mxu1 %vm5793_vm1, %v5792_v7 }
 0x434   : > { %4955 = vmatprep.subr.bf16.mxu1 %v5792_v7 }
 0x435   : > { %v1553_v25 = vpop.permute.xlu0 %1552  ;;  %v1500_v27 = vpop.permute.xlu1 %1499 }
 0x436   : > { %4946 = vmatmul.mubr.msk.bf16.vlgmr.msra.gmra.mrb[12].mxu0 %vm1129_vm2, %v1337_v21  ;;  %v1558_v28 = vsel %vm1129_vm2, %v1553_v25, 0 }
 0x437   : > { %4962 = vmatpush3.bf16.xpose.msra.mxu0 %v1507_v17  ;;  %4963 = vmatprep.mubr.msk.bf16.mxu0 %vm5793_vm1, %v5792_v7 }
 0x438   : > { %4967 = vmatprep.subr.bf16.mxu0 %v5792_v7 }
 0x43a   : > { %4952 = vmatmul.mubr.msk.bf16.vlgmr.msra.gmra.mrb[12].mxu1 %vm1129_vm2, %v1337_v21 }
 0x43b   : > { %4956 = vmatpush3.bf16.xpose.msra.mxu1 %v1344_v23  ;;  %4957 = vmatprep.mubr.msk.bf16.mxu1 %vm5793_vm1, %v5792_v7 }
 0x43c   : > { %4973 = vmatprep.subr.bf16.mxu1 %v5792_v7 }
 0x43e   : > { %4964 = vmatmul.mubr.msk.bf16.vlgmr.msra.gmra.mrb[16].mxu0 %vm1129_vm2, %v1500_v27 }
 0x43f   : > { %4968 = vmatpush3.bf16.xpose.msra.mxu0 %v1558_v28  ;;  %4969 = vmatprep.mubr.msk.bf16.mxu0 %vm5793_vm1, %v5792_v7 }
 0x440   : > { %4985 = vmatprep.subr.bf16.mxu0 %v6268_v18 }
 0x446   : > { %4958 = vmatmul.mubr.msk.bf16.vlgmr.msra.gmra.mrb[12].mxu1 %vm1129_vm2, %v1283_v61  ;;  %4970 = vmatmul.mubr.msk.bf16.vlgmr.msra.gmra.mrb[20].mxu0 %vm1129_vm2, %v1551_v24 }
 0x447   : > { %4974 = vmatpush3.bf16.xpose.msra.mxu1 %v1507_v17  ;;  %4975 = vmatprep.mubr.msk.bf16.mxu1 %vm5793_vm1, %v5792_v7 }
 0x448   : > { %4979 = vmatprep.subr.bf16.mxu1 %v5792_v7  ;;  %4986 = vmatpush3.bf16.msra.mxu0 %v6268_v18 }
 0x449   : > { %4987 = vmatprep.subr.bf16.mxu0 %v6290_v37 }
 0x44c   : > { %4988 = vmatpush3.bf16.msra.mxu0 %v6290_v37 }
 0x44d   : > { %4993 = vmatprep.subr.bf16.mxu0 %v6268_v18 }
 0x44e   : > { %4976 = vmatmul.mubr.msk.bf16.vlgmr.msra.gmra.mrb[16].mxu1 %vm1129_vm2, %v1551_v24 }
 0x44f   : > { %4980 = vmatpush3.bf16.xpose.msra.mxu1 %v1558_v28  ;;  %4981 = vmatprep.mubr.msk.bf16.mxu1 %vm5793_vm1, %v5792_v7 }
 0x450   : > { %5001 = vmatprep.subr.bf16.mxu1 %v5792_v7 }
 0x45a   : > { %4982 = vmatmul.mubr.msk.bf16.vlgmr.msra.gmra.mrb[16].mxu1 %vm1129_vm2, %v1500_v27 }
 0x45b   : > { %5003 = vmatprep.mubr.msk.bf16.mxu1 %vm5793_vm1, %v5792_v7 }
 0x489   : > { %v1271_v30 = vpop.f32.mrb[8].mxu0 }
 0x48a   : > { %v1272_v31 = vadd.f32 %v6372_v29, %v1271_v30  ;;  %v4935_v33 = vpop.f32.mrb[9].mxu0 }
 0x48b   : > { %v1274_v34 = vpop.f32.mrb[10].mxu0 }
 0x48c   : > { %v4703_v35 = vmul.f32 -1.442695, %v1272_v31  ;;  %v4936_v36 = vpop.f32.mrb[11].mxu0 }
 0x48e   : > { %5404 = vpow2.f32 %v4703_v35 }
 0x498   : > { %v5405_v38 = vpop.eup %5404 }
 0x499   : > { %v1280_v40 = vadd.f32 1.0, %v5405_v38 }
 0x49b   : > { %5406 = vrcp.f32 %v1280_v40 }
 0x4a5   : > { %v5407_v41 = vpop.eup %5406 }
 0x4a6   : > { %v6376_v42 = vrot.slane %v5407_v41, %v6254_v12  ;;  %v6379_v43 = vrot.slane %v5407_v41, %v6257_v14 }
 0x4a8   : > { %1476 = vrot.lane.b32.xlu0 %v6376_v42, %s5796_s29  ;;  %1690 = vrot.lane.b32.xlu1 %v6379_v43, %s5796_s29 }
 0x505   : > { %v1328_v44 = vpop.f32.mrb[8].mxu1 }
 0x506   : > { %v4941_v45 = vpop.f32.mrb[9].mxu1 }
 0x507   : > { %v1331_v46 = vpop.f32.mrb[10].mxu1 }
 0x508   : > { %v4942_v47 = vpop.f32.mrb[11].mxu1 }
 0x509   : > { %v1380_v48 = vpop.f32.mrb[12].mxu0 }
 0x50a   : > { %v1387_v49 = vsub.f32 %v1328_v44, %v1380_v48  ;;  %v4947_v50 = vpop.f32.mrb[13].mxu0 }
 0x50b   : > { %v1383_v51 = vpop.f32.mrb[14].mxu0 }
 0x50c   : > { %v1388_v52 = vsub.f32 %v1331_v46, %v1383_v51  ;;  %v4948_v53 = vpop.f32.mrb[15].mxu0 }
 0x511   : > { %v1543_v54 = vpop.f32.mrb[16].mxu0 }
 0x512   : > { %v4965_v55 = vpop.f32.mrb[17].mxu0 }
 0x513   : > { %v1546_v56 = vpop.f32.mrb[18].mxu0 }
 0x514   : > { %v4966_v57 = vpop.f32.mrb[19].mxu0 }
 0x519   : > { %v1464_v58 = vpop.f32.mrb[12].mxu1  ;;  %v1594_v59 = vpop.f32.mrb[20].mxu0 }
 0x51a   : > { %v1601_v60 = vsub.f32 %v1543_v54, %v1594_v59  ;;  %v1477_v61 = vpop.permute.xlu0 %1476  ;;  %v4959_v62 = vpop.f32.mrb[13].mxu1 }
 0x51b   : > { %v4971_v63 = vpop.f32.mrb[21].mxu0  ;;  %v1691_v0 = vpop.permute.xlu1 %1690  ;;  %v1482_v1 = vmul.f32 %v1477_v61, %v1464_v58  ;;  %v1479_v2 = vmul.f32 %v1477_v61, %v1387_v49  ;;  %v1480_v3 = vmul.f32 %v1477_v61, %v1388_v52 }
 0x51c   : > { %v1467_v4 = vpop.f32.mrb[14].mxu1  ;;  %v1597_v6 = vpop.f32.mrb[22].mxu0  ;;  %v1693_v23 = vmul.f32 %v1691_v0, %v1601_v60 }
 0x51d   : > { %v1483_v8 = vmul.f32 %v1477_v61, %v1467_v4  ;;  %v1602_v9 = vsub.f32 %v1546_v56, %v1597_v6  ;;  %v4960_v19 = vpop.f32.mrb[15].mxu1  ;;  %v4972_v20 = vpop.f32.mrb[23].mxu0  ;;  %v1481_v21 = vpack.c.bf16 %v1480_v3, %v1479_v2  ;;  %v6428_v2 = vld [vmem:[#allocation13] sm:$0xff]   ;;  %v6438_v6 = vld [vmem:[%s782_s18] ss:$0 sm:$0xff] }
 0x51f   : > { %v1484_v22 = vpack.c.bf16 %v1483_v8, %v1482_v1  ;;  %v1694_v15 = vmul.f32 %v1691_v0, %v1602_v9  ;;  %1485 = vst.msk [vmem:[#allocation3] sm:$0xff] %vm1129_vm2, %v1481_v21  ;;  %v1493_v24 = vsub.bf16 0, %v1481_v21 }
 0x521   : > { %1492 = vst.msk [vmem:[#allocation4] sm:$0xff] %vm1129_vm2, %v1484_v22  ;;  %v1695_v17 = vpack.c.bf16 %v1694_v15, %v1693_v23  ;;  %1487 = vrot.lane.b32.xlu0 %v1484_v22, %s5800_s13 }
 0x523   : > { %1699 = vst.msk [vmem:[#allocation3 + $0x8] sm:$0xff] %vm1129_vm2, %v1695_v17  ;;  %v1706_v35 = vsub.bf16 0, %v1695_v17 }
 0x525   : > { %1495 = vrot.lane.b32.xlu0 %v1493_v24, %s5800_s13 }
 0x529   : > { %1830 = vrot.lane.b32.xlu0 %v6276_v26, %s5795_s19 }
 0x52d   : > { %v1678_v25 = vpop.f32.mrb[16].mxu1 }
 0x52e   : > { %v4983_v27 = vpop.f32.mrb[17].mxu1  ;;  %v1696_v30 = vmul.f32 %v1691_v0, %v1678_v25 }
 0x52f   : > { %v1681_v28 = vpop.f32.mrb[18].mxu1 }
 0x530   : > { %v1697_v31 = vmul.f32 %v1691_v0, %v1681_v28  ;;  %v4984_v33 = vpop.f32.mrb[19].mxu1 }
 0x532   : > { %v1698_v34 = vpack.c.bf16 %v1697_v31, %v1696_v30 }
 0x534   : > { %1705 = vst.msk [vmem:[#allocation4 + $0x8] sm:$0xff] %vm1129_vm2, %v1698_v34  ;;  %1701 = vrot.lane.b32.xlu1 %v1698_v34, %s5800_s13 }
 0x538   : > { %1708 = vrot.lane.b32.xlu1 %v1706_v35, %s5800_s13 }
 0x593   : > { %v1488_v36 = vpop.permute.xlu0 %1487 }
 0x594   : > { %1491 = vst.msk [vmem:[#allocation3] sm:$0xff] %vm1490_vm4, %v1488_v36 }
 0x597   : > { %v1496_v38 = vpop.permute.xlu0 %1495 }
 0x598   : > { %1498 = vst.msk [vmem:[#allocation4] sm:$0xff] %vm1490_vm4, %v1496_v38 }
 0x59b   : > { %v1831_v40 = vpop.permute.xlu0 %1830  ;;  %v1712_v41 = vld [vmem:[#allocation3] sm:$0xff] }
 0x59c   : > { %v1836_v44 = vsel %vm1129_vm2, %v1831_v40, 0  ;;  %4989 = vmatprep.mubr.msk.bf16.mxu0 %vm976_vm0, %v1712_v41 }
 0x59d   : > { %5002 = vmatpush3.bf16.xpose.msra.mxu1 %v1836_v44 }
 0x59e   : > { %5015 = vmatprep.subr.bf16.mxu1 %v5792_v7 }
 0x59f   : > { %v1771_v48 = vld [vmem:[#allocation4] sm:$0xff] }
 0x5a4   : > { %5004 = vmatmul.mubr.msk.bf16.vlgmr.msra.gmra.mrb[20].mxu1 %vm1129_vm2, %v6276_v26 }
 0x5a5   : > { %5017 = vmatprep.mubr.msk.bf16.mxu1 %vm5793_vm1, %v5792_v7 }
 0x5a6   : > { %v1702_v45 = vpop.permute.xlu1 %1701 }
 0x5a7   : > { %1704 = vst.msk [vmem:[#allocation3 + $0x8] sm:$0xff] %vm1490_vm4, %v1702_v45 }
 0x5aa   : > { %v1709_v46 = vpop.permute.xlu1 %1708 }
 0x5ab   : > { %1711 = vst.msk [vmem:[#allocation4 + $0x8] sm:$0xff] %vm1490_vm4, %v1709_v46 }
 0x5ae   : > { %v1713_v47 = vld [vmem:[#allocation3 + $0x8] sm:$0xff] }
 0x5af   : > { %4990 = vmatmul.mubr.msk.bf16.vlgmr.msra.gmra.mrb[24].mxu0 %vm976_vm0, %v1713_v47 }
 0x5b0   : > { %4994 = vmatpush3.bf16.msra.mxu0 %v6268_v18  ;;  %4997 = vmatprep.mubr.msk.bf16.mxu0 %vm976_vm0, %v1771_v48 }
 0x5b1   : > { %4995 = vmatprep.subr.bf16.mxu0 %v6290_v37 }
 0x5b2   : > { %v1772_v49 = vld [vmem:[#allocation4 + $0x8] sm:$0xff] }
 0x5b4   : > { %4996 = vmatpush3.bf16.msra.mxu0 %v6290_v37 }
 0x5b5   : > { %5007 = vmatprep.subr.bf16.mxu0 %v5792_v7 }
 0x5b7   : > { %4998 = vmatmul.mubr.msk.bf16.vlgmr.msra.gmra.mrb[28].mxu0 %vm976_vm0, %v1772_v49 }
 0x5b8   : > { %5011 = vmatprep.mubr.msk.bf16.mxu0 %vm5793_vm1, %v5792_v7 }
 0x677   : > { %v1872_v50 = vpop.f32.mrb[20].mxu1 }
 0x678   : > { %v5005_v51 = vpop.f32.mrb[21].mxu1  ;;  %v1879_v3 = vmul.f32 %v1872_v50, %v6376_v42 }
 0x679   : > { %v1875_v52 = vpop.f32.mrb[22].mxu1 }
 0x67a   : > { %v5006_v53 = vpop.f32.mrb[23].mxu1  ;;  %v1880_v8 = vmul.f32 %v1875_v52, %v6376_v42 }
 0x682   : > { %v6415_v54 = vpop.f32.mrb[24].mxu0 }
 0x683   : > { %v1756_v55 = vpop.f32.mrb[25].mxu0 }
 0x684   : > { %v6417_v56 = vpop.f32.mrb[26].mxu0 }
 0x685   : > { %v2010_v57 = vpack.c.bf16 %v6417_v56, %v6415_v54  ;;  %v1759_v58 = vpop.f32.mrb[27].mxu0 }
 0x686   : > { %v1828_v59 = vpack.c.bf16 %v1759_v58, %v1756_v55 }
 0x688   : > { %5008 = vmatpush3.bf16.msra.mxu0 %v1828_v59 }
 0x689   : > { %5009 = vmatprep.subr.bf16.mxu0 %v5792_v7 }
 0x68a   : > { %v6422_v60 = vpop.f32.mrb[28].mxu0 }
 0x68b   : > { %v1813_v61 = vpop.f32.mrb[29].mxu0 }
 0x68c   : > { %v6424_v62 = vpop.f32.mrb[30].mxu0 }
 0x68d   : > { %v2011_v63 = vpack.c.bf16 %v6424_v62, %v6422_v60  ;;  %v1816_v0 = vpop.f32.mrb[31].mxu0 }
 0x68e   : > { %v1829_v1 = vpack.c.bf16 %v1816_v0, %v1813_v61 }
 0x690   : > { %5010 = vmatpush3.bf16.msra.mxu0 %v1829_v1 }
 0x691   : > { %5021 = vmatprep.subr.bf16.mxu0 %v5792_v7 }
 0x693   : > { %5012 = vmatmul.mubr.msk.bf16.vlgmr.msra.gmra.mrb[32].mxu0 %vm976_vm0, %v6428_v2 }
 0x694   : > { %5023 = vmatprep.mubr.msk.bf16.mxu0 %vm5793_vm1, %v5792_v7 }
 0x766   : > { %v1923_v4 = vpop.f32.mrb[32].mxu0 }
 0x767   : > { %v1924_v9 = vadd.f32 %v1923_v4, %v1879_v3  ;;  %v5013_v19 = vpop.f32.mrb[33].mxu0 }
 0x768   : > { %v1926_v20 = vpop.f32.mrb[34].mxu0 }
 0x769   : > { %v1927_v21 = vadd.f32 %v1926_v20, %v1880_v8  ;;  %v5014_v22 = vpop.f32.mrb[35].mxu0  ;;  %v1936_v23 = vadd.f32 %v6438_v6, %v1924_v9 }
 0x76a   : > { %v2261_v22 = vsel %vm976_vm0, %v6284_v32, 0.0 }
 0x76b   : > { %v1938_v15 = vsel %vm1129_vm2, %v1936_v23, -inf  ;;  %v1937_v17 = vadd.f32 %v6438_v6, %v1927_v21 }
 0x76c   : > { %1939 = vmax.xlane.f32.xlu1 %v1938_v15 }
 0x76d   : > { %v1941_v24 = vsel %vm1129_vm2, %v1937_v17, -inf }
 0x76e   : > { %1942 = vmax.xlane.f32.xlu0 %v1941_v24 }
 0x77d   : > { %2014 = vrot.lane.b32.xlu1 %v6276_v26, %s5799_s20 }
 0x7f9   : > { %v1940_v25 = vpop.xlane.xlu1 %1939 }
 0x7fa   : > { %v1944_v42 = vsub.f32 %v1936_v23, %v1940_v25 }
 0x7fb   : > { %v1943_v27 = vpop.xlane.xlu0 %1942 }
 0x7fc   : > { %v1946_v28 = vmul.f32 1.442695, %v1944_v42  ;;  %v1945_v30 = vsub.f32 %v1937_v17, %v1943_v27  ;;  %v2262_v17 = vrot.slane %v2261_v22, 4 }
 0x7fd   : > { %v2015_v31 = vpop.permute.xlu1 %2014 }
 0x7fe   : > { %5408 = vpow2.f32 %v1946_v28  ;;  %v1948_v33 = vmul.f32 1.442695, %v1945_v30  ;;  %v2020_v34 = vsel %vm1129_vm2, %v2015_v31, 0  ;;  %v2263_v25 = vadd.f32 %v2262_v17, %v2261_v22 }
 0x7ff   : > { %5022 = vmatpush3.bf16.xpose.msra.mxu0 %v2020_v34 }
 0x800   : > { %5410 = vpow2.f32 %v1948_v33  ;;  %5035 = vmatprep.subr.bf16.mxu0 %v5792_v7  ;;  %v2264_v42 = vrot.slane %v2263_v25, 2 }
 0x802   : > { %v2265_v27 = vadd.f32 %v2264_v42, %v2263_v25 }
 0x804   : > { %v2266_v28 = vrot.slane %v2265_v27, 1 }
 0x808   : > { %v5409_v35 = vpop.eup %5408 }
 0x809   : > { %v1950_v36 = vsel %vm1129_vm2, %v5409_v35, 0.0 }
 0x80a   : > { %v5411_v38 = vpop.eup %5410  ;;  %1951 = vadd.xlane.f32.xlu0 %v1950_v36 }
 0x80b   : > { %v1953_v40 = vsel %vm1129_vm2, %v5411_v38, 0.0 }
 0x80c   : > { %1954 = vadd.xlane.f32.xlu1 %v1953_v40 }
 0x81d   : > { %2012 = vrot.lane.b32.xlu1 %v6276_v26, %s5796_s29 }
 0x820   : > { %1961 = vrot.lane.b32.xlu0 %v6276_v26, %s5797_s28 }
 0x821   : > { %2190 = vrot.lane.b32.xlu1 %v2185_v16, %s5794_s11 }
 0x824   : > { %2188 = vrot.lane.b32.xlu0 %v6330_v13, %s5794_s11 }
 0x897   : > { %v1952_v41 = vpop.xlane.xlu0 %1951 }
 0x898   : > { %5412 = vrcp.f32 %v1952_v41 }
 0x899   : > { %v1955_v44 = vpop.xlane.xlu1 %1954 }
 0x89a   : > { %5414 = vrcp.f32 %v1955_v44 }
 0x89b   : > { %v1962_v45 = vpop.permute.xlu0 %1961 }
 0x89c   : > { %5016 = vmatpush3.bf16.msra.mxu1 %v1962_v45 }
 0x89d   : > { %v2013_v46 = vpop.permute.xlu1 %2012  ;;  %5027 = vmatprep.subr.bf16.mxu1 %v5792_v7 }
 0x89e   : > { %5024 = vmatmul.mubr.msk.bf16.vlgmr.msra.gmra.mrb[36].mxu0 %vm1129_vm2, %v2013_v46 }
 0x89f   : > { %5037 = vmatprep.mubr.msk.bf16.mxu0 %vm5793_vm1, %v5792_v7  ;;  %v2189_v50 = vpop.permute.xlu0 %2188 }
 0x8a1   : > { %v2191_v49 = vpop.permute.xlu1 %2190 }
 0x8a2   : > { %v5413_v47 = vpop.eup %5412  ;;  %v2192_v51 = vsel %vm976_vm0, %v2189_v50, %v2191_v49 }
 0x8a3   : > { %v1958_v10 = vmul.f32 %v5413_v47, %v5409_v35 }
 0x8a4   : > { %v5415_v5 = vpop.eup %5414 }
 0x8a5   : > { %v1959_v16 = vmul.f32 %v5415_v5, %v5411_v38 }
 0x8a7   : > { %v1960_v48 = vpack.c.bf16 %v1959_v16, %v1958_v10 }
 0x8a9   : > { %5018 = vmatmul.mubr.msk.bf16.vlgmr.msra.gmra.mrb[24].mxu1 %vm1129_vm2, %v1960_v48 }
 0x8aa   : > { %5028 = vmatpush3.bf16.msra.mxu1 %v2010_v57  ;;  %5031 = vmatprep.mubr.msk.bf16.mxu1 %vm5793_vm1, %v5792_v7 }
 0x8ab   : > { %5029 = vmatprep.subr.bf16.mxu1 %v5792_v7 }
 0x8ae   : > { %5030 = vmatpush3.bf16.msra.mxu1 %v2011_v63 }
 0x8af   : > { %5041 = vmatprep.subr.bf16.mxu1 %v2192_v51 }
 0x8b1   : > { %5032 = vmatmul.mubr.msk.bf16.vlgmr.msra.gmra.mrb[28].mxu1 %vm976_vm0, %v6428_v2 }
 0x8b2   : > { %5042 = vmatpush3.bf16.msra.mxu1 %v2192_v51  ;;  %5043 = vmatprep.mubr.msk.bf16.mxu1 %vm1129_vm2, %v6268_v18 }
 0x8b3   : > { %5053 = vmatprep.subr.bf16.mxu1 %v5792_v7 }
 0x8b9   : > { %5044 = vmatmul.mubr.msk.bf16.vlgmr.msra.gmra.mrb[32].mxu1 %vm1129_vm2, %v6290_v37 }
 0x8ba   : > { %5055 = vmatprep.mubr.msk.bf16.mxu1 %vm5793_vm1, %v5792_v7 }
 0x971   : > { %v2056_v52 = vpop.f32.mrb[36].mxu0 }
 0x972   : > { %v5025_v53 = vpop.f32.mrb[37].mxu0  ;;  %v2063_v61 = vmul.f32 %v2056_v52, %v6379_v43 }
 0x973   : > { %v2059_v54 = vpop.f32.mrb[38].mxu0 }
 0x974   : > { %v5026_v55 = vpop.f32.mrb[39].mxu0  ;;  %v2064_v63 = vmul.f32 %v2059_v54, %v6379_v43 }
 0x97c   : > { %v2001_v56 = vpop.f32.mrb[24].mxu1 }
 0x97d   : > { %v5019_v57 = vpop.f32.mrb[25].mxu1 }
 0x97e   : > { %v2004_v58 = vpop.f32.mrb[26].mxu1 }
 0x97f   : > { %v2008_v59 = vpack.c.bf16 %v2004_v58, %v2001_v56  ;;  %v5020_v60 = vpop.f32.mrb[27].mxu1 }
 0x981   : > { %2009 = vst.msk [vmem:[#allocation2] sm:$0xff] %vm1129_vm2, %v2008_v59 }
 0x984   : > { %v2099_v62 = vpop.f32.mrb[28].mxu1 }
 0x985   : > { %v2100_v0 = vadd.f32 %v2099_v62, %v2063_v61  ;;  %v5033_v1 = vpop.f32.mrb[29].mxu1  ;;  %v5389_v62 = vld [vmem:[#allocation10] sm:$0xff]  }
 0x986   : > { %v2102_v3 = vpop.f32.mrb[30].mxu1 }
 0x987   : > { %v2103_v4 = vadd.f32 %v2102_v3, %v2064_v63  ;;  %v5034_v8 = vpop.f32.mrb[31].mxu1  ;;  %v2106_v9 = vadd.f32 %v6438_v6, %v2100_v0 }
 0x989   : > { %v2108_v19 = vsel %vm1129_vm2, %v2106_v9, -inf  ;;  %v2107_v20 = vadd.f32 %v6438_v6, %v2103_v4  ;;  %v2267_v6 = vadd.f32 %v2266_v28, %v2265_v27 }
 0x98a   : > { %2109 = vmax.xlane.f32.xlu0 %v2108_v19 }
 0x98b   : > { %v2111_v21 = vsel %vm1129_vm2, %v2107_v20, -inf  ;;  %v2268_v30 = vmul.f32 0.125, %v2267_v6 }
 0x98c   : > { %2112 = vmax.xlane.f32.xlu1 %v2111_v21  ;;  %v5045_v23 = vpop.f32.mrb[32].mxu1 }
 0x98d   : > { %v2228_v43 = vpop.f32.mrb[33].mxu1 }
 0x98e   : > { %v5046_v15 = vpop.f32.mrb[34].mxu1 }
 0x98f   : > { %v2231_v24 = vpop.f32.mrb[35].mxu1 }
 0x99d   : > { %2245 = vrot.lane.b32.xlu1 %v5045_v23, %s5795_s19 }
 0x9a0   : > { %2247 = vrot.lane.b32.xlu0 %v5046_v15, %s5795_s19 }
 0x9a1   : > { %2131 = vrot.lane.b32.xlu1 %v6276_v26, %s5798_s24 }
 0x9a5   : > { %2253 = vrot.lane.b32.xlu1 %v5045_v23, %s5794_s11 }
 0x9a9   : > { %2270 = vrot.lane.b32.xlu1 %v2268_v30, %s5796_s29 }
 0xa17   : > { %v2110_v31 = vpop.xlane.xlu0 %2109 }
 0xa18   : > { %v2114_v33 = vsub.f32 %v2106_v9, %v2110_v31 }
 0xa19   : > { %v2113_v34 = vpop.xlane.xlu1 %2112 }
 0xa1a   : > { %v2116_v35 = vmul.f32 1.442695, %v2114_v33  ;;  %v2115_v36 = vsub.f32 %v2107_v20, %v2113_v34 }
 0xa1b   : > { %v2248_v38 = vpop.permute.xlu0 %2247 }
 0xa1c   : > { %5416 = vpow2.f32 %v2116_v35  ;;  %v2118_v40 = vmul.f32 1.442695, %v2115_v36  ;;  %v2252_v44 = vsub.f32 %v2231_v24, %v2248_v38 }
 0xa1d   : > { %v2246_v41 = vpop.permute.xlu1 %2245 }
 0xa1e   : > { %5418 = vpow2.f32 %v2118_v40  ;;  %v2251_v45 = vsub.f32 %v2228_v43, %v2246_v41 }
 0xa20   : > { %v6500_v46 = vpack.c.bf16 %v2252_v44, %v2251_v45 }
 0xa21   : > { %v2132_v26 = vpop.permute.xlu1 %2131 }
 0xa22   : > { %5036 = vmatpush3.bf16.msra.mxu0 %v2132_v26 }
 0xa23   : > { %5047 = vmatprep.subr.bf16.mxu0 %v5792_v7 }
 0xa25   : > { %v2254_v50 = vpop.permute.xlu1 %2253 }
 0xa26   : > { %v5417_v47 = vpop.eup %5416  ;;  %v2259_v52 = vadd.f32 %v2254_v50, %v2228_v43 }
 0xa27   : > { %v2120_v5 = vsel %vm1129_vm2, %v5417_v47, 0.0 }
 0xa28   : > { %v5419_v10 = vpop.eup %5418  ;;  %2121 = vadd.xlane.f32.xlu0 %v2120_v5 }
 0xa29   : > { %v2123_v16 = vsel %vm1129_vm2, %v5419_v10, 0.0  ;;  %v2271_v63 = vpop.permute.xlu1 %2270 }
 0xa2a   : > { %v2273_v0 = vsel %vm1216_vm3, %v2268_v30, %v2271_v63 }
 0xa2b   : > { %v2274_v1 = vpack.c.bf16 %v2273_v0, %v2273_v0 }
 0xa2c   : > { %2124 = vadd.xlane.f32.xlu0 %v2123_v16 }
 0xa42   : > { %2255 = vrot.lane.b32.xlu0 %v5046_v15, %s5794_s11 }
 0xa46   : > { %2342 = vrot.lane.b32.xlu0 %v6500_v46, %s5797_s28 }
 0xab5   : > { %v2122_v48 = vpop.xlane.xlu0 %2121 }
 0xab6   : > { %5420 = vrcp.f32 %v2122_v48 }
 0xab9   : > { %v2125_v49 = vpop.xlane.xlu0 %2124 }
 0xaba   : > { %5422 = vrcp.f32 %v2125_v49 }
 0xabd   : > { %v2256_v51 = vpop.permute.xlu0 %2255 }
 0xabe   : > { %v2260_v53 = vadd.f32 %v2256_v51, %v2231_v24 }
 0xac0   : > { %v2340_v54 = vpack.c.bf16 %v2260_v53, %v2259_v52  ;;  %v5421_v56 = vpop.eup %5420 }
 0xac1   : > { %v2343_v55 = vpop.permute.xlu0 %2342  ;;  %v2128_v59 = vmul.f32 %v5421_v56, %v5417_v47 }
 0xac2   : > { %v2348_v57 = vsel %vm1129_vm2, %v2343_v55, 0  ;;  %2394 = vrot.lane.b32.xlu0 %v2340_v54, %s5794_s11  ;;  %2392 = vrot.lane.b32.xlu1 %v2340_v54, %s5795_s19 }
 0xac3   : > { %5054 = vmatpush3.bf16.xpose.msra.mxu1 %v2348_v57 }
 0xac4   : > { %v5423_v58 = vpop.eup %5422  ;;  %5065 = vmatprep.subr.bf16.mxu1 %v5792_v7 }
 0xac5   : > { %v2129_v60 = vmul.f32 %v5423_v58, %v5419_v10 }
 0xac6   : > { %2605 = vrot.lane.b32.xlu0 %v2340_v54, %s5799_s20  ;;  %2556 = vrot.lane.b32.xlu1 %v6500_v46, %s5798_s24 }
 0xac7   : > { %v2130_v61 = vpack.c.bf16 %v2129_v60, %v2128_v59 }
 0xac9   : > { %5038 = vmatmul.mubr.msk.bf16.vlgmr.msra.gmra.mrb[40].mxu0 %vm1129_vm2, %v2130_v61 }
 0xaca   : > { %5056 = vmatmul.mubr.msk.bf16.vlgmr.msra.gmra.mrb[36].mxu1 %vm1129_vm2, %v6500_v46  ;;  %2554 = vrot.lane.b32.xlu0 %v6500_v46, %s5796_s29 }
 0xacb   : > { %2607 = vrot.lane.b32.xlu1 %v2340_v54, %s5800_s13  ;;  %5066 = vmatpush3.bf16.xpose.msra.mxu1 %v2348_v57 }
 0xacc   : > { %5048 = vmatpush3.bf16.msra.mxu0 %v5389_v62  ;;  %5049 = vmatprep.mubr.msk.bf16.mxu0 %vm5793_vm1, %v5792_v7 }
 0xacd   : > { %5067 = vmatprep.mubr.msk.bf16.mxu1 %vm5793_vm1, %v5792_v7  ;;  %5059 = vmatprep.subr.bf16.mxu0 %v5792_v7 }
 0xace   : > { %5071 = vmatprep.subr.bf16.mxu1 %v5792_v7 }
 0xad1   : > { %5050 = vmatmul.mubr.msk.bf16.vlgmr.msra.gmra.mrb[44].mxu0 %vm1129_vm2, %v2274_v1 }
 0xad2   : > { %5061 = vmatprep.mubr.msk.bf16.mxu0 %vm5793_vm1, %v5792_v7 }
 0xb34   : > { %v2395_v3 = vpop.permute.xlu0 %2394  ;;  %v2393_v4 = vpop.permute.xlu1 %2392 }
 0xb35   : > { %v2400_v8 = vsel %vm1129_vm2, %v2395_v3, 0  ;;  %5068 = vmatmul.mubr.msk.bf16.vlgmr.msra.gmra.mrb[40].mxu1 %vm1129_vm2, %v2393_v4 }
 0xb36   : > { %5060 = vmatpush3.bf16.xpose.msra.mxu0 %v2400_v8  ;;  %5072 = vmatpush3.bf16.xpose.msra.mxu1 %v2400_v8 }
 0xb37   : > { %5077 = vmatprep.subr.bf16.mxu0 %v5792_v7  ;;  %5073 = vmatprep.mubr.msk.bf16.mxu1 %vm5793_vm1, %v5792_v7 }
 0xb38   : > { %5089 = vmatprep.subr.bf16.mxu1 %v5792_v7  ;;  %v2557_v9 = vpop.permute.xlu1 %2556  ;;  %v2606_v20 = vpop.permute.xlu0 %2605 }
 0xb39   : > { %v2562_v19 = vsel %vm1129_vm2, %v2557_v9, 0 }
 0xb3c   : > { %v2555_v22 = vpop.permute.xlu0 %2554 }
 0xb3d   : > { %5062 = vmatmul.mubr.msk.bf16.vlgmr.msra.gmra.mrb[48].mxu0 %vm1129_vm2, %v2393_v4  ;;  %v2608_v21 = vpop.permute.xlu1 %2607 }
 0xb3e   : > { %5078 = vmatpush3.bf16.xpose.msra.mxu0 %v2562_v19  ;;  %5079 = vmatprep.mubr.msk.bf16.mxu0 %vm5793_vm1, %v5792_v7  ;;  %v2613_v23 = vsel %vm1129_vm2, %v2608_v21, 0 }
 0xb3f   : > { %5083 = vmatprep.subr.bf16.mxu0 %v5792_v7 }
 0xb41   : > { %5074 = vmatmul.mubr.msk.bf16.vlgmr.msra.gmra.mrb[40].mxu1 %vm1129_vm2, %v6500_v46 }
 0xb42   : > { %5090 = vmatpush3.bf16.xpose.msra.mxu1 %v2562_v19  ;;  %5091 = vmatprep.mubr.msk.bf16.mxu1 %vm5793_vm1, %v5792_v7 }
 0xb43   : > { %5095 = vmatprep.subr.bf16.mxu1 %v5792_v7 }
 0xb45   : > { %5080 = vmatmul.mubr.msk.bf16.vlgmr.msra.gmra.mrb[52].mxu0 %vm1129_vm2, %v2555_v22 }
 0xb46   : > { %5084 = vmatpush3.bf16.xpose.msra.mxu0 %v2613_v23  ;;  %5085 = vmatprep.mubr.msk.bf16.mxu0 %vm5793_vm1, %v5792_v7 }
 0xb47   : > { %5101 = vmatprep.subr.bf16.mxu0 %v6268_v18 }
 0xb49   : > { %5092 = vmatmul.mubr.msk.bf16.vlgmr.msra.gmra.mrb[44].mxu1 %vm1129_vm2, %v2606_v20 }
 0xb4a   : > { %5096 = vmatpush3.bf16.xpose.msra.mxu1 %v2613_v23  ;;  %5097 = vmatprep.mubr.msk.bf16.mxu1 %vm5793_vm1, %v5792_v7 }
 0xb4b   : > { %5117 = vmatprep.subr.bf16.mxu1 %v5792_v7 }
 0xb4d   : > { %5086 = vmatmul.mubr.msk.bf16.vlgmr.msra.gmra.mrb[56].mxu0 %vm1129_vm2, %v2606_v20 }
 0xb4e   : > { %5102 = vmatpush3.bf16.msra.mxu0 %v6268_v18 }
 0xb4f   : > { %5103 = vmatprep.subr.bf16.mxu0 %v6290_v37 }
 0xb52   : > { %5104 = vmatpush3.bf16.msra.mxu0 %v6290_v37 }
 0xb53   : > { %5109 = vmatprep.subr.bf16.mxu0 %v6268_v18 }
 0xb55   : > { %5098 = vmatmul.mubr.msk.bf16.vlgmr.msra.gmra.mrb[44].mxu1 %vm1129_vm2, %v2555_v22 }
 0xb56   : > { %5119 = vmatprep.mubr.msk.bf16.mxu1 %vm5793_vm1, %v5792_v7 }
 0xb9c   : > { %v6564_v43 = vpop.f32.mrb[40].mxu0 }
 0xb9d   : > { %v5039_v15 = vpop.f32.mrb[41].mxu0  ;;  %v2384_v17 = vpop.f32.mrb[36].mxu1 }
 0xb9e   : > { %v6566_v24 = vpop.f32.mrb[42].mxu0  ;;  %v5057_v25 = vpop.f32.mrb[37].mxu1 }
 0xb9f   : > { %v2178_v42 = vpack.c.bf16 %v6566_v24, %v6564_v43  ;;  %v5040_v27 = vpop.f32.mrb[43].mxu0  ;;  %v2387_v28 = vpop.f32.mrb[38].mxu1  ;;  %v5391_v24 = vld [vmem:[%s6998_s14 + $0x8] sm:$0xff]  }
 0xba0   : > { %v5058_v37 = vpop.f32.mrb[39].mxu1 }
 0xba4   : > { %v2327_v6 = vpop.f32.mrb[44].mxu0 }
 0xba5   : > { %v2328_v18 = vadd.f32 %v6372_v29, %v2327_v6  ;;  %v5051_v30 = vpop.f32.mrb[45].mxu0 }
 0xba6   : > { %v2330_v31 = vpop.f32.mrb[46].mxu0 }
 0xba7   : > { %v4729_v33 = vmul.f32 -1.442695, %v2328_v18  ;;  %v5052_v34 = vpop.f32.mrb[47].mxu0 }
 0xba9   : > { %5424 = vpow2.f32 %v4729_v33 }
 0xbb3   : > { %v5425_v35 = vpop.eup %5424 }
 0xbb4   : > { %v2336_v36 = vadd.f32 1.0, %v5425_v35  ;;  %v5524_v35 = vld [vmem:[%s6994_s10] sm:$0xff]  }
 0xbb6   : > { %5426 = vrcp.f32 %v2336_v36 }
 0xbc0   : > { %v5427_v38 = vpop.eup %5426 }
 0xbc1   : > { %v6572_v40 = vrot.slane %v5427_v38, %v6257_v14  ;;  %v6575_v41 = vrot.slane %v5427_v38, %v6254_v12  ;;  %v5525_v38 = vld [vmem:[%s6994_s10 + $0x8] sm:$0xff]  }
 0xbc3   : > { %2745 = vrot.lane.b32.xlu0 %v6572_v40, %s5796_s29  ;;  %2532 = vrot.lane.b32.xlu1 %v6575_v41, %s5796_s29 }
 0xc10   : > { %v2436_v29 = vpop.f32.mrb[48].mxu0 }
 0xc11   : > { %v2443_v44 = vsub.f32 %v2384_v17, %v2436_v29  ;;  %v5063_v45 = vpop.f32.mrb[49].mxu0 }
 0xc12   : > { %v2439_v46 = vpop.f32.mrb[50].mxu0 }
 0xc13   : > { %v2444_v26 = vsub.f32 %v2387_v28, %v2439_v46  ;;  %v5064_v47 = vpop.f32.mrb[51].mxu0 }
 0xc14   : > { %v2520_v5 = vpop.f32.mrb[40].mxu1 }
 0xc15   : > { %v5075_v10 = vpop.f32.mrb[41].mxu1 }
 0xc16   : > { %v2523_v16 = vpop.f32.mrb[42].mxu1 }
 0xc17   : > { %v5076_v48 = vpop.f32.mrb[43].mxu1 }
 0xc18   : > { %v2598_v49 = vpop.f32.mrb[52].mxu0 }
 0xc19   : > { %v5081_v50 = vpop.f32.mrb[53].mxu0 }
 0xc1a   : > { %v2601_v51 = vpop.f32.mrb[54].mxu0 }
 0xc1b   : > { %v5082_v52 = vpop.f32.mrb[55].mxu0 }
 0xc20   : > { %v2649_v53 = vpop.f32.mrb[56].mxu0 }
 0xc21   : > { %v2656_v54 = vsub.f32 %v2598_v49, %v2649_v53  ;;  %v5087_v55 = vpop.f32.mrb[57].mxu0 }
 0xc22   : > { %v2652_v56 = vpop.f32.mrb[58].mxu0 }
 0xc23   : > { %v2657_v57 = vsub.f32 %v2601_v51, %v2652_v56  ;;  %v5088_v58 = vpop.f32.mrb[59].mxu0 }
 0xc24   : > { %v6635_v58 = vld [vmem:[%s782_s18 + $0x1] ss:$0 sm:$0xff] }
 0xc28   : > { %v2733_v59 = vpop.f32.mrb[44].mxu1 }
 0xc29   : > { %v5099_v60 = vpop.f32.mrb[45].mxu1 }
 0xc2a   : > { %v2736_v61 = vpop.f32.mrb[46].mxu1 }
 0xc2b   : > { %v5100_v62 = vpop.f32.mrb[47].mxu1 }
 0xc35   : > { %v2746_v63 = vpop.permute.xlu0 %2745  ;;  %v2533_v0 = vpop.permute.xlu1 %2532 }
 0xc36   : > { %v2748_v1 = vmul.f32 %v2746_v63, %v2656_v54  ;;  %v2749_v3 = vmul.f32 %v2746_v63, %v2657_v57  ;;  %v2751_v4 = vmul.f32 %v2746_v63, %v2733_v59  ;;  %v2752_v8 = vmul.f32 %v2746_v63, %v2736_v61 }
 0xc37   : > { %v2535_v9 = vmul.f32 %v2533_v0, %v2443_v44  ;;  %v2536_v19 = vmul.f32 %v2533_v0, %v2444_v26  ;;  %v2538_v20 = vmul.f32 %v2533_v0, %v2520_v5  ;;  %v2539_v21 = vmul.f32 %v2533_v0, %v2523_v16 }
 0xc38   : > { %v2753_v22 = vpack.c.bf16 %v2752_v8, %v2751_v4  ;;  %v2750_v23 = vpack.c.bf16 %v2749_v3, %v2748_v1 }
 0xc39   : > { %v2540_v15 = vpack.c.bf16 %v2539_v21, %v2538_v20  ;;  %v2537_v17 = vpack.c.bf16 %v2536_v19, %v2535_v9 }
 0xc3a   : > { %2756 = vrot.lane.b32.xlu0 %v2753_v22, %s5800_s13  ;;  %2760 = vst.msk [vmem:[#allocation4 + $0x8] sm:$0xff] %vm1129_vm2, %v2753_v22  ;;  %2754 = vst.msk [vmem:[#allocation3 + $0x8] sm:$0xff] %vm1129_vm2, %v2750_v23  ;;  %v2761_v25 = vsub.bf16 0, %v2750_v23 }
 0xc3b   : > { %2543 = vrot.lane.b32.xlu1 %v2540_v15, %s5800_s13  ;;  %2547 = vst.msk [vmem:[#allocation4] sm:$0xff] %vm1129_vm2, %v2540_v15  ;;  %2541 = vst.msk [vmem:[#allocation3] sm:$0xff] %vm1129_vm2, %v2537_v17  ;;  %v2548_v27 = vsub.bf16 0, %v2537_v17 }
 0xc3e   : > { %2763 = vrot.lane.b32.xlu0 %v2761_v25, %s5800_s13 }
 0xc3f   : > { %2550 = vrot.lane.b32.xlu1 %v2548_v27, %s5800_s13 }
 0xc43   : > { %2883 = vrot.lane.b32.xlu1 %v6330_v13, %s5795_s19 }
 0xcac   : > { %v2757_v28 = vpop.permute.xlu0 %2756 }
 0xcad   : > { %2759 = vst.msk [vmem:[#allocation3 + $0x8] sm:$0xff] %vm1490_vm4, %v2757_v28  ;;  %v2544_v37 = vpop.permute.xlu1 %2543 }
 0xcae   : > { %2546 = vst.msk [vmem:[#allocation3] sm:$0xff] %vm1490_vm4, %v2544_v37 }
 0xcb0   : > { %v2764_v6 = vpop.permute.xlu0 %2763 }
 0xcb1   : > { %v2551_v18 = vpop.permute.xlu1 %2550  ;;  %2766 = vst.msk [vmem:[#allocation4 + $0x8] sm:$0xff] %vm1490_vm4, %v2764_v6 }
 0xcb2   : > { %2553 = vst.msk [vmem:[#allocation4] sm:$0xff] %vm1490_vm4, %v2551_v18 }
 0xcb4   : > { %v2768_v30 = vld [vmem:[#allocation3 + $0x8] sm:$0xff] }
 0xcb5   : > { %v2884_v31 = vpop.permute.xlu1 %2883  ;;  %v2767_v33 = vld [vmem:[#allocation3] sm:$0xff] }
 0xcb6   : > { %v2889_v34 = vsel %vm1129_vm2, %v2884_v31, 0  ;;  %5105 = vmatprep.mubr.msk.bf16.mxu0 %vm976_vm0, %v2767_v33 }
 0xcb7   : > { %5106 = vmatmul.mubr.msk.bf16.vlgmr.msra.gmra.mrb[60].mxu0 %vm976_vm0, %v2768_v30  ;;  %5118 = vmatpush3.bf16.xpose.msra.mxu1 %v2889_v34 }
 0xcb8   : > { %5110 = vmatpush3.bf16.msra.mxu0 %v5524_v35  ;;  %5131 = vmatprep.subr.bf16.mxu1 %v5792_v7  ;;  %v2825_v29 = vld [vmem:[#allocation4 + $0x8] sm:$0xff] }
 0xcb9   : > { %v2824_v36 = vld [vmem:[#allocation4] sm:$0xff]  ;;  %5111 = vmatprep.subr.bf16.mxu0 %v5525_v38 }
 0xcba   : > { %5113 = vmatprep.mubr.msk.bf16.mxu0 %vm976_vm0, %v2824_v36 }
 0xcbc   : > { %5112 = vmatpush3.bf16.msra.mxu0 %v5525_v38 }
 0xcbd   : > { %5123 = vmatprep.subr.bf16.mxu0 %v5792_v7 }
 0xcbe   : > { %5120 = vmatmul.mubr.msk.bf16.vlgmr.msra.gmra.mrb[48].mxu1 %vm1129_vm2, %v6330_v13 }
 0xcbf   : > { %5114 = vmatmul.mubr.msk.bf16.vlgmr.msra.gmra.mrb[64].mxu0 %vm976_vm0, %v2825_v29  ;;  %5133 = vmatprep.mubr.msk.bf16.mxu1 %vm5793_vm1, %v5792_v7 }
 0xcc0   : > { %5127 = vmatprep.mubr.msk.bf16.mxu0 %vm5793_vm1, %v5792_v7 }
 0xd8a   : > { %v6614_v44 = vpop.f32.mrb[60].mxu0 }
 0xd8b   : > { %v2809_v45 = vpop.f32.mrb[61].mxu0 }
 0xd8c   : > { %v6616_v46 = vpop.f32.mrb[62].mxu0 }
 0xd8d   : > { %v3055_v26 = vpack.c.bf16 %v6616_v46, %v6614_v44  ;;  %v2812_v47 = vpop.f32.mrb[63].mxu0 }
 0xd8e   : > { %v2881_v5 = vpack.c.bf16 %v2812_v47, %v2809_v45 }
 0xd90   : > { %5124 = vmatpush3.bf16.msra.mxu0 %v2881_v5 }
 0xd91   : > { %v2925_v10 = vpop.f32.mrb[48].mxu1  ;;  %5125 = vmatprep.subr.bf16.mxu0 %v5792_v7 }
 0xd92   : > { %v6621_v16 = vpop.f32.mrb[64].mxu0  ;;  %v5121_v48 = vpop.f32.mrb[49].mxu1  ;;  %v2932_v56 = vmul.f32 %v2925_v10, %v6575_v41 }
 0xd93   : > { %v2866_v49 = vpop.f32.mrb[65].mxu0  ;;  %v2928_v50 = vpop.f32.mrb[50].mxu1 }
 0xd94   : > { %v6623_v51 = vpop.f32.mrb[66].mxu0  ;;  %v5122_v52 = vpop.f32.mrb[51].mxu1  ;;  %v2933_v59 = vmul.f32 %v2928_v50, %v6575_v41 }
 0xd95   : > { %v3056_v53 = vpack.c.bf16 %v6623_v51, %v6621_v16  ;;  %v2869_v54 = vpop.f32.mrb[67].mxu0 }
 0xd96   : > { %v2882_v55 = vpack.c.bf16 %v2869_v54, %v2866_v49 }
 0xd98   : > { %5126 = vmatpush3.bf16.msra.mxu0 %v2882_v55 }
 0xd99   : > { %5137 = vmatprep.subr.bf16.mxu0 %v5792_v7 }
 0xd9b   : > { %5128 = vmatmul.mubr.msk.bf16.vlgmr.msra.gmra.mrb[68].mxu0 %vm976_vm0, %v6428_v2 }
 0xd9c   : > { %5139 = vmatprep.mubr.msk.bf16.mxu0 %vm5793_vm1, %v5792_v7 }
 0xe6e   : > { %v2968_v57 = vpop.f32.mrb[68].mxu0 }
 0xe6f   : > { %v2969_v60 = vadd.f32 %v2968_v57, %v2932_v56  ;;  %v5129_v61 = vpop.f32.mrb[69].mxu0 }
 0xe70   : > { %v2971_v62 = vpop.f32.mrb[70].mxu0 }
 0xe71   : > { %v2972_v63 = vadd.f32 %v2971_v62, %v2933_v59  ;;  %v5130_v0 = vpop.f32.mrb[71].mxu0  ;;  %v2981_v1 = vadd.f32 %v6635_v58, %v2969_v60 }
 0xe73   : > { %v2983_v3 = vsel %vm1129_vm2, %v2981_v1, -inf  ;;  %v2982_v4 = vadd.f32 %v6635_v58, %v2972_v63 }
 0xe74   : > { %2984 = vmax.xlane.f32.xlu0 %v2983_v3 }
 0xe75   : > { %v2986_v8 = vsel %vm1129_vm2, %v2982_v4, -inf }
 0xe76   : > { %2987 = vmax.xlane.f32.xlu1 %v2986_v8 }
 0xe87   : > { %3006 = vrot.lane.b32.xlu1 %v6330_v13, %s5797_s28 }
 0xe8b   : > { %3057 = vrot.lane.b32.xlu1 %v6330_v13, %s5796_s29 }
 0xf01   : > { %v2985_v41 = vpop.xlane.xlu0 %2984 }
 0xf02   : > { %v2989_v9 = vsub.f32 %v2981_v1, %v2985_v41 }
 0xf03   : > { %v2988_v19 = vpop.xlane.xlu1 %2987 }
 0xf04   : > { %v2991_v20 = vmul.f32 1.442695, %v2989_v9  ;;  %v2990_v21 = vsub.f32 %v2982_v4, %v2988_v19 }
 0xf06   : > { %5428 = vpow2.f32 %v2991_v20  ;;  %v2993_v22 = vmul.f32 1.442695, %v2990_v21 }
 0xf07   : > { %v3007_v23 = vpop.permute.xlu1 %3006 }
 0xf08   : > { %5430 = vpow2.f32 %v2993_v22  ;;  %5132 = vmatpush3.bf16.msra.mxu1 %v3007_v23 }
 0xf09   : > { %5143 = vmatprep.subr.bf16.mxu1 %v5792_v7 }
 0xf0b   : > { %v3058_v33 = vpop.permute.xlu1 %3057 }
 0xf10   : > { %v5429_v15 = vpop.eup %5428 }
 0xf11   : > { %v2995_v17 = vsel %vm1129_vm2, %v5429_v15, 0.0 }
 0xf12   : > { %v5431_v25 = vpop.eup %5430  ;;  %2996 = vadd.xlane.f32.xlu0 %v2995_v17 }
 0xf13   : > { %v2998_v27 = vsel %vm1129_vm2, %v5431_v25, 0.0 }
 0xf16   : > { %2999 = vadd.xlane.f32.xlu0 %v2998_v27 }
 0xf2c   : > { %3059 = vrot.lane.b32.xlu0 %v6330_v13, %s5799_s20 }
 0xf9f   : > { %v2997_v28 = vpop.xlane.xlu0 %2996 }
 0xfa0   : > { %5432 = vrcp.f32 %v2997_v28 }
 0xfa3   : > { %v3000_v37 = vpop.xlane.xlu0 %2999 }
 0xfa4   : > { %5434 = vrcp.f32 %v3000_v37 }
 0xfa7   : > { %v3060_v6 = vpop.permute.xlu0 %3059 }
 0xfa8   : > { %v3065_v18 = vsel %vm1129_vm2, %v3060_v6, 0  ;;  %v5526_v6 = vld [vmem:[%s6222_s9 + $0x8] sm:$0xff]  }
 0xfa9   : > { %5138 = vmatpush3.bf16.xpose.msra.mxu0 %v3065_v18  ;;  %v3231_v18 = vunpack.c.l.bf16 %v5526_v6 }
 0xfaa   : > { %5151 = vmatprep.subr.bf16.mxu0 %v5792_v7  ;;  %v5433_v30 = vpop.eup %5432 }
 0xfab   : > { %v3003_v34 = vmul.f32 %v5433_v30, %v5429_v15  ;;  %v5527_v30 = vld [vmem:[%s6222_s9] sm:$0xff]   ;;  %s7069_s9 = sld [smem:[#allocation34_spill]] }
 0xfae   : > { %v5435_v31 = vpop.eup %5434 }
 0xfaf   : > { %v3004_v35 = vmul.f32 %v5435_v31, %v5431_v25  ;;  %v3229_v31 = vunpack.c.l.bf16 %v5527_v30 }
 0xfb0   : > { %5140 = vmatmul.mubr.msk.bf16.vlgmr.msra.gmra.mrb[72].mxu0 %vm1129_vm2, %v3058_v33 }
 0xfb1   : > { %v3005_v36 = vpack.c.bf16 %v3004_v35, %v3003_v34  ;;  %5153 = vmatprep.mubr.msk.bf16.mxu0 %vm5793_vm1, %v5792_v7  ;;  %v3230_v34 = vunpack.c.h.bf16 %v5527_v30 }
 0xfb3   : > { %5134 = vmatmul.mubr.msk.bf16.vlgmr.msra.gmra.mrb[52].mxu1 %vm1129_vm2, %v3005_v36  ;;  %v4753_v36 = vld [vmem:[%s6999_s15] ss:$0 sm:$0xff] }
 0xfb4   : > { %5144 = vmatpush3.bf16.msra.mxu1 %v3055_v26  ;;  %5147 = vmatprep.mubr.msk.bf16.mxu1 %vm5793_vm1, %v5792_v7 }
 0xfb5   : > { %5145 = vmatprep.subr.bf16.mxu1 %v5792_v7 }
 0xfb8   : > { %5146 = vmatpush3.bf16.msra.mxu1 %v3056_v53 }
 0xfbb   : > { %5148 = vmatmul.mubr.msk.bf16.vlgmr.msra.gmra.mrb[56].mxu1 %vm976_vm0, %v6428_v2 }
0x1083   : > { %v3101_v38 = vpop.f32.mrb[72].mxu0 }
0x1084   : > { %v5141_v29 = vpop.f32.mrb[73].mxu0  ;;  %v3108_v44 = vmul.f32 %v3101_v38, %v6572_v40 }
0x1085   : > { %v3104_v45 = vpop.f32.mrb[74].mxu0 }
0x1086   : > { %v3046_v47 = vpop.f32.mrb[52].mxu1  ;;  %v5142_v5 = vpop.f32.mrb[75].mxu0  ;;  %v3109_v26 = vmul.f32 %v3104_v45, %v6572_v40  ;;  %v3232_v45 = vunpack.c.h.bf16 %v5526_v6 }
0x1087   : > { %v5135_v10 = vpop.f32.mrb[53].mxu1 }
0x1088   : > { %v3049_v16 = vpop.f32.mrb[54].mxu1 }
0x1089   : > { %v3053_v48 = vpack.c.bf16 %v3049_v16, %v3046_v47  ;;  %v5136_v49 = vpop.f32.mrb[55].mxu1 }
0x108b   : > { %3054 = vst.msk [vmem:[#allocation2 + $0x8] sm:$0xff] %vm1129_vm2, %v3053_v48 }
0x108e   : > { %v3144_v46 = vpop.f32.mrb[56].mxu1 }
0x108f   : > { %v3145_v50 = vadd.f32 %v3144_v46, %v3108_v44  ;;  %v5149_v51 = vpop.f32.mrb[57].mxu1 }
0x1090   : > { %v3147_v52 = vpop.f32.mrb[58].mxu1 }
0x1091   : > { %v3148_v2 = vadd.f32 %v3147_v52, %v3109_v26  ;;  %v5150_v53 = vpop.f32.mrb[59].mxu1  ;;  %v3151_v54 = vadd.f32 %v6635_v58, %v3145_v50 }
0x1093   : > { %v3153_v55 = vsel %vm1129_vm2, %v3151_v54, -inf  ;;  %v3152_v56 = vadd.f32 %v6635_v58, %v3148_v2 }
0x1094   : > { %3154 = vmax.xlane.f32.xlu1 %v3153_v55 }
0x1095   : > { %v3156_v57 = vsel %vm1129_vm2, %v3152_v56, -inf }
0x1096   : > { %3157 = vmax.xlane.f32.xlu0 %v3156_v57 }
0x1121   : > { %v3155_v59 = vpop.xlane.xlu1 %3154 }
0x1122   : > { %v3159_v60 = vsub.f32 %v3151_v54, %v3155_v59 }
0x1123   : > { %v3158_v61 = vpop.xlane.xlu0 %3157 }
0x1124   : > { %v3161_v62 = vmul.f32 1.442695, %v3159_v60  ;;  %v3160_v40 = vsub.f32 %v3152_v56, %v3158_v61 }
0x1126   : > { %5436 = vpow2.f32 %v3161_v62  ;;  %v3163_v63 = vmul.f32 1.442695, %v3160_v40 }
0x1128   : > { %5438 = vpow2.f32 %v3163_v63 }
0x1130   : > { %v5437_v0 = vpop.eup %5436 }
0x1131   : > { %v3165_v1 = vsel %vm1129_vm2, %v5437_v0, 0.0 }
0x1132   : > { %v5439_v3 = vpop.eup %5438  ;;  %3166 = vadd.xlane.f32.xlu0 %v3165_v1 }
0x1133   : > { %v3168_v4 = vsel %vm1129_vm2, %v5439_v3, 0.0 }
0x1134   : > { %3169 = vadd.xlane.f32.xlu1 %v3168_v4 }
0x1145   : > { %2180 = vrot.lane.b32.xlu1 %v2178_v42, %s5800_s13 }
0x1148   : > { %3176 = vrot.lane.b32.xlu0 %v6330_v13, %s5798_s24  ;;  %v5390_v13 = vld [vmem:[%s6998_s14] sm:$0xff]  }
0x1149   : > { %5157 = vmatprep.subr.bf16.mxu1 %v5390_v13 }
0x114a   : > { %5158 = vmatpush3.bf16.msra.mxu1 %v5390_v13 }
0x114b   : > { %5159 = vmatprep.subr.bf16.mxu1 %v5391_v24 }
0x114e   : > { %5160 = vmatpush3.bf16.msra.mxu1 %v5391_v24 }
0x114f   : > { %5173 = vmatprep.subr.bf16.mxu1 %v5792_v7 }
0x11bf   : > { %v3167_v58 = vpop.xlane.xlu0 %3166 }
0x11c0   : > { %5440 = vrcp.f32 %v3167_v58 }
0x11c1   : > { %v3170_v8 = vpop.xlane.xlu1 %3169 }
0x11c2   : > { %5442 = vrcp.f32 %v3170_v8 }
0x11c3   : > { %v3177_v41 = vpop.permute.xlu0 %3176 }
0x11c4   : > { %5152 = vmatpush3.bf16.msra.mxu0 %v3177_v41 }
0x11c5   : > { %v2181_v9 = vpop.permute.xlu1 %2180 }
0x11c6   : > { %2183 = vst.msk [vmem:[#allocation2] sm:$0xff] %vm1490_vm4, %v2181_v9 }
0x11ca   : > { %v5441_v19 = vpop.eup %5440 }
0x11cb   : > { %v3173_v21 = vmul.f32 %v5441_v19, %v5437_v0  ;;  %v6726_v19 = vpack.c.bf16 %v6301_v39, %v6301_v39  ;;  %v5393_v39 = vld [vmem:[%s6996_s12 + $0x8] sm:$0xff]  }
0x11cc   : > { %v5443_v20 = vpop.eup %5442 }
0x11cd   : > { %v3174_v22 = vmul.f32 %v5443_v20, %v5439_v3  ;;  %v3233_v23 = vld [vmem:[#allocation2] sm:$0xff]  ;;  %v6734_v20 = vpack.c.bf16 %v6284_v32, %v6284_v32 }
0x11ce   : > { %5161 = vmatprep.mubr.msk.bf16.mxu1 %vm976_vm0, %v3233_v23 }
0x11cf   : > { %v3175_v43 = vpack.c.bf16 %v3174_v22, %v3173_v21  ;;  %v5392_v21 = vld [vmem:[%s6996_s12] sm:$0xff]  }
0x11d0   : > { %5165 = vmatprep.subr.bf16.mxu0 %v5392_v21 }
0x11d1   : > { %5154 = vmatmul.mubr.msk.bf16.vlgmr.msra.gmra.mrb[76].mxu0 %vm1129_vm2, %v3175_v43 }
0x11d2   : > { %5166 = vmatpush3.bf16.msra.mxu0 %v5392_v21  ;;  %v4754_v21 = vld [vmem:[#allocation15] ss:$0 sm:$0xff] }
0x11d3   : > { %5167 = vmatprep.subr.bf16.mxu0 %v5393_v39 }
0x11d6   : > { %5168 = vmatpush3.bf16.msra.mxu0 %v5393_v39 }
0x11d7   : > { %5179 = vmatprep.subr.bf16.mxu0 %v5792_v7 }
0x12a4   : > { %v3216_v42 = vpop.f32.mrb[76].mxu0 }
0x12a5   : > { %v5155_v15 = vpop.f32.mrb[77].mxu0 }
0x12a6   : > { %v3219_v17 = vpop.f32.mrb[78].mxu0 }
0x12a7   : > { %v3223_v25 = vpack.c.bf16 %v3219_v17, %v3216_v42  ;;  %v5156_v27 = vpop.f32.mrb[79].mxu0 }
0x12a9   : > { %3225 = vrot.lane.b32.xlu1 %v3223_v25, %s5800_s13 }
0x131b   : > { %v3226_v28 = vpop.permute.xlu1 %3225 }
0x131c   : > { %3228 = vst.msk [vmem:[#allocation2 + $0x8] sm:$0xff] %vm1490_vm4, %v3226_v28 }
0x1323   : > { %v3234_v37 = vld [vmem:[#allocation2 + $0x8] sm:$0xff] }
0x1324   : > { %5162 = vmatmul.mubr.msk.bf16.vlgmr.msra.gmra.mrb[60].mxu1 %vm976_vm0, %v3234_v37 }
0x1325   : > { %5175 = vmatprep.mubr.msk.bf16.mxu1 %vm5793_vm1, %v5792_v7 }
0x13f7   : > { %v5163_v33 = vpop.f32.mrb[60].mxu1 }
0x13f8   : > { %v3291_v35 = vpop.f32.mrb[61].mxu1  ;;  %v3308_v38 = vadd.f32 %v5163_v33, %v3231_v18 }
0x13f9   : > { %v3306_v29 = vadd.f32 %v3291_v35, %v3229_v31  ;;  %v5164_v47 = vpop.f32.mrb[62].mxu1 }
0x13fa   : > { %v3294_v5 = vpop.f32.mrb[63].mxu1  ;;  %v3309_v48 = vadd.f32 %v5164_v47, %v3232_v45  ;;  %v3319_v46 = vadd.f32 %v4753_v36, %v3308_v38 }
0x13fb   : > { %v3307_v10 = vadd.f32 %v3294_v5, %v3230_v34  ;;  %v3317_v16 = vadd.f32 %v4753_v36, %v3306_v29 }
0x13fc   : > { %v3327_v50 = vsel %vm976_vm0, %v3319_v46, 0.0  ;;  %v3320_v51 = vadd.f32 %v4753_v36, %v3309_v48 }
0x13fd   : > { %v3321_v49 = vsel %vm976_vm0, %v3317_v16, 0.0  ;;  %v3318_v44 = vadd.f32 %v4753_v36, %v3307_v10 }
0x13fe   : > { %3322 = vadd.xlane.f32.xlu0 %v3321_v49  ;;  %v3330_v52 = vsel %vm976_vm0, %v3320_v51, 0.0 }
0x13ff   : > { %v3324_v26 = vsel %vm976_vm0, %v3318_v44, 0.0 }
0x1400   : > { %3325 = vadd.xlane.f32.xlu1 %v3324_v26 }
0x1402   : > { %3328 = vadd.xlane.f32.xlu0 %v3327_v50 }
0x1406   : > { %3331 = vadd.xlane.f32.xlu0 %v3330_v52 }
0x148b   : > { %v3323_v2 = vpop.xlane.xlu0 %3322 }
0x148c   : > { %v3334_v53 = vmul.f32 0.03125, %v3323_v2  ;;  %v6757_v2 = vld [vmem:[%s7067_s4] sm:$0x7] }
0x148d   : > { %v3326_v54 = vpop.xlane.xlu1 %3325 }
0x148e   : > { %v6704_v55 = vsub.f32 %v3317_v16, %v3334_v53  ;;  %v3335_v56 = vmul.f32 0.03125, %v3326_v54 }
0x148f   : > { %v3329_v57 = vpop.xlane.xlu0 %3328 }
0x1490   : > { %v6706_v59 = vsub.f32 %v3318_v44, %v3335_v56  ;;  %v3336_v60 = vmul.f32 0.03125, %v3329_v57  ;;  %v3342_v61 = vmul.f32 %v6704_v55, %v6704_v55  ;;  %v6750_v44 = vld [vmem:[%s7006_s22] sm:$0x7] }
0x1492   : > { %v6710_v62 = vsub.f32 %v3319_v46, %v3336_v60  ;;  %v3346_v40 = vsel %vm976_vm0, %v3342_v61, 0.0  ;;  %v3343_v63 = vmul.f32 %v6706_v59, %v6706_v59  ;;  %v3413_v60 = vrot.slane %v6757_v2, %v6254_v12 }
0x1493   : > { %v3332_v0 = vpop.xlane.xlu0 %3331  ;;  %3347 = vadd.xlane.f32.xlu1 %v3346_v40 }
0x1494   : > { %v3337_v1 = vmul.f32 0.03125, %v3332_v0  ;;  %v3349_v3 = vsel %vm976_vm0, %v3343_v63, 0.0  ;;  %v3344_v4 = vmul.f32 %v6710_v62, %v6710_v62 }
0x1495   : > { %3350 = vadd.xlane.f32.xlu0 %v3349_v3 }
0x1496   : > { %v6718_v58 = vsub.f32 %v3320_v51, %v3337_v1  ;;  %v3352_v8 = vsel %vm976_vm0, %v3344_v4, 0.0  ;;  %v3365_v51 = vrot.slane %v6750_v44, %v6254_v12 }
0x1497   : > { %3353 = vadd.xlane.f32.xlu1 %v3352_v8 }
0x1498   : > { %v3345_v41 = vmul.f32 %v6718_v58, %v6718_v58  ;;  %v3366_v54 = vmul.f32 %v3365_v51, %v6704_v55  ;;  %v3367_v56 = vmul.f32 %v3365_v51, %v6706_v59  ;;  %v3368_v0 = vmul.f32 %v3365_v51, %v6710_v62 }
0x1499   : > { %v3369_v4 = vmul.f32 %v3365_v51, %v6718_v58  ;;  %v4764_v51 = vld [vmem:[%s791_s0 + $0x1] ss:$0 sm:$0xff] }
0x149a   : > { %v3355_v9 = vsel %vm976_vm0, %v3345_v41, 0.0 }
0x149b   : > { %3356 = vadd.xlane.f32.xlu0 %v3355_v9 }
0x14a8   : > { %3507 = vrot.lane.b32.xlu1 %v6726_v19, %s5795_s19 }
0x14b1   : > { %3635 = vrot.lane.b32.xlu0 %v6726_v19, %s5799_s20 }
0x14b5   : > { %3897 = vrot.lane.b32.xlu0 %v6734_v20, %s5799_s20  ;;  %s7073_s20 = sld [smem:[#allocation38_spill]] }
0x1520   : > { %v3348_v22 = vpop.xlane.xlu1 %3347 }
0x1521   : > { %v3358_v32 = vmul.f32 0.032258064, %v3348_v22 }
0x1522   : > { %v3351_v23 = vpop.xlane.xlu0 %3350 }
0x1523   : > { %5444 = vrsqrt.f32 %v3358_v32  ;;  %v3359_v43 = vmul.f32 0.032258064, %v3351_v23  ;;  %vm3372_vm5 = vcmp.eq.f32.partialorder %v3358_v32, inf  ;;  %v3375_v37 = vand.u32 2147483648, %v3358_v32 }
0x1524   : > { %v3354_v13 = vpop.xlane.xlu1 %3353  ;;  %vm3374_vm6 = vcmp.eq.f32.partialorder %v3358_v32, 0.0 }
0x1525   : > { %v3360_v24 = vmul.f32 0.032258064, %v3354_v13  ;;  %5446 = vrsqrt.f32 %v3359_v43  ;;  %vm3379_vm7 = vcmp.eq.f32.partialorder %v3359_v43, inf  ;;  %v3382_v35 = vand.u32 2147483648, %v3359_v43 }
0x1526   : > { %vm3381_vm8 = vcmp.eq.f32.partialorder %v3359_v43, 0.0 }
0x1527   : > { %5448 = vrsqrt.f32 %v3360_v24  ;;  %vm3386_vm9 = vcmp.eq.f32.partialorder %v3360_v24, inf  ;;  %v3389_v29 = vand.u32 2147483648, %v3360_v24  ;;  %vm3388_vm10 = vcmp.eq.f32.partialorder %v3360_v24, 0.0 }
0x1528   : > { %v3357_v42 = vpop.xlane.xlu0 %3356  ;;  %v3508_v15 = vpop.permute.xlu1 %3507 }
0x1529   : > { %v3361_v17 = vmul.f32 0.032258064, %v3357_v42  ;;  %v3513_v25 = vsel %vm1129_vm2, %v3508_v15, 0 }
0x152a   : > { %5174 = vmatpush3.bf16.xpose.msra.mxu1 %v3513_v25 }
0x152b   : > { %5450 = vrsqrt.f32 %v3361_v17  ;;  %5185 = vmatprep.subr.bf16.mxu1 %v5792_v7  ;;  %vm3393_vm11 = vcmp.eq.f32.partialorder %v3361_v17, inf  ;;  %v3396_v46 = vand.u32 2147483648, %v3361_v17  ;;  %vm3395_vm12 = vcmp.eq.f32.partialorder %v3361_v17, 0.0 }
0x152c   : > { %v3636_v42 = vpop.permute.xlu0 %3635 }
0x152d   : > { %v5445_v27 = vpop.eup %5444  ;;  %v3641_v25 = vsel %vm1129_vm2, %v3636_v42, 0 }
0x152e   : > { %v3371_v28 = vmul.f32 %v5445_v27, %v3358_v32 }
0x152f   : > { %v5447_v6 = vpop.eup %5446 }
0x1530   : > { %v3373_v18 = vsel %vm3372_vm5, %v3358_v32, %v3371_v28  ;;  %v3378_v33 = vmul.f32 %v5447_v6, %v3359_v43  ;;  %v3898_v6 = vpop.permute.xlu0 %3897 }
0x1531   : > { %v5449_v30 = vpop.eup %5448  ;;  %v3376_v31 = vsel %vm3374_vm6, %v3375_v37, %v3373_v18  ;;  %v3903_v18 = vsel %vm1129_vm2, %v3898_v6, 0 }
0x1532   : > { %v3398_v34 = vadd.f32 1e-06, %v3376_v31  ;;  %v3385_v36 = vmul.f32 %v5449_v30, %v3360_v24  ;;  %v3380_v38 = vsel %vm3379_vm7, %v3359_v43, %v3378_v33  ;;  %v4759_v31 = vld [vmem:[%s791_s0] ss:$0 sm:$0xff]  ;;  %s909_s0 = scalar_lea.vmem %s7074_s8, %s4682_s5 }
0x1533   : > { %v3383_v45 = vsel %vm3381_vm8, %v3382_v35, %v3380_v38  ;;  %vm4333_vm8 = vcmask 523264  }
0x1534   : > { %5452 = vrcp.f32 %v3398_v34  ;;  %v3387_v47 = vsel %vm3386_vm9, %v3360_v24, %v3385_v36  ;;  %v3399_v10 = vadd.f32 1e-06, %v3383_v45 }
0x1535   : > { %v5451_v5 = vpop.eup %5450  ;;  %v3390_v16 = vsel %vm3388_vm10, %v3389_v29, %v3387_v47 }
0x1536   : > { %v3400_v48 = vadd.f32 1e-06, %v3390_v16  ;;  %v3392_v49 = vmul.f32 %v5451_v5, %v3361_v17  ;;  %5454 = vrcp.f32 %v3399_v10 }
0x1538   : > { %5456 = vrcp.f32 %v3400_v48  ;;  %v3394_v26 = vsel %vm3393_vm11, %v3361_v17, %v3392_v49 }
0x1539   : > { %v3397_v50 = vsel %vm3395_vm12, %v3396_v46, %v3394_v26 }
0x153a   : > { %v3401_v52 = vadd.f32 1e-06, %v3397_v50 }
0x153c   : > { %5458 = vrcp.f32 %v3401_v52 }
0x153e   : > { %v5453_v53 = vpop.eup %5452 }
0x153f   : > { %v3406_v57 = vmul.f32 %v5453_v53, %v3366_v54 }
0x1540   : > { %v5455_v61 = vpop.eup %5454 }
0x1541   : > { %v3407_v63 = vmul.f32 %v5455_v61, %v3367_v56  ;;  %v6764_v1 = vadd.f32 %v3413_v60, %v3406_v57 }
0x1542   : > { %v5457_v40 = vpop.eup %5456 }
0x1543   : > { %v6766_v3 = vadd.f32 %v3413_v60, %v3407_v63  ;;  %v3408_v8 = vmul.f32 %v5457_v40, %v3368_v0 }
0x1545   : > { %v3418_v55 = vpack.c.bf16 %v6766_v3, %v6764_v1  ;;  %v6772_v12 = vadd.f32 %v3413_v60, %v3408_v8 }
0x1546   : > { %v5459_v41 = vpop.eup %5458 }
0x1547   : > { %v3409_v59 = vmul.f32 %v5459_v41, %v3369_v4  ;;  %5169 = vmatprep.mubr.msk.bf16.mxu0 %vm976_vm0, %v3418_v55 }
0x1549   : > { %v6774_v9 = vadd.f32 %v3413_v60, %v3409_v59 }
0x154b   : > { %v3419_v62 = vpack.c.bf16 %v6774_v9, %v6772_v12 }
0x154d   : > { %5170 = vmatmul.mubr.msk.bf16.vlgmr.msra.gmra.mrb[80].mxu0 %vm976_vm0, %v3419_v62 }
0x154e   : > { %5181 = vmatprep.mubr.msk.bf16.mxu0 %vm5793_vm1, %v5792_v7 }
0x1620   : > { %v5171_v58 = vpop.f32.mrb[80].mxu0 }
0x1621   : > { %v3483_v39 = vpop.f32.mrb[81].mxu0  ;;  %v3492_v32 = vadd.f32 %v5171_v58, %v4754_v21 }
0x1622   : > { %v5172_v22 = vpop.f32.mrb[82].mxu0  ;;  %v3484_v13 = vadd.f32 %v4754_v21, %v3483_v39 }
0x1623   : > { %v3495_v23 = vadd.f32 %v5172_v22, %v4754_v21  ;;  %v3486_v43 = vpop.f32.mrb[83].mxu0 }
0x1624   : > { %v3487_v24 = vadd.f32 %v4754_v21, %v3486_v43 }
0x1625   : > { %v3763_v15 = vpack.c.bf16 %v3495_v23, %v3492_v32 }
0x1626   : > { %v3499_v17 = vpack.c.bf16 %v3487_v24, %v3484_v13 }
0x1628   : > { %3633 = vrot.lane.b32.xlu1 %v3499_v17, %s5796_s29  ;;  %5176 = vmatmul.mubr.msk.bf16.vlgmr.msra.gmra.mrb[64].mxu1 %vm1129_vm2, %v3499_v17 }
0x1629   : > { %5186 = vmatpush3.bf16.xpose.msra.mxu1 %v3641_v25  ;;  %5187 = vmatprep.mubr.msk.bf16.mxu1 %vm5793_vm1, %v5792_v7 }
0x162a   : > { %5197 = vmatprep.subr.bf16.mxu1 %v5792_v7 }
0x162c   : > { %3771 = vrot.lane.b32.xlu1 %v6734_v20, %s5795_s19  ;;  %s7068_s19 = sld [smem:[#allocation33_spill]] }
0x1630   : > { %3895 = vrot.lane.b32.xlu1 %v3763_v15, %s5796_s29 }
0x169a   : > { %v3634_v27 = vpop.permute.xlu1 %3633 }
0x169b   : > { %5188 = vmatmul.mubr.msk.bf16.vlgmr.msra.gmra.mrb[68].mxu1 %vm1129_vm2, %v3634_v27 }
0x169c   : > { %5199 = vmatprep.mubr.msk.bf16.mxu1 %vm5793_vm1, %v5792_v7 }
0x169e   : > { %v3772_v28 = vpop.permute.xlu1 %3771 }
0x169f   : > { %v3777_v37 = vsel %vm1129_vm2, %v3772_v28, 0 }
0x16a0   : > { %5198 = vmatpush3.bf16.xpose.msra.mxu1 %v3777_v37 }
0x16a1   : > { %5209 = vmatprep.subr.bf16.mxu1 %v5792_v7 }
0x16a2   : > { %v3896_v30 = vpop.permute.xlu1 %3895 }
0x16a7   : > { %5200 = vmatmul.mubr.msk.bf16.vlgmr.msra.gmra.mrb[72].mxu1 %vm1129_vm2, %v3763_v15 }
0x16a8   : > { %5210 = vmatpush3.bf16.xpose.msra.mxu1 %v3903_v18  ;;  %5211 = vmatprep.mubr.msk.bf16.mxu1 %vm5793_vm1, %v5792_v7 }
0x16af   : > { %5212 = vmatmul.mubr.msk.bf16.vlgmr.msra.gmra.mrb[76].mxu1 %vm1129_vm2, %v3896_v30 }
0x16fb   : > { %v3549_v33 = vpop.f32.mrb[64].mxu1 }
0x16fc   : > { %v3550_v34 = vadd.f32 %v4759_v31, %v3549_v33  ;;  %v5177_v35 = vpop.f32.mrb[65].mxu1 }
0x16fd   : > { %v3552_v36 = vpop.f32.mrb[66].mxu1 }
0x16fe   : > { %v3553_v38 = vadd.f32 %v4759_v31, %v3552_v36  ;;  %v5178_v29 = vpop.f32.mrb[67].mxu1  ;;  %v3557_v45 = vsel %vm3556_vm13, %v3550_v34, -inf }
0x16ff   : > { %3558 = vmax.xlane.f32.xlu0 %v3557_v45 }
0x1700   : > { %v3560_v47 = vsel %vm3556_vm13, %v3553_v38, -inf }
0x1701   : > { %3561 = vmax.xlane.f32.xlu1 %v3560_v47 }
0x176e   : > { %v3677_v5 = vpop.f32.mrb[68].mxu1 }
0x176f   : > { %v3678_v10 = vadd.f32 %v4759_v31, %v3677_v5  ;;  %v5189_v16 = vpop.f32.mrb[69].mxu1 }
0x1770   : > { %v3680_v48 = vpop.f32.mrb[70].mxu1 }
0x1771   : > { %v3681_v49 = vadd.f32 %v4759_v31, %v3680_v48  ;;  %v5190_v46 = vpop.f32.mrb[71].mxu1  ;;  %v3684_v26 = vsel %vm3556_vm13, %v3678_v10, -inf }
0x1772   : > { %3685 = vmax.xlane.f32.xlu0 %v3684_v26 }
0x1773   : > { %v3687_v50 = vsel %vm3556_vm13, %v3681_v49, -inf }
0x1776   : > { %3688 = vmax.xlane.f32.xlu0 %v3687_v50 }
0x177a   : > { %v3813_v52 = vpop.f32.mrb[72].mxu1 }
0x177b   : > { %v3814_v53 = vadd.f32 %v4764_v51, %v3813_v52  ;;  %v5201_v54 = vpop.f32.mrb[73].mxu1 }
0x177c   : > { %v3816_v56 = vpop.f32.mrb[74].mxu1 }
0x177d   : > { %v3817_v57 = vadd.f32 %v4764_v51, %v3816_v56  ;;  %v5202_v60 = vpop.f32.mrb[75].mxu1  ;;  %v3820_v61 = vsel %vm3556_vm13, %v3814_v53, -inf }
0x177e   : > { %3821 = vmax.xlane.f32.xlu1 %v3820_v61 }
0x177f   : > { %v3823_v40 = vsel %vm3556_vm13, %v3817_v57, -inf }
0x1780   : > { %3824 = vmax.xlane.f32.xlu0 %v3823_v40 }
0x1782   : > { %v3939_v63 = vpop.f32.mrb[76].mxu1 }
0x1783   : > { %v3940_v0 = vadd.f32 %v4764_v51, %v3939_v63  ;;  %v5213_v4 = vpop.f32.mrb[77].mxu1 }
0x1784   : > { %v3942_v8 = vpop.f32.mrb[78].mxu1 }
0x1785   : > { %v3943_v41 = vadd.f32 %v4764_v51, %v3942_v8  ;;  %v5214_v55 = vpop.f32.mrb[79].mxu1  ;;  %v3946_v59 = vsel %vm3556_vm13, %v3940_v0, -inf }
0x1786   : > { %3947 = vmax.xlane.f32.xlu1 %v3946_v59 }
0x1787   : > { %v3949_v62 = vsel %vm3556_vm13, %v3943_v41, -inf }
0x1788   : > { %3950 = vmax.xlane.f32.xlu0 %v3949_v62 }
0x178c   : > { %v3559_v23 = vpop.xlane.xlu0 %3558 }
0x178d   : > { %v3563_v43 = vsub.f32 %v3550_v34, %v3559_v23 }
0x178e   : > { %v3562_v58 = vpop.xlane.xlu1 %3561 }
0x178f   : > { %v3564_v21 = vsub.f32 %v3553_v38, %v3562_v58  ;;  %v3565_v13 = vmul.f32 1.442695, %v3563_v43 }
0x1791   : > { %v3567_v39 = vmul.f32 1.442695, %v3564_v21 }
0x1793   : > { %5460 = vpow2.f32 %v3567_v39 }
0x1794   : > { %5462 = vpow2.f32 %v3565_v13 }
0x1797   : > { %3580 = vrot.lane.b32.xlu1 %v6726_v19, %s5797_s28 }
0x179d   : > { %v6814_v22 = vpop.eup %5460 }
0x179e   : > { %v3572_v32 = vsel %vm3556_vm13, %v6814_v22, 0.0  ;;  %v5463_v24 = vpop.eup %5462 }
0x179f   : > { %3573 = vadd.xlane.f32.xlu0 %v3572_v32  ;;  %v3569_v42 = vsel %vm3556_vm13, %v5463_v24, 0.0 }
0x17bb   : > { %3570 = vadd.xlane.f32.xlu1 %v3569_v42 }
0x17ff   : > { %v3686_v15 = vpop.xlane.xlu0 %3685 }
0x1800   : > { %v3690_v17 = vsub.f32 %v3678_v10, %v3686_v15 }
0x1802   : > { %v3692_v25 = vmul.f32 1.442695, %v3690_v17 }
0x1803   : > { %v3689_v27 = vpop.xlane.xlu0 %3688 }
0x1804   : > { %5464 = vpow2.f32 %v3692_v25  ;;  %v3691_v28 = vsub.f32 %v3681_v49, %v3689_v27 }
0x1806   : > { %v3694_v37 = vmul.f32 1.442695, %v3691_v28 }
0x1808   : > { %5466 = vpow2.f32 %v3694_v37 }
0x180b   : > { %v3822_v6 = vpop.xlane.xlu1 %3821 }
0x180c   : > { %v3826_v18 = vsub.f32 %v3814_v53, %v3822_v6 }
0x180d   : > { %v3825_v30 = vpop.xlane.xlu0 %3824 }
0x180e   : > { %v6819_v31 = vpop.eup %5464  ;;  %v3828_v33 = vmul.f32 1.442695, %v3826_v18  ;;  %v3827_v34 = vsub.f32 %v3817_v57, %v3825_v30 }
0x180f   : > { %v3696_v35 = vsel %vm3556_vm13, %v6819_v31, 0.0 }
0x1810   : > { %5468 = vpow2.f32 %v3828_v33  ;;  %v3830_v36 = vmul.f32 1.442695, %v3827_v34  ;;  %3697 = vadd.xlane.f32.xlu1 %v3696_v35 }
0x1812   : > { %v5467_v38 = vpop.eup %5466  ;;  %5470 = vpow2.f32 %v3830_v36 }
0x1813   : > { %v3948_v29 = vpop.xlane.xlu1 %3947  ;;  %v3699_v45 = vsel %vm3556_vm13, %v5467_v38, 0.0 }
0x1814   : > { %v3952_v47 = vsub.f32 %v3940_v0, %v3948_v29  ;;  %3700 = vadd.xlane.f32.xlu0 %v3699_v45 }
0x1815   : > { %v3951_v5 = vpop.xlane.xlu0 %3950 }
0x1816   : > { %v3954_v10 = vmul.f32 1.442695, %v3952_v47  ;;  %v3953_v16 = vsub.f32 %v3943_v41, %v3951_v5 }
0x1817   : > { %v3581_v48 = vpop.permute.xlu1 %3580 }
0x1818   : > { %5472 = vpow2.f32 %v3954_v10  ;;  %v3956_v49 = vmul.f32 1.442695, %v3953_v16  ;;  %v3587_v46 = vsel %vm3585_vm14, %v3581_v48, 0 }
0x1819   : > { %5180 = vmatpush3.bf16.msra.mxu0 %v3587_v46 }
0x181a   : > { %v5469_v26 = vpop.eup %5468  ;;  %5474 = vpow2.f32 %v3956_v49  ;;  %5191 = vmatprep.subr.bf16.mxu0 %v5792_v7  ;;  %v5395_v49 = vld [vmem:[%s7068_s19 + $0x8] sm:$0xff]  }
0x181b   : > { %v3832_v50 = vsel %vm3556_vm13, %v5469_v26, 0.0 }
0x181c   : > { %v5471_v51 = vpop.eup %5470  ;;  %3833 = vadd.xlane.f32.xlu1 %v3832_v50 }
0x181d   : > { %v3835_v52 = vsel %vm3556_vm13, %v5471_v51, 0.0 }
0x181e   : > { %3836 = vadd.xlane.f32.xlu0 %v3835_v52 }
0x1822   : > { %v5473_v53 = vpop.eup %5472 }
0x1823   : > { %v3958_v54 = vsel %vm3556_vm13, %v5473_v53, 0.0 }
0x1824   : > { %v5475_v56 = vpop.eup %5474  ;;  %3959 = vadd.xlane.f32.xlu1 %v3958_v54 }
0x1825   : > { %v3961_v57 = vsel %vm3556_vm13, %v5475_v56, 0.0 }
0x1826   : > { %3962 = vadd.xlane.f32.xlu0 %v3961_v57 }
0x182c   : > { %v3574_v60 = vpop.xlane.xlu0 %3573 }
0x182d   : > { %5476 = vrcp.f32 %v3574_v60 }
0x1835   : > { %3843 = vrot.lane.b32.xlu1 %v6734_v20, %s5797_s28 }
0x1837   : > { %v5477_v40 = vpop.eup %5476 }
0x1838   : > { %v3578_v0 = vmul.f32 %v5477_v40, %v6814_v22 }
0x1839   : > { %3969 = vrot.lane.b32.xlu1 %v6734_v20, %s5798_s24 }
0x183c   : > { %3707 = vrot.lane.b32.xlu0 %v6726_v19, %s5798_s24 }
0x1848   : > { %v3571_v61 = vpop.xlane.xlu1 %3570 }
0x1849   : > { %5478 = vrcp.f32 %v3571_v61 }
0x1853   : > { %v5479_v63 = vpop.eup %5478 }
0x1854   : > { %v3577_v4 = vmul.f32 %v5479_v63, %v5463_v24 }
0x1856   : > { %v3579_v8 = vpack.c.bf16 %v3578_v0, %v3577_v4  ;;  %v4773_v4 = vld [vmem:[%s7069_s9] ss:$0 sm:$0xff] }
0x1858   : > { %5182 = vmatmul.mubr.msk.bf16.vlgmr.msra.gmra.mrb[84].mxu0 %vm3556_vm13, %v3579_v8 }
0x1859   : > { %5193 = vmatprep.mubr.msk.bf16.mxu0 %vm5793_vm1, %v5792_v7 }
0x189d   : > { %v3698_v20 = vpop.xlane.xlu1 %3697 }
0x18a1   : > { %v3701_v41 = vpop.xlane.xlu0 %3700 }
0x18a2   : > { %5480 = vrcp.f32 %v3701_v41 }
0x18a3   : > { %5482 = vrcp.f32 %v3698_v20 }
0x18a9   : > { %v3834_v55 = vpop.xlane.xlu1 %3833 }
0x18ab   : > { %v3837_v19 = vpop.xlane.xlu0 %3836 }
0x18ac   : > { %5484 = vrcp.f32 %v3837_v19  ;;  %v5481_v59 = vpop.eup %5480 }
0x18ad   : > { %5486 = vrcp.f32 %v3834_v55  ;;  %v5483_v21 = vpop.eup %5482  ;;  %v3705_v39 = vmul.f32 %v5481_v59, %v5467_v38 }
0x18ae   : > { %v3704_v32 = vmul.f32 %v5483_v21, %v6819_v31 }
0x18b0   : > { %v3706_v13 = vpack.c.bf16 %v3705_v39, %v3704_v32 }
0x18b1   : > { %v3960_v62 = vpop.xlane.xlu1 %3959 }
0x18b3   : > { %v3963_v58 = vpop.xlane.xlu0 %3962 }
0x18b4   : > { %5488 = vrcp.f32 %v3963_v58 }
0x18b5   : > { %v3844_v43 = vpop.permute.xlu1 %3843  ;;  %5490 = vrcp.f32 %v3960_v62 }
0x18b6   : > { %v5485_v24 = vpop.eup %5484  ;;  %v3849_v42 = vsel %vm3585_vm14, %v3844_v43, 0 }
0x18b7   : > { %v3708_v22 = vpop.permute.xlu0 %3707  ;;  %v5487_v15 = vpop.eup %5486  ;;  %v3841_v17 = vmul.f32 %v5485_v24, %v5471_v51 }
0x18b8   : > { %v3713_v23 = vsel %vm3585_vm14, %v3708_v22, 0  ;;  %v3840_v25 = vmul.f32 %v5487_v15, %v5469_v26 }
0x18b9   : > { %5192 = vmatpush3.bf16.msra.mxu0 %v3713_v23  ;;  %v3970_v27 = vpop.permute.xlu1 %3969 }
0x18ba   : > { %5203 = vmatprep.subr.bf16.mxu0 %v5792_v7  ;;  %v3842_v28 = vpack.c.bf16 %v3841_v17, %v3840_v25  ;;  %v3975_v6 = vsel %vm3585_vm14, %v3970_v27, 0 }
0x18bc   : > { %5194 = vmatmul.mubr.msk.bf16.vlgmr.msra.gmra.mrb[88].mxu0 %vm3556_vm13, %v3706_v13 }
0x18bd   : > { %5204 = vmatpush3.bf16.msra.mxu0 %v3849_v42  ;;  %5205 = vmatprep.mubr.msk.bf16.mxu0 %vm5793_vm1, %v5792_v7 }
0x18be   : > { %5215 = vmatprep.subr.bf16.mxu0 %v5792_v7  ;;  %v5489_v37 = vpop.eup %5488 }
0x18bf   : > { %v5491_v18 = vpop.eup %5490  ;;  %v3967_v30 = vmul.f32 %v5489_v37, %v5475_v56 }
0x18c0   : > { %v3966_v31 = vmul.f32 %v5491_v18, %v5473_v53 }
0x18c2   : > { %v3968_v33 = vpack.c.bf16 %v3967_v30, %v3966_v31 }
0x18c4   : > { %5206 = vmatmul.mubr.msk.bf16.vlgmr.msra.gmra.mrb[92].mxu0 %vm3556_vm13, %v3842_v28 }
0x18c5   : > { %5216 = vmatpush3.bf16.msra.mxu0 %v3975_v6  ;;  %5217 = vmatprep.mubr.msk.bf16.mxu0 %vm5793_vm1, %v5792_v7  ;;  %v5394_v7 = vld [vmem:[%s7068_s19] sm:$0xff]  }
0x18c6   : > { %5221 = vmatprep.subr.bf16.mxu1 %v5394_v7 }
0x18c7   : > { %5222 = vmatpush3.bf16.msra.mxu1 %v5394_v7 }
0x18c8   : > { %5223 = vmatprep.subr.bf16.mxu1 %v5395_v49 }
0x18cb   : > { %5224 = vmatpush3.bf16.msra.mxu1 %v5395_v49 }
0x18cc   : > { %5218 = vmatmul.mubr.msk.bf16.vlgmr.msra.gmra.mrb[96].mxu0 %vm3556_vm13, %v3968_v33 }
0x192b   : > { %v3623_v34 = vpop.f32.mrb[84].mxu0 }
0x192c   : > { %v5183_v35 = vpop.f32.mrb[85].mxu0 }
0x192d   : > { %v3626_v36 = vpop.f32.mrb[86].mxu0 }
0x192e   : > { %v3630_v38 = vpack.c.bf16 %v3626_v36, %v3623_v34  ;;  %v5184_v29 = vpop.f32.mrb[87].mxu0 }
0x192f   : > { %v5397_v29 = vld [vmem:[%s7070_s6 + $0x8] sm:$0xff]  }
0x1930   : > { %3631 = vst.msk [vmem:[#allocation2] sm:$0xff] %vm1129_vm2, %v3630_v38  ;;  %v5396_v38 = vld [vmem:[%s7070_s6] sm:$0xff]  }
0x1931   : > { %5229 = vmatprep.subr.bf16.mxu0 %v5396_v38 }
0x1932   : > { %5230 = vmatpush3.bf16.msra.mxu0 %v5396_v38 }
0x1933   : > { %5231 = vmatprep.subr.bf16.mxu0 %v5397_v29 }
0x1936   : > { %5232 = vmatpush3.bf16.msra.mxu0 %v5397_v29 }
0x198f   : > { %v3749_v45 = vpop.f32.mrb[88].mxu0 }
0x1990   : > { %v5195_v47 = vpop.f32.mrb[89].mxu0 }
0x1991   : > { %v3752_v5 = vpop.f32.mrb[90].mxu0  ;;  %v5399_v47 = vld [vmem:[%s7071_s21 + $0x8] sm:$0xff]  }
0x1992   : > { %v3756_v10 = vpack.c.bf16 %v3752_v5, %v3749_v45  ;;  %v5196_v16 = vpop.f32.mrb[91].mxu0  ;;  %v5398_v45 = vld [vmem:[%s7071_s21] sm:$0xff]  }
0x1993   : > { %5237 = vmatprep.subr.bf16.mxu1 %v5398_v45 }
0x1994   : > { %3758 = vrot.lane.b32.xlu0 %v3756_v10, %s5800_s13 }
0x1997   : > { %v3885_v48 = vpop.f32.mrb[92].mxu0 }
0x1998   : > { %v5207_v46 = vpop.f32.mrb[93].mxu0 }
0x1999   : > { %v3888_v26 = vpop.f32.mrb[94].mxu0 }
0x199a   : > { %v3892_v50 = vpack.c.bf16 %v3888_v26, %v3885_v48  ;;  %v5208_v51 = vpop.f32.mrb[95].mxu0 }
0x199c   : > { %3893 = vst.msk [vmem:[#allocation2 + $0x8] sm:$0xff] %vm1129_vm2, %v3892_v50 }
0x199f   : > { %v4011_v52 = vpop.f32.mrb[96].mxu0 }
0x19a0   : > { %v5219_v53 = vpop.f32.mrb[97].mxu0 }
0x19a1   : > { %v4014_v54 = vpop.f32.mrb[98].mxu0 }
0x19a2   : > { %v4018_v56 = vpack.c.bf16 %v4014_v54, %v4011_v52  ;;  %v5220_v57 = vpop.f32.mrb[99].mxu0 }
0x19a4   : > { %4020 = vrot.lane.b32.xlu1 %v4018_v56, %s5800_s13  ;;  %s7072_s13 = sld [smem:[#allocation36_spill]] }
0x1a06   : > { %v3759_v60 = vpop.permute.xlu0 %3758 }
0x1a07   : > { %3761 = vst.msk [vmem:[#allocation2] sm:$0xff] %vm1490_vm4, %v3759_v60 }
0x1a0e   : > { %v4024_v61 = vld [vmem:[#allocation2] sm:$0xff] }
0x1a0f   : > { %5225 = vmatprep.mubr.msk.bf16.mxu1 %vm976_vm0, %v4024_v61 }
0x1a16   : > { %v4021_v40 = vpop.permute.xlu1 %4020 }
0x1a17   : > { %4023 = vst.msk [vmem:[#allocation2 + $0x8] sm:$0xff] %vm1490_vm4, %v4021_v40 }
0x1a1e   : > { %v4025_v63 = vld [vmem:[#allocation2 + $0x8] sm:$0xff] }
0x1a1f   : > { %5226 = vmatmul.mubr.msk.bf16.vlgmr.msra.gmra.mrb[80].mxu1 %vm976_vm0, %v4025_v63 }
0x1a20   : > { %5238 = vmatpush3.bf16.msra.mxu1 %v5398_v45 }
0x1a21   : > { %5239 = vmatprep.subr.bf16.mxu1 %v5399_v47 }
0x1a24   : > { %5240 = vmatpush3.bf16.msra.mxu1 %v5399_v47 }
0x1af2   : > { %v5227_v0 = vpop.f32.mrb[80].mxu1 }
0x1af3   : > { %v4082_v8 = vpop.f32.mrb[81].mxu1  ;;  %v4099_v41 = vadd.f32 %v5227_v0, %v6772_v12 }
0x1af4   : > { %v4097_v20 = vadd.f32 %v4082_v8, %v6764_v1  ;;  %v5228_v19 = vpop.f32.mrb[82].mxu1 }
0x1af5   : > { %v4085_v55 = vpop.f32.mrb[83].mxu1  ;;  %v4110_v58 = vadd.f32 %v4773_v4, %v4099_v41  ;;  %v4100_v21 = vadd.f32 %v5228_v19, %v6774_v9 }
0x1af6   : > { %v4108_v59 = vadd.f32 %v4773_v4, %v4097_v20  ;;  %v4098_v62 = vadd.f32 %v4085_v55, %v6766_v3 }
0x1af7   : > { %v4111_v23 = vadd.f32 %v4773_v4, %v4100_v21  ;;  %v4118_v12 = vsel %vm976_vm0, %v4110_v58, 0.0 }
0x1af8   : > { %v4109_v39 = vadd.f32 %v4773_v4, %v4098_v62  ;;  %v4112_v22 = vsel %vm976_vm0, %v4108_v59, 0.0 }
0x1af9   : > { %4113 = vadd.xlane.f32.xlu0 %v4112_v22  ;;  %v4121_v1 = vsel %vm976_vm0, %v4111_v23, 0.0  ;;  %v4155_v22 = vrot.slane %v6750_v44, %v6257_v14 }
0x1afa   : > { %v4115_v32 = vsel %vm976_vm0, %v4109_v39, 0.0 }
0x1afb   : > { %4116 = vadd.xlane.f32.xlu1 %v4115_v32 }
0x1afd   : > { %4119 = vadd.xlane.f32.xlu0 %v4118_v12 }
0x1b01   : > { %4122 = vadd.xlane.f32.xlu0 %v4121_v1 }
0x1b86   : > { %v4114_v43 = vpop.xlane.xlu0 %4113 }
0x1b87   : > { %v4124_v13 = vmul.f32 0.03125, %v4114_v43 }
0x1b88   : > { %v4117_v3 = vpop.xlane.xlu1 %4116 }
0x1b89   : > { %v6878_v24 = vsub.f32 %v4108_v59, %v4124_v13  ;;  %v4125_v9 = vmul.f32 0.03125, %v4117_v3  ;;  %v4203_v13 = vrot.slane %v6757_v2, %v6257_v14  ;;  %v5400_v14 = vld [vmem:[%s7071_s21 + $0x10] sm:$0xff]  }
0x1b8a   : > { %v4120_v42 = vpop.xlane.xlu0 %4119  ;;  %5241 = vmatprep.subr.bf16.mxu1 %v5400_v14 }
0x1b8b   : > { %v6880_v15 = vsub.f32 %v4109_v39, %v4125_v9  ;;  %v4126_v17 = vmul.f32 0.03125, %v4120_v42  ;;  %v4132_v25 = vmul.f32 %v6878_v24, %v6878_v24  ;;  %v4156_v12 = vmul.f32 %v4155_v22, %v6878_v24  ;;  %5242 = vmatpush3.bf16.msra.mxu1 %v5400_v14 }
0x1b8d   : > { %v6884_v27 = vsub.f32 %v4110_v58, %v4126_v17  ;;  %v4136_v28 = vsel %vm976_vm0, %v4132_v25, 0.0  ;;  %v4133_v37 = vmul.f32 %v6880_v15, %v6880_v15  ;;  %v4157_v1 = vmul.f32 %v4155_v22, %v6880_v15 }
0x1b8e   : > { %v4123_v6 = vpop.xlane.xlu0 %4122  ;;  %4137 = vadd.xlane.f32.xlu1 %v4136_v28 }
0x1b8f   : > { %v4127_v18 = vmul.f32 0.03125, %v4123_v6  ;;  %v4139_v30 = vsel %vm976_vm0, %v4133_v37, 0.0  ;;  %v4134_v31 = vmul.f32 %v6884_v27, %v6884_v27  ;;  %v4158_v17 = vmul.f32 %v4155_v22, %v6884_v27  ;;  %v5401_v27 = vld [vmem:[%s7071_s21 + $0x18] sm:$0xff]  }
0x1b90   : > { %4140 = vadd.xlane.f32.xlu0 %v4139_v30  ;;  %5243 = vmatprep.subr.bf16.mxu1 %v5401_v27 }
0x1b91   : > { %v6892_v33 = vsub.f32 %v4111_v23, %v4127_v18  ;;  %v4142_v34 = vsel %vm976_vm0, %v4134_v31, 0.0  ;;  %5244 = vmatpush3.bf16.msra.mxu1 %v5401_v27 }
0x1b92   : > { %4143 = vadd.xlane.f32.xlu1 %v4142_v34 }
0x1b93   : > { %v4135_v35 = vmul.f32 %v6892_v33, %v6892_v33  ;;  %v4159_v37 = vmul.f32 %v4155_v22, %v6892_v33  ;;  %v4774_v33 = vld [vmem:[%s7072_s13] ss:$0 sm:$0xff] }
0x1b95   : > { %v4145_v36 = vsel %vm976_vm0, %v4135_v35, 0.0 }
0x1b96   : > { %4146 = vadd.xlane.f32.xlu0 %v4145_v36 }
0x1c1b   : > { %v4138_v5 = vpop.xlane.xlu1 %4137 }
0x1c1c   : > { %v4148_v10 = vmul.f32 0.032258064, %v4138_v5 }
0x1c1d   : > { %v4141_v16 = vpop.xlane.xlu0 %4140 }
0x1c1e   : > { %5492 = vrsqrt.f32 %v4148_v10  ;;  %v4149_v7 = vmul.f32 0.032258064, %v4141_v16  ;;  %vm4162_vm15 = vcmp.eq.f32.partialorder %v4148_v10, inf  ;;  %v4165_v52 = vand.u32 2147483648, %v4148_v10 }
0x1c1f   : > { %v4144_v48 = vpop.xlane.xlu1 %4143  ;;  %vm4164_vm1 = vcmp.eq.f32.partialorder %v4148_v10, 0.0 }
0x1c20   : > { %v4150_v49 = vmul.f32 0.032258064, %v4144_v48  ;;  %5494 = vrsqrt.f32 %v4149_v7  ;;  %vm4169_vm2 = vcmp.eq.f32.partialorder %v4149_v7, inf  ;;  %v4172_v40 = vand.u32 2147483648, %v4149_v7 }
0x1c21   : > { %vm4171_vm3 = vcmp.eq.f32.partialorder %v4149_v7, 0.0 }
0x1c22   : > { %5496 = vrsqrt.f32 %v4150_v49  ;;  %vm4176_vm4 = vcmp.eq.f32.partialorder %v4150_v49, inf  ;;  %v4179_v4 = vand.u32 2147483648, %v4150_v49  ;;  %vm4178_vm5 = vcmp.eq.f32.partialorder %v4150_v49, 0.0 }
0x1c23   : > { %v4147_v46 = vpop.xlane.xlu0 %4146 }
0x1c24   : > { %v4151_v26 = vmul.f32 0.032258064, %v4147_v46 }
0x1c26   : > { %5498 = vrsqrt.f32 %v4151_v26  ;;  %vm4183_vm6 = vcmp.eq.f32.partialorder %v4151_v26, inf  ;;  %v4186_v58 = vand.u32 2147483648, %v4151_v26  ;;  %vm4185_vm7 = vcmp.eq.f32.partialorder %v4151_v26, 0.0 }
0x1c28   : > { %v5493_v50 = vpop.eup %5492 }
0x1c29   : > { %v4161_v51 = vmul.f32 %v5493_v50, %v4148_v10  ;;  %v4779_v50 = vld [vmem:[%s7073_s20] ss:$0 sm:$0xff] }
0x1c2a   : > { %v5495_v53 = vpop.eup %5494 }
0x1c2b   : > { %v4163_v54 = vsel %vm4162_vm15, %v4148_v10, %v4161_v51  ;;  %v4168_v60 = vmul.f32 %v5495_v53, %v4149_v7 }
0x1c2c   : > { %v5497_v56 = vpop.eup %5496  ;;  %v4166_v57 = vsel %vm4164_vm1, %v4165_v52, %v4163_v54 }
0x1c2d   : > { %v4188_v61 = vadd.f32 1e-06, %v4166_v57  ;;  %v4175_v63 = vmul.f32 %v5497_v56, %v4150_v49  ;;  %v4170_v0 = vsel %vm4169_vm2, %v4149_v7, %v4168_v60 }
0x1c2e   : > { %v4173_v8 = vsel %vm4171_vm3, %v4172_v40, %v4170_v0 }
0x1c2f   : > { %5500 = vrcp.f32 %v4188_v61  ;;  %v4177_v41 = vsel %vm4176_vm4, %v4150_v49, %v4175_v63  ;;  %v4189_v19 = vadd.f32 1e-06, %v4173_v8 }
0x1c30   : > { %v5499_v20 = vpop.eup %5498  ;;  %v4180_v55 = vsel %vm4178_vm5, %v4179_v4, %v4177_v41 }
0x1c31   : > { %v4190_v59 = vadd.f32 1e-06, %v4180_v55  ;;  %v4182_v62 = vmul.f32 %v5499_v20, %v4151_v26  ;;  %5502 = vrcp.f32 %v4189_v19 }
0x1c33   : > { %5504 = vrcp.f32 %v4190_v59  ;;  %v4184_v21 = vsel %vm4183_vm6, %v4151_v26, %v4182_v62 }
0x1c34   : > { %v4187_v39 = vsel %vm4185_vm7, %v4186_v58, %v4184_v21 }
0x1c35   : > { %v4191_v32 = vadd.f32 1e-06, %v4187_v39 }
0x1c37   : > { %5506 = vrcp.f32 %v4191_v32 }
0x1c39   : > { %v5501_v23 = vpop.eup %5500 }
0x1c3a   : > { %v4196_v43 = vmul.f32 %v5501_v23, %v4156_v12 }
0x1c3b   : > { %v5503_v3 = vpop.eup %5502 }
0x1c3c   : > { %v4197_v42 = vmul.f32 %v5503_v3, %v4157_v1  ;;  %v4204_v25 = vadd.f32 %v4203_v13, %v4196_v43 }
0x1c3d   : > { %v5505_v9 = vpop.eup %5504 }
0x1c3e   : > { %v4205_v28 = vadd.f32 %v4203_v13, %v4197_v42  ;;  %v4198_v6 = vmul.f32 %v5505_v9, %v4158_v17 }
0x1c40   : > { %v4208_v30 = vpack.c.bf16 %v4205_v28, %v4204_v25  ;;  %v4206_v24 = vadd.f32 %v4203_v13, %v4198_v6 }
0x1c41   : > { %v5507_v18 = vpop.eup %5506 }
0x1c42   : > { %v4199_v31 = vmul.f32 %v5507_v18, %v4159_v37  ;;  %5233 = vmatprep.mubr.msk.bf16.mxu0 %vm976_vm0, %v4208_v30 }
0x1c44   : > { %v4207_v15 = vadd.f32 %v4203_v13, %v4199_v31 }
0x1c46   : > { %v4209_v34 = vpack.c.bf16 %v4207_v15, %v4206_v24 }
0x1c48   : > { %5234 = vmatmul.mubr.msk.bf16.vlgmr.msra.gmra.mrb[100].mxu0 %vm976_vm0, %v4209_v34 }
0x1d1b   : > { %v5235_v35 = vpop.f32.mrb[100].mxu0 }
0x1d1c   : > { %v4282_v36 = vadd.f32 %v5235_v35, %v4774_v33  ;;  %v4273_v38 = vpop.f32.mrb[101].mxu0 }
0x1d1d   : > { %v4274_v29 = vadd.f32 %v4774_v33, %v4273_v38  ;;  %v5236_v45 = vpop.f32.mrb[102].mxu0 }
0x1d1e   : > { %v4285_v47 = vadd.f32 %v5236_v45, %v4774_v33  ;;  %v4276_v5 = vpop.f32.mrb[103].mxu0  ;;  %v4290_v16 = vmax.f32 %v4282_v36, 0.0 }
0x1d1f   : > { %v4277_v10 = vadd.f32 %v4774_v33, %v4276_v5  ;;  %v4288_v48 = vmax.f32 %v4274_v29, 0.0 }
0x1d20   : > { %v4291_v7 = vmax.f32 %v4285_v47, 0.0 }
0x1d21   : > { %v4289_v49 = vmax.f32 %v4277_v10, 0.0 }
0x1d22   : > { %v4293_v46 = vpack.c.bf16 %v4291_v7, %v4290_v16 }
0x1d23   : > { %v4292_v26 = vpack.c.bf16 %v4289_v49, %v4288_v48 }
0x1d25   : > { %5245 = vmatprep.mubr.msk.bf16.mxu1 %vm4333_vm8, %v4292_v26 }
0x1d26   : > { %5246 = vmatmul.mubr.msk.bf16.vlgmr.msra.gmra.mrb[84].mxu1 %vm4333_vm8, %v4293_v46 }
0x1df9   : > { %v5247_v51 = vpop.f32.mrb[84].mxu1 }
0x1dfa   : > { %v4374_v52 = vpop.f32.mrb[85].mxu1  ;;  %v4383_v53 = vadd.f32 %v5247_v51, %v4779_v50 }
0x1dfb   : > { %v4375_v54 = vadd.f32 %v4779_v50, %v4374_v52  ;;  %v5248_v56 = vpop.f32.mrb[86].mxu1 }
0x1dfc   : > { %v4377_v57 = vpop.f32.mrb[87].mxu1  ;;  %v4386_v61 = vadd.f32 %v5248_v56, %v4779_v50  ;;  %v4391_v63 = vadd.f32 %v4383_v53, %v4206_v24 }
0x1dfd   : > { %v4389_v60 = vadd.f32 %v4375_v54, %v4204_v25  ;;  %v4378_v40 = vadd.f32 %v4779_v50, %v4377_v57  ;;  %v4435_v50 = vsub.s32 2, %v6251_v11 }
0x1dfe   : > { %v4392_v8 = vadd.f32 %v4386_v61, %v4207_v15  ;;  %v4399_v20 = vsel %vm976_vm0, %v4391_v63, 0.0 }
0x1dff   : > { %v4390_v0 = vadd.f32 %v4378_v40, %v4205_v28  ;;  %v4393_v4 = vsel %vm976_vm0, %v4389_v60, 0.0  ;;  %v4436_v61 = vrot.slane %v6750_v44, %v4435_v50 }
0x1e00   : > { %4394 = vadd.xlane.f32.xlu1 %v4393_v4  ;;  %v4402_v19 = vsel %vm976_vm0, %v4392_v8, 0.0 }
0x1e01   : > { %v4396_v41 = vsel %vm976_vm0, %v4390_v0, 0.0 }
0x1e02   : > { %4397 = vadd.xlane.f32.xlu0 %v4396_v41 }
0x1e04   : > { %4400 = vadd.xlane.f32.xlu1 %v4399_v20 }
0x1e06   : > { %4403 = vadd.xlane.f32.xlu0 %v4402_v19 }
0x1e8d   : > { %v4395_v55 = vpop.xlane.xlu1 %4394 }
0x1e8e   : > { %v4405_v59 = vmul.f32 0.03125, %v4395_v55 }
0x1e8f   : > { %v4398_v62 = vpop.xlane.xlu0 %4397 }
0x1e90   : > { %v6936_v58 = vsub.f32 %v4389_v60, %v4405_v59  ;;  %v4406_v21 = vmul.f32 0.03125, %v4398_v62 }
0x1e91   : > { %v4401_v39 = vpop.xlane.xlu1 %4400 }
0x1e92   : > { %v6938_v22 = vsub.f32 %v4390_v0, %v4406_v21  ;;  %v4407_v32 = vmul.f32 0.03125, %v4401_v39  ;;  %v4413_v23 = vmul.f32 %v6936_v58, %v6936_v58  ;;  %v4437_v11 = vmul.f32 %v4436_v61, %v6936_v58 }
0x1e93   : > { %v4404_v12 = vpop.xlane.xlu0 %4403 }
0x1e94   : > { %v6942_v1 = vsub.f32 %v4391_v63, %v4407_v32  ;;  %v4408_v43 = vmul.f32 0.03125, %v4404_v12  ;;  %v4417_v13 = vsel %vm976_vm0, %v4413_v23, 0.0  ;;  %v4414_v3 = vmul.f32 %v6938_v22, %v6938_v22 }
0x1e95   : > { %4418 = vadd.xlane.f32.xlu1 %v4417_v13  ;;  %v4484_v63 = vrot.slane %v6757_v2, %v4435_v50 }
0x1e96   : > { %v6947_v9 = vsub.f32 %v4392_v8, %v4408_v43  ;;  %v4415_v42 = vmul.f32 %v6942_v1, %v6942_v1  ;;  %v4420_v17 = vsel %vm976_vm0, %v4414_v3, 0.0  ;;  %v4438_v8 = vmul.f32 %v4436_v61, %v6938_v22 }
0x1e97   : > { %4421 = vadd.xlane.f32.xlu0 %v4420_v17  ;;  %v4439_v20 = vmul.f32 %v4436_v61, %v6942_v1 }
0x1e98   : > { %v4423_v25 = vsel %vm976_vm0, %v4415_v42, 0.0  ;;  %v4416_v28 = vmul.f32 %v6947_v9, %v6947_v9  ;;  %v4440_v2 = vmul.f32 %v4436_v61, %v6947_v9 }
0x1e99   : > { %4424 = vadd.xlane.f32.xlu1 %v4423_v25 }
0x1e9a   : > { %v4426_v37 = vsel %vm976_vm0, %v4416_v28, 0.0 }
0x1e9b   : > { %4427 = vadd.xlane.f32.xlu0 %v4426_v37 }
0x1f22   : > { %v4419_v6 = vpop.xlane.xlu1 %4418 }
0x1f23   : > { %v4429_v18 = vmul.f32 0.032258064, %v4419_v6 }
0x1f24   : > { %v4422_v30 = vpop.xlane.xlu0 %4421 }
0x1f25   : > { %5508 = vrsqrt.f32 %v4429_v18  ;;  %v4430_v31 = vmul.f32 0.032258064, %v4422_v30  ;;  %vm4443_vm9 = vcmp.eq.f32.partialorder %v4429_v18, inf  ;;  %v4446_v35 = vand.u32 2147483648, %v4429_v18 }
0x1f26   : > { %v4425_v24 = vpop.xlane.xlu1 %4424  ;;  %vm4445_vm10 = vcmp.eq.f32.partialorder %v4429_v18, 0.0 }
0x1f27   : > { %v4431_v15 = vmul.f32 0.032258064, %v4425_v24  ;;  %5510 = vrsqrt.f32 %v4430_v31  ;;  %vm4450_vm11 = vcmp.eq.f32.partialorder %v4430_v31, inf  ;;  %v4453_v10 = vand.u32 2147483648, %v4430_v31 }
0x1f28   : > { %v4428_v34 = vpop.xlane.xlu0 %4427  ;;  %vm4452_vm12 = vcmp.eq.f32.partialorder %v4430_v31, 0.0 }
0x1f29   : > { %5512 = vrsqrt.f32 %v4431_v15  ;;  %v4432_v14 = vmul.f32 0.032258064, %v4428_v34  ;;  %vm4457_vm13 = vcmp.eq.f32.partialorder %v4431_v15, inf  ;;  %v4460_v48 = vand.u32 2147483648, %v4431_v15 }
0x1f2a   : > { %vm4459_vm14 = vcmp.eq.f32.partialorder %v4431_v15, 0.0 }
0x1f2b   : > { %5514 = vrsqrt.f32 %v4432_v14  ;;  %vm4464_vm15 = vcmp.eq.f32.partialorder %v4432_v14, inf  ;;  %v4467_v56 = vand.u32 2147483648, %v4432_v14  ;;  %vm4466_vm1 = vcmp.eq.f32.partialorder %v4432_v14, 0.0 }
0x1f2f   : > { %v5509_v27 = vpop.eup %5508 }
0x1f30   : > { %v4442_v33 = vmul.f32 %v5509_v27, %v4429_v18 }
0x1f31   : > { %v5511_v36 = vpop.eup %5510 }
0x1f32   : > { %v4444_v38 = vsel %vm4443_vm9, %v4429_v18, %v4442_v33  ;;  %v4449_v47 = vmul.f32 %v5511_v36, %v4430_v31 }
0x1f33   : > { %v5513_v29 = vpop.eup %5512  ;;  %v4447_v45 = vsel %vm4445_vm10, %v4446_v35, %v4444_v38 }
0x1f34   : > { %v4469_v5 = vadd.f32 1e-06, %v4447_v45  ;;  %v4456_v16 = vmul.f32 %v5513_v29, %v4431_v15  ;;  %v4451_v7 = vsel %vm4450_vm11, %v4430_v31, %v4449_v47 }
0x1f35   : > { %v5515_v49 = vpop.eup %5514  ;;  %v4454_v46 = vsel %vm4452_vm12, %v4453_v10, %v4451_v7 }
0x1f36   : > { %5516 = vrcp.f32 %v4469_v5  ;;  %v4458_v26 = vsel %vm4457_vm13, %v4431_v15, %v4456_v16  ;;  %v4470_v51 = vadd.f32 1e-06, %v4454_v46  ;;  %v4463_v53 = vmul.f32 %v5515_v49, %v4432_v14 }
0x1f37   : > { %v4461_v52 = vsel %vm4459_vm14, %v4460_v48, %v4458_v26 }
0x1f38   : > { %v4471_v54 = vadd.f32 1e-06, %v4461_v52  ;;  %5518 = vrcp.f32 %v4470_v51  ;;  %v4465_v57 = vsel %vm4464_vm15, %v4432_v14, %v4463_v53 }
0x1f39   : > { %v4468_v60 = vsel %vm4466_vm1, %v4467_v56, %v4465_v57 }
0x1f3a   : > { %5520 = vrcp.f32 %v4471_v54  ;;  %v4472_v40 = vadd.f32 1e-06, %v4468_v60 }
0x1f3c   : > { %5522 = vrcp.f32 %v4472_v40 }
0x1f40   : > { %v5517_v0 = vpop.eup %5516 }
0x1f41   : > { %v4477_v4 = vmul.f32 %v5517_v0, %v4437_v11 }
0x1f42   : > { %v5519_v41 = vpop.eup %5518 }
0x1f43   : > { %v4485_v19 = vadd.f32 %v4484_v63, %v4477_v4  ;;  %v4478_v55 = vmul.f32 %v5519_v41, %v4438_v8 }
0x1f44   : > { %v5521_v44 = vpop.eup %5520 }
0x1f45   : > { %4489 = vst.msk [vmem:[%s909_s0] sm:$0xff] %vm976_vm0, %v4485_v19  ;;  %v4479_v59 = vmul.f32 %v5521_v44, %v4439_v20  ;;  %v4486_v62 = vadd.f32 %v4484_v63, %v4478_v55 }
0x1f46   : > { %v5523_v58 = vpop.eup %5522 }
0x1f47   : > { %v4487_v21 = vadd.f32 %v4484_v63, %v4479_v59  ;;  %4490 = vst.msk [vmem:[%s909_s0 + $0x8] sm:$0xff] %vm976_vm0, %v4486_v62  ;;  %v4480_v39 = vmul.f32 %v5523_v58, %v4440_v2 }
0x1f49   : > { %4491 = vst.msk [vmem:[%s909_s0 + $0x10] sm:$0xff] %vm976_vm0, %v4487_v21  ;;  %v4488_v22 = vadd.f32 %v4484_v63, %v4480_v39 }
0x1f4b   : > { %4492 = vst.msk [vmem:[%s909_s0 + $0x18] sm:$0xff] %vm976_vm0, %v4488_v22 }
0x1f4c PF: > { %p39_p2 = scmp.ge.s32.totalorder %s6075_s7, 4   ;;  %s7075_s5 = smov %s5770_s26 }
0x1f4d   : > { %s7076_s26 = smov %s5774_s27  ;;  %s7077_s27 = smov %s6086_s1 }
0x1f4e   : > { %s7078_s28 = smov %s6075_s7  ;;  %41 = sbr.rel (!%p39_p2) target bundleno = 28 (0x1c), region = 195 }
0x1f55   :  { %4515 = vsyncpa [#allocation6], 1 }
0x1f56   :  { %4517 = vsyncpa [#allocation6 + $0x1], 1 }
0x1f57   :  { %4518 = vsyncpa [#allocation8], 1 }
0x1f58   :  { %4520 = vsyncpa [#allocation8 + $0x1], 1 }
0x1f59   :  { %4521 = vsyncpa [#allocation11], 1 }
0x1f5a   :  { %4522 = vsyncpa [#allocation14], 1 }

</bundles_post_ra>
